<compile_context>
chip_gen: v5e
topology: v5e:2x2
jax: 0.10.0
libtpu: 0.0.40
codegen_flags: <defaults>
</compile_context>

<pallas_src>
import math

import jax
import jax.numpy as jnp
from jax.experimental import pallas as pl
from jax.experimental.pallas import tpu as pltpu


def _ps_schedule(power: int):
    """Paterson-Stockmeyer split (s precomputed powers, m Horner blocks)."""
    best_s, best_cost = None, None
    for cand in range(1, power + 1):
        m = -(-(power + 1) // cand)          # number of Horner blocks
        cost = (cand - 1) + (m - 1)          # power precompute + Horner matmuls
        if best_cost is None or cost < best_cost:
            best_s, best_cost = cand, cost
    s = best_s
    m = -(-(power + 1) // s)
    # c_i = 1/i! for i = 1..P (matches A + sum_{i>=2} A^i/i!), c_0 = 0.
    coeffs = [0.0] + [1.0 / math.factorial(i) for i in range(1, power + 1)]
    coeffs += [0.0] * (m * s - len(coeffs))
    return s, m, coeffs, best_cost


def _vmem_capacity_bytes() -> int:
    cap = 64 * 2**20  # conservative default = v7x per-TC VMEM
    try:
        info = pltpu.get_tpu_info()
        cap = int(getattr(info, "vmem_capacity_bytes", cap))
    except Exception:
        pass
    return cap


def _live_value_blocks(s: int, matmul_precision: str) -> int:
    # s power blocks (A..A^s) + Horner result + matmul temp
    # + 2x input + 2x output double buffers.
    base = s + 6
    if matmul_precision == "bf16_3x":
        base += 2  # hi/lo bf16 splits + extra partial products
    return base


def _make_comm_kernel(power: int, n: int, matmul_precision: str):
    """Kernel computing A + sum_{i=2..power} A^i / i! for one relation tile."""
    s, m, coeffs, _ = _ps_schedule(power)

    def comm_kernel(adj_ref, out_ref):
        a = adj_ref[...]                                 # (r_tile, n, n) f32

        def bmm(x, y):
            # Batched MXU matmul over the relation tile; independent chains
            # interleave and hide MXU fill/drain.
            if matmul_precision == "bf16_3x":
                # 3-pass bf16 split (hi*hi + hi*lo + lo*hi), f32 accumulate:
                # native bf16 MXU throughput, near-f32 accuracy.
                xh = x.astype(jnp.bfloat16)
                xl = (x - xh.astype(jnp.float32)).astype(jnp.bfloat16)
                yh = y.astype(jnp.bfloat16)
                yl = (y - yh.astype(jnp.float32)).astype(jnp.bfloat16)
                mm = lambda p, q: jnp.einsum(
                    "rij,rjk->rik", p, q, preferred_element_type=jnp.float32)
                return mm(xh, yh) + mm(xh, yl) + mm(xl, yh)
            # True f32 contraction, explicitly pinned (no silent downcast).
            return jnp.einsum(
                "rij,rjk->rik", x, y,
                precision=jax.lax.Precision.HIGHEST,
                preferred_element_type=jnp.float32)

        # Precompute A^1..A^s as values (no scratch store/reload).
        powers = [None, a]
        for _ in range(2, s + 1):
            powers.append(bmm(powers[-1], a))
        xs = powers[s]                                   # A^s

        # Identity; broadcasts lazily over the relation axis in the adds.
        row = jax.lax.broadcasted_iota(jnp.int32, (n, n), 0)
        col = jax.lax.broadcasted_iota(jnp.int32, (n, n), 1)
        eye = (row == col).astype(jnp.float32)

        def add_block(res, j):
            # res += b_j(A) = sum_{k=0}^{s-1} c_{j*s+k} * A^k   (A^0 = I)
            for k in range(s):
                c = coeffs[j * s + k]
                if c == 0.0:
                    continue
                term = (c * eye) if k == 0 else (c * powers[k])
                res = term if res is None else res + term
            return res

        # Horner in A^s:  p(A) = (((b_{m-1}) A^s + b_{m-2}) A^s + ... ) + b_0
        result = add_block(None, m - 1)
        if result is None:
            result = jnp.zeros_like(a)
        elif result.ndim == 2:
            # top block degenerated to identity-only; matmul LHS needs rank 3
            result = jnp.broadcast_to(result, a.shape)
        for j in range(m - 2, -1, -1):
            result = add_block(bmm(result, xs), j)

        out_ref[...] = result.astype(out_ref.dtype)

    return comm_kernel


def compute_communication_matrix(adj: jax.Array, power: int,
                                 r_tile: int | None = None,
                                 matmul_precision: str = "highest") -> jax.Array:
    """Pallas version of BaseInfluencePredictor.compute_communication_matrix.

    adj: (R, N, N) float32 — one dense adjacency matrix per relation.
    Returns (R, N, N) float32.
    """
    adj = jnp.asarray(adj, jnp.float32)
    R, N, _ = adj.shape
    if power < 2:
        return adj

    s, m, _, num_matmuls = _ps_schedule(power)

    # Explicit live-buffer VMEM budget per generation.
    vmem_cap = _vmem_capacity_bytes()
    budget = max(min(vmem_cap - 32 * 2**20, 96 * 2**20), 16 * 2**20)
    per_rel_bytes = N * N * 4
    live_blocks = _live_value_blocks(s, matmul_precision)
    r_max = budget // (live_blocks * per_rel_bytes)

    if r_max < 1 and r_tile is None:
        # TODO(synk): row-tiled Horner path for N beyond the whole-matrix VMEM
        # budget; fall back to the pure-JAX/XLA path for now.
        return compute_communication_matrix_ref(adj, power)

    if r_tile is None:
        # Divisors of R only => zero relation padding / zero wasted FLOPs.
        # Prefer grid >= 2 (v7x megacore split); otherwise the largest tile
        # that fits the VMEM budget (amortizes per-step overhead at small N).
        divs = [d for d in range(1, R + 1) if R % d == 0 and d <= max(1, r_max)]
        pref = [d for d in divs if R // d >= 2]
        r_tile = max(pref) if pref else max(divs)
        adj_p, r_pad = adj, R
    else:
        r_tile = max(1, int(r_tile))
        r_pad = -(-R // r_tile) * r_tile
        adj_p = adj if r_pad == R else jnp.pad(
            adj, ((0, r_pad - R), (0, 0), (0, 0)))

    live_bytes = live_blocks * r_tile * per_rel_bytes
    vmem_limit = int(min(max(live_bytes + 24 * 2**20, 32 * 2**20),
                         vmem_cap - 8 * 2**20))

    flops_per_mm = 2 * N ** 3
    if matmul_precision == "bf16_3x":
        flops_per_mm *= 3

    kernel = _make_comm_kernel(power, N, matmul_precision)

    out = pl.pallas_call(
        kernel,
        out_shape=jax.ShapeDtypeStruct((r_pad, N, N), jnp.float32),
        grid_spec=pl.GridSpec(
            grid=(r_pad // r_tile,),
            in_specs=[pl.BlockSpec((r_tile, N, N), lambda r: (r, 0, 0))],
            out_specs=pl.BlockSpec((r_tile, N, N), lambda r: (r, 0, 0)),
        ),
        compiler_params=pltpu.CompilerParams(
            dimension_semantics=("parallel",),
            vmem_limit_bytes=vmem_limit,
        ),
        cost_estimate=pl.CostEstimate(
            flops=int(r_pad * num_matmuls * flops_per_mm),
            transcendentals=0,
            bytes_accessed=int(2 * r_pad * per_rel_bytes),
        ),
    )(adj_p)

    return out if r_pad == R else out[:R]


def compute_communication_matrix_ref(adj: jax.Array, power: int) -> jax.Array:
    """Pure-JAX reference (mirrors the PyTorch loop exactly, f32 precision)."""
    result = adj
    graph_power = adj
    for i in range(2, power + 1):
        graph_power = jnp.einsum("rij,rjk->rik", graph_power, adj,
                                 precision=jax.lax.Precision.HIGHEST)
        result = result + (1.0 / math.factorial(i)) * graph_power
    return result


class BaseInfluencePredictorPallas:
    """Minimal JAX mirror of the (abstract) PyTorch module."""

    TRAINABLE = None

    def __init__(self, num_relations: int, nodes: int,
                 comunicability_degree: int = 8):
        self.num_relations = num_relations
        self.nodes = nodes
        self.c_degree = comunicability_degree
        # No trainable parameters in the base class (relation_weight is
        # abstract), so nothing to initialize.

    def communicability(self, adj: jax.Array,
                        matmul_precision: str = "highest") -> jax.Array:
        return compute_communication_matrix(
            adj, self.c_degree, matmul_precision=matmul_precision)


if __name__ == "__main__":
    # Small, module-consistent shapes: a few relations, nodes = 128
    # (lane-aligned) dense adjacency matrices.
    num_relations = 3
    nodes = 128
    c_degree = 8

    key = jax.random.PRNGKey(0)
    # Sparse-ish random adjacency with small values so powers stay bounded.
    raw = jax.random.uniform(key, (num_relations, nodes, nodes),
                             dtype=jnp.float32)
    adj = jnp.where(raw > 0.9, raw * 0.1, 0.0).astype(jnp.float32)

    model = BaseInfluencePredictorPallas(num_relations, nodes, c_degree)

    # Default (f32 operands, precision pinned to HIGHEST).
    out = jax.block_until_ready(model.communicability(adj))

    ref = jax.block_until_ready(compute_communication_matrix_ref(adj, c_degree))
    assert out.shape == (num_relations, nodes, nodes)
    assert jnp.allclose(out, ref, atol=1e-4, rtol=1e-4), \
        "mismatch vs reference (f32/HIGHEST path)"

    # Deliberate fast path: 3-pass bf16 MXU matmuls with f32 accumulation.
    out_fast = jax.block_until_ready(
        model.communicability(adj, matmul_precision="bf16_3x"))
    assert jnp.allclose(out_fast, ref, atol=1e-3, rtol=1e-3), \
        "mismatch vs reference (bf16_3x path)"

    print("KERNEL_OK")
</pallas_src>

<mosaic_0001>
module attributes {stable_mosaic.version = 11 : i64} {
  func.func @comm_kernel(%arg0: i32, %arg1: memref<1x128x128xf32, #tpu.memory_space<vmem>>, %arg2: memref<1x128x128xf32, #tpu.memory_space<vmem>>) attributes {dimension_semantics = [#tpu.dimension_semantics<parallel>], iteration_bounds = array<i64: 3>, scalar_prefetch = 0 : i64, scratch_operands = 0 : i64, tpu.core_type = #tpu.core_type<tc>, window_params = [{transform_indices = @transform_0, window_bounds = array<i64: 1, 128, 128>}, {transform_indices = @transform_1, window_bounds = array<i64: 1, 128, 128>}]} {
    %c0 = arith.constant 0 : index
    %c0_0 = arith.constant 0 : index
    %c0_1 = arith.constant 0 : index
    %0 = vector.load %arg1[%c0, %c0_0, %c0_1] : memref<1x128x128xf32, #tpu.memory_space<vmem>>, vector<1x128x128xf32>
    "tpu.trace_start"() <{level = 10 : i32, message = "rij,rjk->rik"}> : () -> ()
    %cst = arith.constant dense<0.000000e+00> : vector<1x128x128xf32>
    %1 = tpu.matmul %0, %0, %cst {dimension_numbers = #tpu.dot_dimension_numbers<[2], [1], [1], [2], [0, 0, 0, 1, 1, 2], [0], [0]>, precision = #tpu.contract_precision<fp32>} : vector<1x128x128xf32>, vector<1x128x128xf32>, vector<1x128x128xf32> -> vector<1x128x128xf32>
    %cst_2 = arith.constant dense<0.000000e+00> : vector<1x128x128xf32>
    %2 = tpu.matmul %1, %0, %cst_2 {dimension_numbers = #tpu.dot_dimension_numbers<[2], [1], [1], [2], [0, 0, 0, 1, 1, 2], [0], [0]>, precision = #tpu.contract_precision<fp32>} : vector<1x128x128xf32>, vector<1x128x128xf32>, vector<1x128x128xf32> -> vector<1x128x128xf32>
    "tpu.trace_stop"() : () -> ()
    %3 = tpu.iota {dimensions = array<i32: 0>} : vector<128x128xi32>
    %4 = tpu.iota {dimensions = array<i32: 1>} : vector<128x128xi32>
    %5 = arith.cmpi eq, %3, %4 : vector<128x128xi32>
    %6 = arith.extui %5 : vector<128x128xi1> to vector<128x128xi32>
    %7 = arith.sitofp %6 : vector<128x128xi32> to vector<128x128xf32>
    %cst_3 = arith.constant 0.00138888892 : f32
    %8 = vector.broadcast %cst_3 : f32 to vector<128x128xf32>
    %9 = arith.mulf %8, %7 : vector<128x128xf32>
    %cst_4 = arith.constant 1.98412701E-4 : f32
    %10 = vector.broadcast %cst_4 : f32 to vector<1x128x128xf32>
    %11 = arith.mulf %10, %0 : vector<1x128x128xf32>
    %12 = vector.shape_cast %9 : vector<128x128xf32> to vector<1x128x128xf32>
    %13 = arith.addf %12, %11 : vector<1x128x128xf32>
    %cst_5 = arith.constant 2.48015876E-5 : f32
    %14 = vector.broadcast %cst_5 : f32 to vector<1x128x128xf32>
    %15 = arith.mulf %14, %1 : vector<1x128x128xf32>
    %16 = arith.addf %13, %15 : vector<1x128x128xf32>
    "tpu.trace_start"() <{level = 10 : i32, message = "rij,rjk->rik"}> : () -> ()
    %cst_6 = arith.constant dense<0.000000e+00> : vector<1x128x128xf32>
    %17 = tpu.matmul %16, %2, %cst_6 {dimension_numbers = #tpu.dot_dimension_numbers<[2], [1], [1], [2], [0, 0, 0, 1, 1, 2], [0], [0]>, precision = #tpu.contract_precision<fp32>} : vector<1x128x128xf32>, vector<1x128x128xf32>, vector<1x128x128xf32> -> vector<1x128x128xf32>
    "tpu.trace_stop"() : () -> ()
    %cst_7 = arith.constant 0.166666672 : f32
    %18 = vector.broadcast %cst_7 : f32 to vector<128x128xf32>
    %19 = arith.mulf %18, %7 : vector<128x128xf32>
    %20 = vector.shape_cast %19 : vector<128x128xf32> to vector<1x128x128xf32>
    %21 = arith.addf %17, %20 : vector<1x128x128xf32>
    %cst_8 = arith.constant 0.0416666679 : f32
    %22 = vector.broadcast %cst_8 : f32 to vector<1x128x128xf32>
    %23 = arith.mulf %22, %0 : vector<1x128x128xf32>
    %24 = arith.addf %21, %23 : vector<1x128x128xf32>
    %cst_9 = arith.constant 0.00833333377 : f32
    %25 = vector.broadcast %cst_9 : f32 to vector<1x128x128xf32>
    %26 = arith.mulf %25, %1 : vector<1x128x128xf32>
    %27 = arith.addf %24, %26 : vector<1x128x128xf32>
    "tpu.trace_start"() <{level = 10 : i32, message = "rij,rjk->rik"}> : () -> ()
    %cst_10 = arith.constant dense<0.000000e+00> : vector<1x128x128xf32>
    %28 = tpu.matmul %27, %2, %cst_10 {dimension_numbers = #tpu.dot_dimension_numbers<[2], [1], [1], [2], [0, 0, 0, 1, 1, 2], [0], [0]>, precision = #tpu.contract_precision<fp32>} : vector<1x128x128xf32>, vector<1x128x128xf32>, vector<1x128x128xf32> -> vector<1x128x128xf32>
    "tpu.trace_stop"() : () -> ()
    %cst_11 = arith.constant 1.000000e+00 : f32
    %29 = vector.broadcast %cst_11 : f32 to vector<1x128x128xf32>
    %30 = arith.mulf %29, %0 : vector<1x128x128xf32>
    %31 = arith.addf %28, %30 : vector<1x128x128xf32>
    %cst_12 = arith.constant 5.000000e-01 : f32
    %32 = vector.broadcast %cst_12 : f32 to vector<1x128x128xf32>
    %33 = arith.mulf %32, %1 : vector<1x128x128xf32>
    %34 = arith.addf %31, %33 : vector<1x128x128xf32>
    %c0_13 = arith.constant 0 : index
    %c0_14 = arith.constant 0 : index
    %c0_15 = arith.constant 0 : index
    %35 = vector.load %arg2[%c0_13, %c0_14, %c0_15] : memref<1x128x128xf32, #tpu.memory_space<vmem>>, vector<1x128x128xf32>
    tpu.vector_store %arg2[%c0_13, %c0_14, %c0_15], %34 {strides = array<i32>} : memref<1x128x128xf32, #tpu.memory_space<vmem>>, vector<1x128x128xf32>,
    return
  }
  func.func @transform_0(%arg0: i32) -> (i32, i32, i32) {
    %c0_i32 = arith.constant 0 : i32
    %c0_i32_0 = arith.constant 0 : i32
    %c0_i32_1 = arith.constant 0 : i32
    return %arg0, %c0_i32, %c0_i32_0 : i32, i32, i32
  }
  func.func @transform_1(%arg0: i32) -> (i32, i32, i32) {
    %c0_i32 = arith.constant 0 : i32
    %c0_i32_0 = arith.constant 0 : i32
    %c0_i32_1 = arith.constant 0 : i32
    return %arg0, %c0_i32, %c0_i32_0 : i32, i32, i32
  }
}

</mosaic_0001>

<bundles_post_ra>
// kernel: tpu_custom_call.1
= control target key start
LH: loop header
LB: loop body
LE: loop exit
PB: predicated region body
PF: predicated region fallthrough
CT: control target
= control target key end

     0   :  { %6 = vsyncpa [#allocation3], 0  ;;  %s6086_s0 = inlined_call_operand.hbm [shape: f32[3,128,128], index: 0, kind: input, shape index: {}]   ;;  %s6087_s1 = inlined_call_operand.hbm [shape: f32[3,128,128], index: 1, kind: output, shape index: {}]  }
   0x1   :  { %8 = vsyncpa [#allocation3 + $0x1], 0 }
   0x2   :  { %9 = vsyncpa [#allocation4], 0 }
   0x3   :  { %11 = vsyncpa [#allocation4 + $0x1], 0  ;;  %s3969_s6 = smov 0   ;;  %s3971_s7 = smov 0  }
   0x4   :  { %s3973_s8 = smov 0   ;;  %s3975_s9 = smov 0  }
   0x5 LB: > { %s3990_s10 = sadd.s32 4294967295, %s3952_s9   ;;  %s3741_s11 = sadd.s32 4294967294, %s3952_s9   ;;  %s3952_s9 = sphi %s3975_s9, %s6365_s9   ;;  %s3948_s8 = sphi %s3973_s8, %s6364_s8   ;;  %s3944_s7 = sphi %s3971_s7, %s6363_s7   ;;  %s3940_s6 = sphi %s3969_s6, %s6362_s6  }
   0x6   : > { %s3994_s12 = sadd.s32 1, %s3952_s9   ;;  %s24_s13 = sadd.s32 1, %s3948_s8 }
   0x7   : > { %s21_s14 = ssub.s32 %s3952_s9, %s3994_s12  ;;  %p31_p0 = scmp.ne.s32.totalorder %s3948_s8, %s3944_s7 }
   0x8   : > { %p22_p1 = scmp.eq.s32.totalorder %s21_s14, 0  ;;  %p32_p2 = scmp.eq.s32.totalorder %s3952_s9, 0 }
   0x9   : > { %p37_p3 = scmp.ne.s32.totalorder %s3944_s7, %s3940_s6  ;;  %p38_p4 = scmp.eq.s32.totalorder %s3990_s10, 0 }
   0xa   : > { %s4006_s15 = scalar_select %p22_p1, %s3948_s8, %s24_s13  }
   0xb   : > { %p4008_p5 = por %p32_p2, %p31_p0  ;;  %p4012_p6 = por %p38_p4, %p37_p3 }
   0xc   : > { %p61_p7 = scmp.eq.s32.totalorder %s3990_s10, 2  ;;  %p67_p8 = scmp.eq.s32.totalorder %s3741_s11, 2 }
   0xd   : > { %p3785_p9 = scmp.lt.s32.totalorder %s3952_s9, 3  ;;  %s87_s20 = sand.u32 1, %s3948_s8  }
   0xe   : > { %p4018_p10 = por %p61_p7, %p31_p0  ;;  %p4022_p11 = por %p67_p8, %p37_p3 }
   0xf   : > { %s3771_s21 = sshll.u32 %s3952_s9, 7  ;;  %s3744_s22 = sshll.u32 %s87_s20, 7 }
  0x10   : > { %s96_s25 = scalar_lea.hbm %s6086_s0, %s3771_s21  ;;  %s91_s27 = scalar_lea.vmem [#allocation2], %s3744_s22 }
  0x11   : > { %s97_s26 = sshll.u32 %s96_s25, 4  ;;  %s99_s28 = sshll.u32 %s91_s27, 4  ;;  %s98_s26 = int_to_ptr.hbm [resolvable:$true] %s97_s26  ;;  %s100_s28 = int_to_ptr.vmem [resolvable:$true] %s99_s28 }
  0x12   : > { %p4033_p12 = pnand %p3785_p9, %p4008_p5  ;;  %p3747_p13 = scmp.ge.s32.totalorder %s3952_s9, 1 }
  0x13   : > { %p107_p0 = scmp.lt.s32.totalorder %s3952_s9, 4  ;;  %s88_s30 = scalar_lea.sflag [#allocation3], %s87_s20 }
  0x14   : > { %s3856_s2 = sshra.s32 %s98_s26, 4  ;;  %p3860_p2 = pneg %p4033_p12  ;;  %s3857_s2 = int_to_ptr.hbm [resolvable:$true] %s3856_s2 }
  0x15   : > { %s3858_s3 = scalar_lea.hbm %s3857_s2, 128  ;;  %s3863_s11 = scalar_lea.hbm %s6086_s0, 384 }
  0x16   : > { %p3859_p1 = scmp.ne.s32.totalorder %s3857_s2, %s3858_s3  ;;  %p3864_p5 = scmp.lt.s32.totalorder %s3857_s2, %s6086_s0 }
  0x17   : > { %p3865_p7 = scmp.lt.s32.totalorder %s3863_s11, %s3858_s3 }
  0x18   : > { %p3861_p3 = pnand %p3860_p2, %p3859_p1 }
  0x19   : > { %p3866_p8 = por %p3865_p7, %p3864_p5 }
  0x1a   : > { %p3862_p4 = pneg %p3861_p3 }
  0x1c   : > { %p3867_p9 = pnand %p3866_p8, %p3862_p4 }
  0x1e   : > { %3870 = shalt.err (!%p3867_p9)
}
  0x1f   : > { %s3954_s16 = smov 128   ;;  %s3955_s20 = smov 8  }
  0x20   : > { %3780 = dma.hbm_to_vmem [thread:$0]  (!%p4033_p12), %s98_s26, 2048, %s100_s28, %s88_s30, %s3954_s16, %s3954_s16, %s3955_s20  }
  0x21   : > { %p108_p1 = pnand %p3747_p13, %p107_p0 }
  0x23   : > { %111 = sbr.rel (%p108_p1) target bundleno = 1455 (0x5af), region = 24 }
  0x28   : > { %s4054_s21 = sand.u32 1, %s3944_s7  }
  0x29   : > { %s3748_s22 = sshll.u32 %s4054_s21, 7  ;;  %s114_s23 = scalar_lea.sflag [#allocation3], %s4054_s21 }
  0x2a   : > { %s4060_s24 = scalar_lea.vmem [#allocation2], %s3748_s22 }
  0x2b   : > { %3931 = dma.done.wait (%p4012_p6), %s114_s23, 2048  }
  0x2c   : > { %3933 = vsyncadd (%p4012_p6), %s114_s23, 4294965248  ;;  %v152_v0 = vld [vmem:[%s4060_s24 + $0x78] sm:$0xff]  ;;  %v151_v1 = vld [vmem:[%s4060_s24 + $0x70] sm:$0xff]  ;;  %s6006_s17 = scalar_lea.vmem [#allocation5], %s3748_s22  ;;  %s3772_s25 = sshll.u32 %s3990_s10, 7 }
  0x2d   : > { %v150_v2 = vld [vmem:[%s4060_s24 + $0x68] sm:$0xff]  ;;  %v4069_v3 = vand.u32 4294901760, %v152_v0  ;;  %v4071_v4 = vand.u32 4294901760, %v151_v1  ;;  %v149_v6 = vld [vmem:[%s4060_s24 + $0x60] sm:$0xff]  ;;  %v148_v7 = vld [vmem:[%s4060_s24 + $0x58] sm:$0xff]  ;;  %s3664_s28 = scalar_lea.hbm %s6087_s1, %s3772_s25  ;;  %s3665_s29 = sshll.u32 %s6006_s17, 4  ;;  %s3666_s29 = int_to_ptr.vmem [resolvable:$true] %s3665_s29 }
  0x2e   : > { %v4073_v5 = vand.u32 4294901760, %v150_v2  ;;  %v147_v8 = vld [vmem:[%s4060_s24 + $0x50] sm:$0xff]  ;;  %v4078_v9 = vand.u32 4294901760, %v149_v6  ;;  %v4080_v10 = vand.u32 4294901760, %v148_v7  ;;  %v146_v12 = vld [vmem:[%s4060_s24 + $0x48] sm:$0xff]  ;;  %v145_v13 = vld [vmem:[%s4060_s24 + $0x40] sm:$0xff] }
  0x2f   : > { %v4082_v11 = vand.u32 4294901760, %v147_v8  ;;  %154 = vmatpush.msra.mxu0 %v4069_v3  ;;  %v4088_v14 = vsub.f32 %v152_v0, %v4069_v3  ;;  %v4091_v15 = vsub.f32 %v151_v1, %v4071_v4  ;;  %605 = vmatpush.msra.mxu3 %v4069_v3  ;;  %v4097_v17 = vand.u32 4294901760, %v146_v12  ;;  %v144_v21 = vld [vmem:[%s4060_s24 + $0x38] sm:$0xff]  ;;  %v143_v26 = vld [vmem:[%s4060_s24 + $0x30] sm:$0xff]  ;;  %v142_v36 = vld [vmem:[%s4060_s24 + $0x28] sm:$0xff]  ;;  %s3667_s30 = sshll.u32 %s3664_s28, 4  ;;  %s3668_s30 = int_to_ptr.hbm [resolvable:$true] %s3667_s30 }
  0x30   : > { %v4095_v16 = vsub.f32 %v150_v2, %v4073_v5  ;;  %v4100_v18 = vsub.f32 %v149_v6, %v4078_v9  ;;  %v4103_v19 = vsub.f32 %v148_v7, %v4080_v10  ;;  %v4120_v25 = vand.u32 4294901760, %v145_v13  ;;  %v141_v43 = vld [vmem:[%s4060_s24 + $0x20] sm:$0xff]  ;;  %v140_v48 = vld [vmem:[%s4060_s24 + $0x18] sm:$0xff]  ;;  %v139_v56 = vld [vmem:[%s4060_s24 + $0x10] sm:$0xff]  ;;  %s3653_s10 = scalar_lea.sflag [#allocation4], %s4054_s21  ;;  %s3900_s2 = sshra.s32 %s3668_s30, 4  ;;  %s3901_s2 = int_to_ptr.hbm [resolvable:$true] %s3900_s2 }
  0x31   : > { %v4106_v20 = vsub.f32 %v147_v8, %v4082_v11  ;;  %156 = vmatpush.msra.mxu0 %v4071_v4  ;;  %477 = vmatpush.msra.mxu2 %v4088_v14  ;;  %v4112_v22 = vand.u32 4294901760, %v4088_v14  ;;  %v4115_v23 = vand.u32 4294901760, %v4091_v15  ;;  %v4131_v29 = vsub.f32 %v146_v12, %v4097_v17  ;;  %v137_v49 = vld [vmem:[%s4060_s24] sm:$0xff]  ;;  %v138_v62 = vld [vmem:[%s4060_s24 + $0x8] sm:$0xff]  ;;  %s3902_s3 = scalar_lea.hbm %s3901_s2, 128  ;;  %s3906_s11 = scalar_lea.hbm %s6087_s1, 384 }
  0x32   : > { %v4118_v24 = vand.u32 4294901760, %v4095_v16  ;;  %607 = vmatpush.msra.mxu3 %v4071_v4  ;;  %v4125_v27 = vand.u32 4294901760, %v4100_v18  ;;  %v4128_v28 = vand.u32 4294901760, %v4103_v19  ;;  %v4141_v33 = vand.u32 4294901760, %v144_v21  ;;  %p3903_p6 = scmp.ne.s32.totalorder %s3901_s2, %s3902_s3  ;;  %p3907_p0 = scmp.lt.s32.totalorder %s3901_s2, %s6087_s1 }
  0x33   : > { %6170 = vst [vmem:[#allocation8_spill] sm:$0xff] %v4131_v29  ;;  %158 = vmatpush.msra.mxu0 %v4073_v5  ;;  %480 = vmatpush.msra.mxu2 %v4091_v15  ;;  %v308_v30 = vsub.f32 %v4088_v14, %v4112_v22  ;;  %v300_v31 = vsub.f32 %v4091_v15, %v4115_v23  ;;  %v4144_v34 = vand.u32 4294901760, %v143_v26  ;;  %v4147_v35 = vand.u32 4294901760, %v4106_v20  ;;  %p3908_p2 = scmp.lt.s32.totalorder %s3906_s11, %s3902_s3 }
  0x34   : > { %v292_v32 = vsub.f32 %v4095_v16, %v4118_v24  ;;  %609 = vmatpush.msra.mxu3 %v4073_v5  ;;  %v284_v39 = vsub.f32 %v4100_v18, %v4125_v27  ;;  %v4159_v40 = vsub.f32 %v145_v13, %v4120_v25  ;;  %v276_v41 = vsub.f32 %v4103_v19, %v4128_v28  ;;  %p3904_p12 = pnand %p3903_p6, %p4018_p10 }
  0x35   : > { %160 = vmatpush.msra.mxu0 %v4078_v9  ;;  %v4151_v37 = vand.u32 4294901760, %v308_v30  ;;  %483 = vmatpush.msra.mxu2 %v4095_v16  ;;  %v4154_v38 = vand.u32 4294901760, %v300_v31  ;;  %v4165_v42 = vand.u32 4294901760, %v4131_v29  ;;  %v4172_v45 = vand.u32 4294901760, %v142_v36  ;;  %p3909_p3 = por %p3908_p2, %p3907_p0 }
  0x36   : > { %6171 = vst [vmem:[#allocation9_spill] sm:$0xff] %v4159_v40  ;;  %611 = vmatpush.msra.mxu3 %v4078_v9  ;;  %v4170_v44 = vand.u32 4294901760, %v292_v32  ;;  %v4175_v46 = vsub.f32 %v144_v21, %v4141_v33  ;;  %v268_v47 = vsub.f32 %v4106_v20, %v4147_v35  ;;  %v4185_v50 = vand.u32 4294901760, %v284_v39  ;;  %p3905_p13 = pneg %p3904_p12 }
  0x37   : > { %162 = vmatpush.msra.mxu0 %v4080_v10  ;;  %319 = vmatpush.msra.mxu1 %v4151_v37  ;;  %v4187_v51 = vand.u32 4294901760, %v141_v43  ;;  %v4190_v52 = vand.u32 4294901760, %v4159_v40  ;;  %v4193_v53 = vsub.f32 %v143_v26, %v4144_v34  ;;  %v4196_v54 = vand.u32 4294901760, %v276_v41 }
  0x38   : > { %6172 = vst [vmem:[#allocation10_spill] sm:$0xff] %v4175_v46  ;;  %486 = vmatpush.msra.mxu2 %v4100_v18  ;;  %613 = vmatpush.msra.mxu3 %v4080_v10  ;;  %v260_v55 = vsub.f32 %v4131_v29, %v4165_v42  ;;  %v4204_v57 = vand.u32 4294901760, %v140_v48  ;;  %v4207_v58 = vand.u32 4294901760, %v4175_v46  ;;  %v4210_v59 = vsub.f32 %v142_v36, %v4172_v45  ;;  %p3910_p4 = pnand %p3909_p3, %p3905_p13 }
  0x39   : > { %164 = vmatpush.msra.mxu0 %v4082_v11  ;;  %325 = vmatpush.msra.mxu1 %v4154_v38  ;;  %v4212_v60 = vand.u32 4294901760, %v137_v49  ;;  %v4215_v61 = vand.u32 4294901760, %v268_v47  ;;  %v252_v63 = vsub.f32 %v4159_v40, %v4190_v52  ;;  %v4223_v0 = vand.u32 4294901760, %v139_v56 }
  0x3a   : > { %489 = vmatpush.msra.mxu2 %v4103_v19  ;;  %615 = vmatpush.msra.mxu3 %v4082_v11  ;;  %v4226_v1 = vand.u32 4294901760, %v4193_v53  ;;  %v4229_v2 = vsub.f32 %v141_v43, %v4187_v51  ;;  %v4232_v6 = vand.u32 4294901760, %v260_v55  ;;  %v244_v8 = vsub.f32 %v4175_v46, %v4207_v58 }
  0x3b   : > { %166 = vmatpush.msra.mxu0 %v4097_v17  ;;  %331 = vmatpush.msra.mxu1 %v4170_v44  ;;  %v4236_v7 = vsub.f32 %v137_v49, %v4212_v60  ;;  %v4242_v12 = vand.u32 4294901760, %v138_v62  ;;  %v4245_v13 = vand.u32 4294901760, %v4210_v59  ;;  %v4248_v21 = vsub.f32 %v140_v48, %v4204_v57 }
  0x3c   : > { %492 = vmatpush.msra.mxu2 %v4106_v20  ;;  %617 = vmatpush.msra.mxu3 %v4097_v17  ;;  %v4254_v26 = vand.u32 4294901760, %v252_v63  ;;  %v236_v30 = vsub.f32 %v4193_v53, %v4226_v1  ;;  %v4259_v31 = vand.u32 4294901760, %v4229_v2  ;;  %v4262_v32 = vsub.f32 %v139_v56, %v4223_v0 }
  0x3d   : > { %168 = vmatpush.msra.mxu0 %v4120_v25  ;;  %337 = vmatpush.msra.mxu1 %v4185_v50  ;;  %v4267_v36 = vand.u32 4294901760, %v4236_v7  ;;  %v4271_v39 = vand.u32 4294901760, %v244_v8  ;;  %v228_v41 = vsub.f32 %v4210_v59, %v4245_v13  ;;  %v4276_v43 = vand.u32 4294901760, %v4248_v21 }
  0x3e   : > { %495 = vmatpush.msra.mxu2 %v4131_v29  ;;  %619 = vmatpush.msra.mxu3 %v4120_v25  ;;  %v4279_v47 = vsub.f32 %v138_v62, %v4242_v12  ;;  %v4285_v48 = vand.u32 4294901760, %v236_v30  ;;  %v220_v49 = vsub.f32 %v4229_v2, %v4259_v31  ;;  %v4290_v55 = vand.u32 4294901760, %v4262_v32 }
  0x3f   : > { %170 = vmatpush.msra.mxu0 %v4141_v33  ;;  %343 = vmatpush.msra.mxu1 %v4196_v54  ;;  %v188_v56 = vsub.f32 %v4236_v7, %v4267_v36  ;;  %v4298_v62 = vand.u32 4294901760, %v228_v41  ;;  %v212_v63 = vsub.f32 %v4248_v21, %v4276_v43 }
  0x40   : > { %498 = vmatpush.msra.mxu2 %v4159_v40  ;;  %621 = vmatpush.msra.mxu3 %v4141_v33  ;;  %v4303_v8 = vand.u32 4294901760, %v4279_v47  ;;  %v4309_v30 = vand.u32 4294901760, %v220_v49  ;;  %v204_v41 = vsub.f32 %v4262_v32, %v4290_v55 }
  0x41   : > { %172 = vmatpush.msra.mxu0 %v4144_v34  ;;  %349 = vmatpush.msra.mxu1 %v4215_v61  ;;  %v4319_v40 = vand.u32 4294901760, %v212_v63 }
  0x42   : > { %501 = vmatpush.msra.mxu2 %v4175_v46  ;;  %623 = vmatpush.msra.mxu3 %v4144_v34  ;;  %v4314_v46 = vand.u32 4294901760, %v188_v56  ;;  %v196_v29 = vsub.f32 %v4279_v47, %v4303_v8  ;;  %v4327_v49 = vand.u32 4294901760, %v204_v41 }
  0x43   : > { %174 = vmatpush.msra.mxu0 %v4172_v45  ;;  %355 = vmatpush.msra.mxu1 %v4232_v6 }
  0x44   : > { %504 = vmatpush.msra.mxu2 %v4193_v53  ;;  %625 = vmatpush.msra.mxu3 %v4172_v45  ;;  %v4332_v56 = vand.u32 4294901760, %v196_v29  ;;  %v6173_v29 = vld [vmem:[#allocation8_spill] sm:$0xff] }
  0x45   : > { %176 = vmatpush.msra.mxu0 %v4187_v51  ;;  %361 = vmatpush.msra.mxu1 %v4254_v26 }
  0x46   : > { %507 = vmatpush.msra.mxu2 %v4210_v59  ;;  %627 = vmatpush.msra.mxu3 %v4187_v51 }
  0x47   : > { %178 = vmatpush.msra.mxu0 %v4204_v57  ;;  %367 = vmatpush.msra.mxu1 %v4271_v39 }
  0x48   : > { %510 = vmatpush.msra.mxu2 %v4229_v2  ;;  %629 = vmatpush.msra.mxu3 %v4204_v57 }
  0x49   : > { %180 = vmatpush.msra.mxu0 %v4223_v0  ;;  %373 = vmatpush.msra.mxu1 %v4285_v48 }
  0x4a   : > { %513 = vmatpush.msra.mxu2 %v4248_v21  ;;  %631 = vmatpush.msra.mxu3 %v4223_v0 }
  0x4b   : > { %182 = vmatpush.msra.mxu0 %v4242_v12  ;;  %379 = vmatpush.msra.mxu1 %v4298_v62 }
  0x4c   : > { %516 = vmatpush.msra.mxu2 %v4262_v32  ;;  %633 = vmatpush.msra.mxu3 %v4242_v12 }
  0x4d   : > { %184 = vmatpush.msra.mxu0 %v4212_v60  ;;  %385 = vmatpush.msra.mxu1 %v4309_v30 }
  0x4e   : > { %190 = vmatmul.f32.vlgmr.msra.gmra.mxu0 %v4314_v46  ;;  %519 = vmatpush.msra.mxu2 %v4279_v47 }
  0x4f   : > { %391 = vmatpush.msra.mxu1 %v4319_v40  ;;  %635 = vmatpush.msra.mxu3 %v4212_v60 }
  0x50   : > { %522 = vmatpush.msra.mxu2 %v4236_v7  ;;  %639 = vmatmul.f32.vlgmr.msra.gmra.mxu3 %v4267_v36 }
  0x51   : > { %397 = vmatpush.msra.mxu1 %v4327_v49  ;;  %525 = vmatmul.f32.vlgmr.msra.gmra.mxu2 %v4236_v7 }
  0x52   : > { %736 = vmatpush.msrb.mxu0 %v4112_v22  ;;  %1125 = vmatpush.msrb.mxu3 %v4151_v37 }
  0x53   : > { %403 = vmatpush.msra.mxu1 %v4332_v56  ;;  %960 = vmatpush.msrb.mxu2 %v4069_v3 }
  0x54   : > { %740 = vmatpush.msrb.mxu0 %v4115_v23  ;;  %1131 = vmatpush.msrb.mxu3 %v4154_v38 }
  0x55   : > { %409 = vmatpush.msra.mxu1 %v4314_v46  ;;  %962 = vmatpush.msrb.mxu2 %v4071_v4 }
  0x56   : > { %198 = vmatmul.f32.gmra.mxu0 %v4332_v56  ;;  %411 = vmatmul.f32.vlgmr.msra.gmra.mxu1 %v4212_v60 }
  0x57   : > { %744 = vmatpush.msrb.mxu0 %v4118_v24  ;;  %863 = vmatpush.msrb.mxu1 %v4069_v3 }
  0x58   : > { %645 = vmatmul.f32.gmra.mxu3 %v4303_v8  ;;  %964 = vmatpush.msrb.mxu2 %v4073_v5 }
  0x59   : > { %530 = vmatmul.f32.gmra.mxu2 %v4279_v47  ;;  %748 = vmatpush.msrb.mxu0 %v4125_v27 }
  0x5a   : > { %865 = vmatpush.msrb.mxu1 %v4071_v4  ;;  %1137 = vmatpush.msrb.mxu3 %v4170_v44 }
  0x5b   : > { %752 = vmatpush.msrb.mxu0 %v4128_v28  ;;  %966 = vmatpush.msrb.mxu2 %v4078_v9 }
  0x5c   : > { %867 = vmatpush.msrb.mxu1 %v4073_v5  ;;  %1143 = vmatpush.msrb.mxu3 %v4185_v50 }
  0x5d   : > { %756 = vmatpush.msrb.mxu0 %v4147_v35  ;;  %968 = vmatpush.msrb.mxu2 %v4080_v10 }
  0x5e   : > { %206 = vmatmul.f32.gmra.mxu0 %v4327_v49  ;;  %415 = vmatmul.f32.gmra.mxu1 %v4242_v12 }
  0x5f   : > { %760 = vmatpush.msrb.mxu0 %v4165_v42  ;;  %869 = vmatpush.msrb.mxu1 %v4078_v9 }
  0x60   : > { %651 = vmatmul.f32.gmra.mxu3 %v4290_v55  ;;  %970 = vmatpush.msrb.mxu2 %v4082_v11 }
  0x61   : > { %535 = vmatmul.f32.gmra.mxu2 %v4262_v32  ;;  %764 = vmatpush.msrb.mxu0 %v4190_v52 }
  0x62   : > { %871 = vmatpush.msrb.mxu1 %v4080_v10  ;;  %1149 = vmatpush.msrb.mxu3 %v4196_v54 }
  0x63   : > { %768 = vmatpush.msrb.mxu0 %v4207_v58  ;;  %972 = vmatpush.msrb.mxu2 %v4097_v17 }
  0x64   : > { %873 = vmatpush.msrb.mxu1 %v4082_v11  ;;  %1155 = vmatpush.msrb.mxu3 %v4215_v61 }
  0x65   : > { %772 = vmatpush.msrb.mxu0 %v4226_v1  ;;  %974 = vmatpush.msrb.mxu2 %v4120_v25 }
  0x66   : > { %214 = vmatmul.f32.gmra.mxu0 %v4319_v40  ;;  %419 = vmatmul.f32.gmra.mxu1 %v4223_v0 }
  0x67   : > { %776 = vmatpush.msrb.mxu0 %v4245_v13  ;;  %875 = vmatpush.msrb.mxu1 %v4097_v17 }
  0x68   : > { %657 = vmatmul.f32.gmra.mxu3 %v4276_v43  ;;  %976 = vmatpush.msrb.mxu2 %v4141_v33 }
  0x69   : > { %540 = vmatmul.f32.gmra.mxu2 %v4248_v21  ;;  %780 = vmatpush.msrb.mxu0 %v4259_v31 }
  0x6a   : > { %877 = vmatpush.msrb.mxu1 %v4120_v25  ;;  %1161 = vmatpush.msrb.mxu3 %v4232_v6 }
  0x6b   : > { %784 = vmatpush.msrb.mxu0 %v4276_v43  ;;  %978 = vmatpush.msrb.mxu2 %v4144_v34 }
  0x6c   : > { %879 = vmatpush.msrb.mxu1 %v4141_v33  ;;  %1167 = vmatpush.msrb.mxu3 %v4254_v26 }
  0x6d   : > { %788 = vmatpush.msrb.mxu0 %v4290_v55  ;;  %980 = vmatpush.msrb.mxu2 %v4172_v45 }
  0x6e   : > { %222 = vmatmul.f32.gmra.mxu0 %v4309_v30  ;;  %423 = vmatmul.f32.gmra.mxu1 %v4204_v57 }
  0x6f   : > { %881 = vmatpush.msrb.mxu1 %v4144_v34  ;;  %792 = vmatpush.msrb.mxu0 %v4303_v8 }
  0x70   : > { %663 = vmatmul.f32.gmra.mxu3 %v4259_v31  ;;  %982 = vmatpush.msrb.mxu2 %v4187_v51 }
  0x71   : > { %545 = vmatmul.f32.gmra.mxu2 %v4229_v2  ;;  %883 = vmatpush.msrb.mxu1 %v4172_v45 }
  0x72   : > { %796 = vmatpush.msrb.mxu0 %v4267_v36  ;;  %1173 = vmatpush.msrb.mxu3 %v4271_v39 }
  0x73   : > { %885 = vmatpush.msrb.mxu1 %v4187_v51  ;;  %984 = vmatpush.msrb.mxu2 %v4204_v57 }
  0x74   : > { %1283 = vmatpush.msra.mxu0 %v4088_v14  ;;  %1179 = vmatpush.msrb.mxu3 %v4285_v48 }
  0x75   : > { %887 = vmatpush.msrb.mxu1 %v4204_v57  ;;  %986 = vmatpush.msrb.mxu2 %v4223_v0 }
  0x76   : > { %1286 = vmatpush.msra.mxu0 %v4091_v15  ;;  %427 = vmatmul.f32.gmra.mxu1 %v4187_v51 }
  0x77   : > { %230 = vmatmul.f32.gmra.mxu0 %v4298_v62  ;;  %889 = vmatpush.msrb.mxu1 %v4223_v0 }
  0x78   : > { %1289 = vmatpush.msra.mxu0 %v4095_v16  ;;  %669 = vmatmul.f32.gmra.mxu3 %v4245_v13 }
  0x79   : > { %550 = vmatmul.f32.gmra.mxu2 %v4210_v59  ;;  %891 = vmatpush.msrb.mxu1 %v4242_v12 }
  0x7a   : > { %1292 = vmatpush.msra.mxu0 %v4100_v18  ;;  %1185 = vmatpush.msrb.mxu3 %v4298_v62  ;;  %v6175_v62 = vld [vmem:[#allocation10_spill] sm:$0xff] }
  0x7b   : > { %893 = vmatpush.msrb.mxu1 %v4212_v60  ;;  %988 = vmatpush.msrb.mxu2 %v4242_v12 }
  0x7c   : > { %1295 = vmatpush.msra.mxu0 %v4103_v19  ;;  %1191 = vmatpush.msrb.mxu3 %v4309_v30 }
  0x7d   : > { %1411 = vmatpush.msra.mxu1 %v4069_v3  ;;  %990 = vmatpush.msrb.mxu2 %v4212_v60 }
  0x7e   : > { %431 = vmatmul.f32.gmra.mxu1 %v4172_v45  ;;  %1298 = vmatpush.msra.mxu0 %v4106_v20 }
  0x7f   : > { %238 = vmatmul.f32.gmra.mxu0 %v4285_v48  ;;  %1413 = vmatpush.msra.mxu1 %v4071_v4  ;;  %v6174_v48 = vld [vmem:[#allocation9_spill] sm:$0xff] }
  0x80   : > { %675 = vmatmul.f32.gmra.mxu3 %v4226_v1  ;;  %1542 = vmatpush.msra.mxu2 %v4112_v22 }
  0x81   : > { %555 = vmatmul.f32.gmra.mxu2 %v4193_v53  ;;  %1415 = vmatpush.msra.mxu1 %v4073_v5 }
  0x82   : > { %1301 = vmatpush.msra.mxu0 %v6173_v29  ;;  %1197 = vmatpush.msrb.mxu3 %v4319_v40 }
  0x83   : > { %1417 = vmatpush.msra.mxu1 %v4078_v9  ;;  %1546 = vmatpush.msra.mxu2 %v4115_v23 }
  0x84   : > { %1304 = vmatpush.msra.mxu0 %v6174_v48  ;;  %1203 = vmatpush.msrb.mxu3 %v4327_v49 }
  0x85   : > { %1419 = vmatpush.msra.mxu1 %v4080_v10  ;;  %1550 = vmatpush.msra.mxu2 %v4118_v24 }
  0x86   : > { %435 = vmatmul.f32.gmra.mxu1 %v4144_v34  ;;  %1307 = vmatpush.msra.mxu0 %v6175_v62 }
  0x87   : > { %246 = vmatmul.f32.gmra.mxu0 %v4271_v39  ;;  %1421 = vmatpush.msra.mxu1 %v4082_v11 }
  0x88   : > { %681 = vmatmul.f32.gmra.mxu3 %v4207_v58  ;;  %1554 = vmatpush.msra.mxu2 %v4125_v27 }
  0x89   : > { %560 = vmatmul.f32.gmra.mxu2 %v6175_v62  ;;  %1423 = vmatpush.msra.mxu1 %v4097_v17 }
  0x8a   : > { %1310 = vmatpush.msra.mxu0 %v4193_v53  ;;  %1209 = vmatpush.msrb.mxu3 %v4332_v56 }
  0x8b   : > { %1425 = vmatpush.msra.mxu1 %v4120_v25  ;;  %1558 = vmatpush.msra.mxu2 %v4128_v28 }
  0x8c   : > { %1313 = vmatpush.msra.mxu0 %v4210_v59  ;;  %1215 = vmatpush.msrb.mxu3 %v4314_v46 }
  0x8d   : > { %1427 = vmatpush.msra.mxu1 %v4141_v33  ;;  %1562 = vmatpush.msra.mxu2 %v4147_v35 }
  0x8e   : > { %1669 = vmatpush.msra.mxu3 %v4069_v3  ;;  %439 = vmatmul.f32.gmra.mxu1 %v4141_v33 }
  0x8f   : > { %254 = vmatmul.f32.gmra.mxu0 %v4254_v26  ;;  %1429 = vmatpush.msra.mxu1 %v4144_v34 }
  0x90   : > { %1316 = vmatpush.msra.mxu0 %v4229_v2  ;;  %687 = vmatmul.f32.gmra.mxu3 %v4190_v52 }
  0x91   : > { %565 = vmatmul.f32.gmra.mxu2 %v6174_v48  ;;  %1431 = vmatpush.msra.mxu1 %v4172_v45 }
  0x92   : > { %1319 = vmatpush.msra.mxu0 %v4248_v21  ;;  %1671 = vmatpush.msra.mxu3 %v4071_v4 }
  0x93   : > { %1433 = vmatpush.msra.mxu1 %v4187_v51  ;;  %1566 = vmatpush.msra.mxu2 %v4165_v42 }
  0x94   : > { %1322 = vmatpush.msra.mxu0 %v4262_v32  ;;  %1673 = vmatpush.msra.mxu3 %v4073_v5 }
  0x95   : > { %1435 = vmatpush.msra.mxu1 %v4204_v57  ;;  %1570 = vmatpush.msra.mxu2 %v4190_v52 }
  0x96   : > { %443 = vmatmul.f32.gmra.mxu1 %v4120_v25  ;;  %1325 = vmatpush.msra.mxu0 %v4279_v47 }
  0x97   : > { %262 = vmatmul.f32.gmra.mxu0 %v4232_v6  ;;  %1437 = vmatpush.msra.mxu1 %v4223_v0 }
  0x98   : > { %693 = vmatmul.f32.gmra.mxu3 %v4165_v42  ;;  %1574 = vmatpush.msra.mxu2 %v4207_v58 }
  0x99   : > { %570 = vmatmul.f32.gmra.mxu2 %v6173_v29  ;;  %1328 = vmatpush.msra.mxu0 %v4236_v7 }
  0x9a   : > { %1439 = vmatpush.msra.mxu1 %v4242_v12  ;;  %1675 = vmatpush.msra.mxu3 %v4078_v9 }
  0x9b   : > { %1578 = vmatpush.msra.mxu2 %v4226_v1 }
  0x9c   : > { %1441 = vmatpush.msra.mxu1 %v4212_v60  ;;  %1677 = vmatpush.msra.mxu3 %v4080_v10 }
  0x9d   : > { %1582 = vmatpush.msra.mxu2 %v4245_v13 }
  0x9e   : > { %447 = vmatmul.f32.gmra.mxu1 %v4097_v17  ;;  %1679 = vmatpush.msra.mxu3 %v4082_v11 }
  0x9f   : > { %270 = vmatmul.f32.gmra.mxu0 %v4215_v61  ;;  %1586 = vmatpush.msra.mxu2 %v4259_v31 }
  0xa0   : > { %699 = vmatmul.f32.gmra.mxu3 %v4147_v35 }
  0xa1   : > { %575 = vmatmul.f32.gmra.mxu2 %v4106_v20  ;;  %1681 = vmatpush.msra.mxu3 %v4097_v17 }
  0xa2   : > { %1590 = vmatpush.msra.mxu2 %v4276_v43 }
  0xa3   : > { %1683 = vmatpush.msra.mxu3 %v4120_v25 }
  0xa4   : > { %1594 = vmatpush.msra.mxu2 %v4290_v55 }
  0xa5   : > { %1685 = vmatpush.msra.mxu3 %v4141_v33 }
  0xa6   : > { %451 = vmatmul.f32.gmra.mxu1 %v4082_v11  ;;  %1598 = vmatpush.msra.mxu2 %v4303_v8 }
  0xa7   : > { %278 = vmatmul.f32.gmra.mxu0 %v4196_v54  ;;  %1687 = vmatpush.msra.mxu3 %v4144_v34 }
  0xa8   : > { %705 = vmatmul.f32.gmra.mxu3 %v4128_v28  ;;  %1602 = vmatpush.msra.mxu2 %v4267_v36 }
  0xa9   : > { %580 = vmatmul.f32.gmra.mxu2 %v4103_v19  ;;  %1689 = vmatpush.msra.mxu3 %v4172_v45 }
  0xab   : > { %1691 = vmatpush.msra.mxu3 %v4187_v51 }
  0xad   : > { %1693 = vmatpush.msra.mxu3 %v4204_v57 }
  0xae   : > { %455 = vmatmul.f32.gmra.mxu1 %v4080_v10 }
  0xaf   : > { %286 = vmatmul.f32.gmra.mxu0 %v4185_v50  ;;  %1695 = vmatpush.msra.mxu3 %v4223_v0 }
  0xb0   : > { %711 = vmatmul.f32.gmra.mxu3 %v4125_v27 }
  0xb1   : > { %585 = vmatmul.f32.gmra.mxu2 %v4100_v18  ;;  %1697 = vmatpush.msra.mxu3 %v4242_v12 }
  0xb3   : > { %1699 = vmatpush.msra.mxu3 %v4212_v60 }
  0xb6   : > { %459 = vmatmul.f32.gmra.mxu1 %v4078_v9 }
  0xb7   : > { %294 = vmatmul.f32.gmra.mxu0 %v4170_v44 }
  0xb8   : > { %717 = vmatmul.f32.gmra.mxu3 %v4118_v24 }
  0xb9   : > { %590 = vmatmul.f32.gmra.mxu2 %v4095_v16 }
  0xbe   : > { %463 = vmatmul.f32.gmra.mxu1 %v4073_v5 }
  0xbf   : > { %302 = vmatmul.f32.gmra.mxu0 %v4154_v38 }
  0xc0   : > { %723 = vmatmul.f32.gmra.mxu3 %v4115_v23 }
  0xc1   : > { %595 = vmatmul.f32.gmra.mxu2 %v4091_v15 }
  0xc6   : > { %467 = vmatmul.f32.gmra.mxu1 %v4071_v4 }
  0xc7   : > { %310 = vmatmul.f32.gmra.mxu0 %v4151_v37 }
  0xc8   : > { %729 = vmatmul.f32.gmra.mxu3 %v4112_v22 }
  0xc9   : > { %600 = vmatmul.f32.gmra.mxu2 %v4088_v14 }
  0xcb   : > { %v4529_v18 = vpop.f32.mrf.mxu0 }
  0xce   : > { %471 = vmatmul.f32.gmra.mxu1 %v4069_v3 }
  0xcf   : > { %798 = vmatmul.f32.vlgmr.msrb.gmra.mxu0 %v4212_v60 }
  0xd3   : > { %v4533_v16 = vpop.f32.mrf.mxu0  ;;  %v4535_v19 = vpop.f32.mrf.mxu1 }
  0xd4   : > { %v640_v54 = vpop.f32.mrf.mxu3 }
  0xd6   : > { %895 = vmatmul.f32.vlgmr.msrb.gmra.mxu1 %v4212_v60 }
  0xd7   : > { %802 = vmatmul.f32.gmra.mxu0 %v4242_v12 }
  0xdb   : > { %v4539_v15 = vpop.f32.mrf.mxu0  ;;  %v4541_v20 = vpop.f32.mrf.mxu1 }
  0xdc   : > { %v417_v21 = vadd.f32 %v4541_v20, %v4533_v16 }
  0xde   : > { %899 = vmatmul.f32.gmra.mxu1 %v4242_v12 }
  0xdf   : > { %806 = vmatmul.f32.gmra.mxu0 %v4223_v0 }
  0xe3   : > { %v4545_v14 = vpop.f32.mrf.mxu0  ;;  %v4547_v22 = vpop.f32.mrf.mxu1 }
  0xe4   : > { %v421_v63 = vadd.f32 %v4547_v22, %v4539_v15 }
  0xe6   : > { %903 = vmatmul.f32.gmra.mxu1 %v4223_v0 }
  0xe7   : > { %810 = vmatmul.f32.gmra.mxu0 %v4204_v57 }
  0xeb   : > { %v4551_v23 = vpop.f32.mrf.mxu0  ;;  %v4553_v24 = vpop.f32.mrf.mxu1 }
  0xec   : > { %v425_v15 = vadd.f32 %v4553_v24, %v4545_v14 }
  0xee   : > { %907 = vmatmul.f32.gmra.mxu1 %v4204_v57 }
  0xef   : > { %814 = vmatmul.f32.gmra.mxu0 %v4187_v51 }
  0xf3   : > { %v4559_v28 = vpop.f32.mrf.mxu1 }
  0xf4   : > { %v4557_v27 = vpop.f32.mrf.mxu0 }
  0xf6   : > { %911 = vmatmul.f32.gmra.mxu1 %v4187_v51 }
  0xf7   : > { %818 = vmatmul.f32.gmra.mxu0 %v4172_v45 }
  0xfb   : > { %v4565_v37 = vpop.f32.mrf.mxu1 }
  0xfc   : > { %v4563_v35 = vpop.f32.mrf.mxu0 }
  0xfe   : > { %915 = vmatmul.f32.gmra.mxu1 %v4172_v45 }
  0xff   : > { %822 = vmatmul.f32.gmra.mxu0 %v4144_v34 }
 0x103   : > { %v4571_v40 = vpop.f32.mrf.mxu1 }
 0x104   : > { %v4569_v38 = vpop.f32.mrf.mxu0 }
 0x106   : > { %919 = vmatmul.f32.gmra.mxu1 %v4144_v34 }
 0x107   : > { %826 = vmatmul.f32.gmra.mxu0 %v4141_v33 }
 0x10b   : > { %v4577_v44 = vpop.f32.mrf.mxu1 }
 0x10c   : > { %v4575_v42 = vpop.f32.mrf.mxu0 }
 0x10e   : > { %923 = vmatmul.f32.gmra.mxu1 %v4141_v33  ;;  %v526_v33 = vpop.f32.mrf.mxu2 }
 0x10f   : > { %830 = vmatmul.f32.gmra.mxu0 %v4120_v25 }
 0x113   : > { %v4583_v50 = vpop.f32.mrf.mxu1 }
 0x114   : > { %v4581_v46 = vpop.f32.mrf.mxu0 }
 0x116   : > { %927 = vmatmul.f32.gmra.mxu1 %v4120_v25  ;;  %v531_v58 = vpop.f32.mrf.mxu2 }
 0x117   : > { %834 = vmatmul.f32.gmra.mxu0 %v4097_v17 }
 0x11b   : > { %v4589_v51 = vpop.f32.mrf.mxu1 }
 0x11c   : > { %v4587_v45 = vpop.f32.mrf.mxu0 }
 0x11e   : > { %931 = vmatmul.f32.gmra.mxu1 %v4097_v17  ;;  %v536_v61 = vpop.f32.mrf.mxu2 }
 0x11f   : > { %838 = vmatmul.f32.gmra.mxu0 %v4082_v11  ;;  %v537_v56 = vadd.f32 %v536_v61, %v421_v63 }
 0x123   : > { %v4595_v52 = vpop.f32.mrf.mxu1 }
 0x124   : > { %v4593_v34 = vpop.f32.mrf.mxu0 }
 0x126   : > { %935 = vmatmul.f32.gmra.mxu1 %v4082_v11  ;;  %v646_v11 = vpop.f32.mrf.mxu3  ;;  %v541_v2 = vpop.f32.mrf.mxu2 }
 0x127   : > { %842 = vmatmul.f32.gmra.mxu0 %v4080_v10  ;;  %v542_v61 = vadd.f32 %v541_v2, %v425_v15 }
 0x12b   : > { %v4601_v25 = vpop.f32.mrf.mxu1 }
 0x12c   : > { %v4599_v53 = vpop.f32.mrf.mxu0 }
 0x12e   : > { %939 = vmatmul.f32.gmra.mxu1 %v4080_v10  ;;  %v652_v10 = vpop.f32.mrf.mxu3  ;;  %v546_v26 = vpop.f32.mrf.mxu2 }
 0x12f   : > { %846 = vmatmul.f32.gmra.mxu0 %v4078_v9 }
 0x133   : > { %v4607_v17 = vpop.f32.mrf.mxu1 }
 0x134   : > { %v4605_v57 = vpop.f32.mrf.mxu0 }
 0x136   : > { %943 = vmatmul.f32.gmra.mxu1 %v4078_v9  ;;  %v413_v9 = vadd.f32 %v4535_v19, %v4529_v18  ;;  %v658_v13 = vpop.f32.mrf.mxu3  ;;  %v551_v29 = vpop.f32.mrf.mxu2  ;;  %v653_v19 = vadd.f32 %v652_v10, %v537_v56 }
 0x137   : > { %850 = vmatmul.f32.gmra.mxu0 %v4073_v5  ;;  %v659_v24 = vadd.f32 %v658_v13, %v542_v61 }
 0x138   : > { %v527_v12 = vadd.f32 %v526_v33, %v413_v9 }
 0x13b   : > { %v4613_v60 = vpop.f32.mrf.mxu1 }
 0x13c   : > { %v4611_v59 = vpop.f32.mrf.mxu0 }
 0x13e   : > { %947 = vmatmul.f32.gmra.mxu1 %v4073_v5  ;;  %v641_v5 = vadd.f32 %v640_v54, %v527_v12  ;;  %v664_v43 = vpop.f32.mrf.mxu3 }
 0x13f   : > { %854 = vmatmul.f32.gmra.mxu0 %v4071_v4 }
 0x143   : > { %v4619_v1 = vpop.f32.mrf.mxu1 }
 0x144   : > { %v4617_v0 = vpop.f32.mrf.mxu0 }
 0x146   : > { %951 = vmatmul.f32.gmra.mxu1 %v4071_v4  ;;  %v532_v4 = vadd.f32 %v531_v58, %v417_v21  ;;  %v670_v20 = vpop.f32.mrf.mxu3 }
 0x147   : > { %858 = vmatmul.f32.gmra.mxu0 %v4069_v3 }
 0x148   : > { %v647_v55 = vadd.f32 %v646_v11, %v532_v4 }
 0x14b   : > { %v4625_v6 = vpop.f32.mrf.mxu1 }
 0x14c   : > { %v799_v7 = vpop.f32.mrf.mxu0 }
 0x14d   : > { %v800_v31 = vadd.f32 %v799_v7, %v641_v5  ;;  %v556_v7 = vpop.f32.mrf.mxu2  ;;  %v429_v5 = vadd.f32 %v4559_v28, %v4551_v23 }
 0x14e   : > { %955 = vmatmul.f32.gmra.mxu1 %v4069_v3  ;;  %v676_v2 = vpop.f32.mrf.mxu3 }
 0x153   : > { %v896_v36 = vpop.f32.mrf.mxu1 }
 0x154   : > { %v803_v32 = vpop.f32.mrf.mxu0  ;;  %v4630_v39 = vadd.f32 %v896_v36, %v800_v31 }
 0x155   : > { %v804_v8 = vadd.f32 %v803_v32, %v647_v55  ;;  %v547_v55 = vadd.f32 %v546_v26, %v429_v5 }
 0x156   : > { %6176 = vst [vmem:[#allocation8_spill] sm:$0xff] %v4630_v39  ;;  %v4633_v47 = vand.u32 4294901760, %v4630_v39 }
 0x157   : > { %v665_v28 = vadd.f32 %v664_v43, %v547_v55 }
 0x158   : > { %1217 = vmatmul.f32.vlgmr.msrb.gmra.mxu3 %v4633_v47  ;;  %v992_v3 = vsub.f32 %v4630_v39, %v4633_v47 }
 0x15a   : > { %1331 = vmatmul.f32.vlgmr.msra.gmra.mxu0 %v992_v3  ;;  %v993_v30 = vand.u32 4294901760, %v992_v3 }
 0x15b   : > { %v900_v49 = vpop.f32.mrf.mxu1 }
 0x15c   : > { %v807_v41 = vpop.f32.mrf.mxu0  ;;  %v4640_v48 = vadd.f32 %v900_v49, %v804_v8  ;;  %1445 = vmatmul.f32.vlgmr.msra.gmra.mxu1 %v993_v30  ;;  %v994_v62 = vsub.f32 %v992_v3, %v993_v30  ;;  %v433_v8 = vadd.f32 %v4565_v37, %v4557_v27  ;;  %v561_v30 = vpop.f32.mrf.mxu2 }
 0x15d   : > { %v808_v33 = vadd.f32 %v807_v41, %v653_v19  ;;  %v682_v19 = vpop.f32.mrf.mxu3 }
 0x15e   : > { %6177 = vst [vmem:[#allocation9_spill] sm:$0xff] %v4640_v48  ;;  %v995_v18 = vand.u32 4294901760, %v994_v62  ;;  %v4643_v16 = vand.u32 4294901760, %v4640_v48 }
 0x160   : > { %996 = vmatmul.f32.vlgmr.msrb.gmra.mxu2 %v995_v18  ;;  %1221 = vmatmul.f32.gmra.mxu3 %v4643_v16  ;;  %v1000_v22 = vsub.f32 %v4640_v48, %v4643_v16  ;;  %v552_v18 = vadd.f32 %v551_v29, %v433_v8 }
 0x162   : > { %1336 = vmatmul.f32.gmra.mxu0 %v1000_v22  ;;  %v1001_v54 = vand.u32 4294901760, %v1000_v22  ;;  %v671_v37 = vadd.f32 %v670_v20, %v552_v18 }
 0x163   : > { %v904_v11 = vpop.f32.mrf.mxu1 }
 0x164   : > { %v811_v58 = vpop.f32.mrf.mxu0  ;;  %v4650_v9 = vadd.f32 %v904_v11, %v808_v33  ;;  %1451 = vmatmul.f32.gmra.mxu1 %v1001_v54  ;;  %v1002_v10 = vsub.f32 %v1000_v22, %v1001_v54  ;;  %v437_v33 = vadd.f32 %v4571_v40, %v4563_v35  ;;  %v566_v29 = vpop.f32.mrf.mxu2 }
 0x165   : > { %v812_v31 = vadd.f32 %v811_v58, %v659_v24  ;;  %v688_v5 = vpop.f32.mrf.mxu3 }
 0x166   : > { %6178 = vst [vmem:[#allocation10_spill] sm:$0xff] %v4650_v9  ;;  %v1003_v12 = vand.u32 4294901760, %v1002_v10  ;;  %v4653_v14 = vand.u32 4294901760, %v4650_v9 }
 0x168   : > { %1004 = vmatmul.f32.gmra.mxu2 %v1003_v12  ;;  %1225 = vmatmul.f32.gmra.mxu3 %v4653_v14  ;;  %v1008_v21 = vsub.f32 %v4650_v9, %v4653_v14  ;;  %v557_v12 = vadd.f32 %v556_v7, %v437_v33 }
 0x16a   : > { %1341 = vmatmul.f32.gmra.mxu0 %v1008_v21  ;;  %v1009_v32 = vand.u32 4294901760, %v1008_v21  ;;  %v677_v40 = vadd.f32 %v676_v2, %v557_v12 }
 0x16b   : > { %v908_v4 = vpop.f32.mrf.mxu1 }
 0x16c   : > { %v815_v36 = vpop.f32.mrf.mxu0  ;;  %v4660_v63 = vadd.f32 %v908_v4, %v812_v31  ;;  %1457 = vmatmul.f32.gmra.mxu1 %v1009_v32  ;;  %v1010_v13 = vsub.f32 %v1008_v21, %v1009_v32  ;;  %v441_v31 = vadd.f32 %v4577_v44, %v4569_v38 }
 0x16d   : > { %v816_v26 = vadd.f32 %v815_v36, %v665_v28 }
 0x16e   : > { %6179 = vst [vmem:[#allocation11_spill] sm:$0xff] %v4660_v63  ;;  %v1011_v3 = vand.u32 4294901760, %v1010_v13  ;;  %v4663_v23 = vand.u32 4294901760, %v4660_v63  ;;  %v562_v13 = vadd.f32 %v561_v30, %v441_v31  ;;  %v453_v31 = vadd.f32 %v4595_v52, %v4587_v45 }
 0x170   : > { %1012 = vmatmul.f32.gmra.mxu2 %v1011_v3  ;;  %1229 = vmatmul.f32.gmra.mxu3 %v4663_v23  ;;  %v1016_v41 = vsub.f32 %v4660_v63, %v4663_v23  ;;  %v571_v3 = vpop.f32.mrf.mxu2  ;;  %v683_v44 = vadd.f32 %v682_v19, %v562_v13 }
 0x172   : > { %1346 = vmatmul.f32.gmra.mxu0 %v1016_v41  ;;  %v1017_v49 = vand.u32 4294901760, %v1016_v41 }
 0x173   : > { %v912_v62 = vpop.f32.mrf.mxu1 }
 0x174   : > { %v819_v56 = vpop.f32.mrf.mxu0  ;;  %v4670_v15 = vadd.f32 %v912_v62, %v816_v26  ;;  %1463 = vmatmul.f32.gmra.mxu1 %v1017_v49  ;;  %v1018_v43 = vsub.f32 %v1016_v41, %v1017_v49  ;;  %v445_v41 = vadd.f32 %v4583_v50, %v4575_v42  ;;  %v694_v26 = vpop.f32.mrf.mxu3 }
 0x175   : > { %v820_v58 = vadd.f32 %v819_v56, %v671_v37 }
 0x176   : > { %6180 = vst [vmem:[#allocation12_spill] sm:$0xff] %v4670_v15  ;;  %v1019_v22 = vand.u32 4294901760, %v1018_v43  ;;  %v4673_v27 = vand.u32 4294901760, %v4670_v15  ;;  %v567_v43 = vadd.f32 %v566_v29, %v445_v41 }
 0x178   : > { %1020 = vmatmul.f32.gmra.mxu2 %v1019_v22  ;;  %1233 = vmatmul.f32.gmra.mxu3 %v4673_v27  ;;  %v1024_v54 = vsub.f32 %v4670_v15, %v4673_v27  ;;  %v576_v37 = vpop.f32.mrf.mxu2  ;;  %v689_v50 = vadd.f32 %v688_v5, %v567_v43 }
 0x17a   : > { %1351 = vmatmul.f32.gmra.mxu0 %v1024_v54  ;;  %v1025_v11 = vand.u32 4294901760, %v1024_v54 }
 0x17b   : > { %v916_v10 = vpop.f32.mrf.mxu1 }
 0x17c   : > { %v823_v61 = vpop.f32.mrf.mxu0  ;;  %v4680_v24 = vadd.f32 %v916_v10, %v820_v58  ;;  %1469 = vmatmul.f32.gmra.mxu1 %v1025_v11  ;;  %v1026_v20 = vsub.f32 %v1024_v54, %v1025_v11  ;;  %v449_v54 = vadd.f32 %v4589_v51, %v4581_v46  ;;  %v700_v29 = vpop.f32.mrf.mxu3 }
 0x17d   : > { %v824_v7 = vadd.f32 %v823_v61, %v677_v40 }
 0x17e   : > { %6181 = vst [vmem:[#allocation13_spill] sm:$0xff] %v4680_v24  ;;  %v1027_v21 = vand.u32 4294901760, %v1026_v20  ;;  %v4683_v35 = vand.u32 4294901760, %v4680_v24  ;;  %v572_v20 = vadd.f32 %v571_v3, %v449_v54  ;;  %v577_v3 = vadd.f32 %v576_v37, %v453_v31 }
 0x180   : > { %1028 = vmatmul.f32.gmra.mxu2 %v1027_v21  ;;  %1237 = vmatmul.f32.gmra.mxu3 %v4683_v35  ;;  %v1032_v32 = vsub.f32 %v4680_v24, %v4683_v35  ;;  %v695_v51 = vadd.f32 %v694_v26, %v572_v20  ;;  %v701_v52 = vadd.f32 %v700_v29, %v577_v3 }
 0x181   : > { %v457_v26 = vadd.f32 %v4601_v25, %v4593_v34 }
 0x182   : > { %1356 = vmatmul.f32.gmra.mxu0 %v1032_v32  ;;  %v1033_v36 = vand.u32 4294901760, %v1032_v32 }
 0x183   : > { %v920_v55 = vpop.f32.mrf.mxu1 }
 0x184   : > { %v827_v4 = vpop.f32.mrf.mxu0  ;;  %v4690_v28 = vadd.f32 %v920_v55, %v824_v7  ;;  %1475 = vmatmul.f32.gmra.mxu1 %v1033_v36  ;;  %v1034_v2 = vsub.f32 %v1032_v32, %v1033_v36  ;;  %v581_v32 = vpop.f32.mrf.mxu2 }
 0x185   : > { %v828_v49 = vadd.f32 %v827_v4, %v683_v44  ;;  %v706_v44 = vpop.f32.mrf.mxu3 }
 0x186   : > { %6182 = vst [vmem:[#allocation14_spill] sm:$0xff] %v4690_v28  ;;  %v1035_v8 = vand.u32 4294901760, %v1034_v2  ;;  %v4693_v38 = vand.u32 4294901760, %v4690_v28 }
 0x188   : > { %1036 = vmatmul.f32.gmra.mxu2 %v1035_v8  ;;  %1241 = vmatmul.f32.gmra.mxu3 %v4693_v38  ;;  %v1040_v30 = vsub.f32 %v4690_v28, %v4693_v38 }
 0x18a   : > { %1361 = vmatmul.f32.gmra.mxu0 %v1040_v30  ;;  %v1041_v56 = vand.u32 4294901760, %v1040_v30 }
 0x18b   : > { %v924_v18 = vpop.f32.mrf.mxu1 }
 0x18c   : > { %v831_v62 = vpop.f32.mrf.mxu0  ;;  %v4700_v22 = vadd.f32 %v924_v18, %v828_v49  ;;  %1481 = vmatmul.f32.gmra.mxu1 %v1041_v56  ;;  %v1042_v19 = vsub.f32 %v1040_v30, %v1041_v56  ;;  %v586_v49 = vpop.f32.mrf.mxu2 }
 0x18d   : > { %v832_v11 = vadd.f32 %v831_v62, %v689_v50  ;;  %v712_v25 = vpop.f32.mrf.mxu3 }
 0x18e   : > { %6183 = vst [vmem:[#allocation15_spill] sm:$0xff] %v4700_v22  ;;  %v1043_v33 = vand.u32 4294901760, %v1042_v19  ;;  %v4703_v42 = vand.u32 4294901760, %v4700_v22  ;;  %v582_v19 = vadd.f32 %v581_v32, %v457_v26  ;;  %v465_v32 = vadd.f32 %v4613_v60, %v4605_v57 }
 0x190   : > { %1044 = vmatmul.f32.gmra.mxu2 %v1043_v33  ;;  %1245 = vmatmul.f32.gmra.mxu3 %v4703_v42  ;;  %v1048_v58 = vsub.f32 %v4700_v22, %v4703_v42  ;;  %v707_v54 = vadd.f32 %v706_v44, %v582_v19 }
 0x192   : > { %1366 = vmatmul.f32.gmra.mxu0 %v1048_v58  ;;  %v1049_v61 = vand.u32 4294901760, %v1048_v58 }
 0x193   : > { %v928_v12 = vpop.f32.mrf.mxu1 }
 0x194   : > { %v835_v10 = vpop.f32.mrf.mxu0  ;;  %v4710_v21 = vadd.f32 %v928_v12, %v832_v11  ;;  %1487 = vmatmul.f32.gmra.mxu1 %v1049_v61  ;;  %v1050_v5 = vsub.f32 %v1048_v58, %v1049_v61  ;;  %v461_v58 = vadd.f32 %v4607_v17, %v4599_v53 }
 0x195   : > { %v836_v36 = vadd.f32 %v835_v10, %v695_v51  ;;  %v591_v51 = vpop.f32.mrf.mxu2 }
 0x196   : > { %6184 = vst [vmem:[#allocation16_spill] sm:$0xff] %v4710_v21  ;;  %v1051_v40 = vand.u32 4294901760, %v1050_v5  ;;  %v4713_v46 = vand.u32 4294901760, %v4710_v21  ;;  %v587_v20 = vadd.f32 %v586_v49, %v461_v58  ;;  %v473_v58 = vadd.f32 %v4625_v6, %v4617_v0 }
 0x198   : > { %1052 = vmatmul.f32.gmra.mxu2 %v1051_v40  ;;  %1249 = vmatmul.f32.gmra.mxu3 %v4713_v46  ;;  %v1056_v7 = vsub.f32 %v4710_v21, %v4713_v46  ;;  %v713_v17 = vadd.f32 %v712_v25, %v587_v20 }
 0x19a   : > { %1371 = vmatmul.f32.gmra.mxu0 %v1056_v7  ;;  %v1057_v4 = vand.u32 4294901760, %v1056_v7 }
 0x19b   : > { %v932_v13 = vpop.f32.mrf.mxu1 }
 0x19c   : > { %v839_v55 = vpop.f32.mrf.mxu0  ;;  %v4720_v2 = vadd.f32 %v932_v13, %v836_v36  ;;  %1493 = vmatmul.f32.gmra.mxu1 %v1057_v4  ;;  %v1058_v8 = vsub.f32 %v1056_v7, %v1057_v4  ;;  %v718_v36 = vpop.f32.mrf.mxu3 }
 0x19d   : > { %v840_v56 = vadd.f32 %v839_v55, %v701_v52  ;;  %v596_v60 = vpop.f32.mrf.mxu2 }
 0x19e   : > { %6185 = vst [vmem:[#allocation17_spill] sm:$0xff] %v4720_v2  ;;  %v1059_v41 = vand.u32 4294901760, %v1058_v8  ;;  %v4723_v45 = vand.u32 4294901760, %v4720_v2  ;;  %v592_v8 = vadd.f32 %v591_v51, %v465_v32 }
 0x1a0   : > { %1060 = vmatmul.f32.gmra.mxu2 %v1059_v41  ;;  %1253 = vmatmul.f32.gmra.mxu3 %v4723_v45  ;;  %v1064_v30 = vsub.f32 %v4720_v2, %v4723_v45  ;;  %v719_v26 = vadd.f32 %v718_v36, %v592_v8 }
 0x1a2   : > { %1376 = vmatmul.f32.gmra.mxu0 %v1064_v30  ;;  %v1065_v62 = vand.u32 4294901760, %v1064_v30 }
 0x1a3   : > { %v936_v43 = vpop.f32.mrf.mxu1 }
 0x1a4   : > { %v843_v18 = vpop.f32.mrf.mxu0  ;;  %v4730_v37 = vadd.f32 %v936_v43, %v840_v56  ;;  %1499 = vmatmul.f32.gmra.mxu1 %v1065_v62  ;;  %v1066_v33 = vsub.f32 %v1064_v30, %v1065_v62  ;;  %v469_v30 = vadd.f32 %v4619_v1, %v4611_v59 }
 0x1a5   : > { %v844_v11 = vadd.f32 %v843_v18, %v707_v54  ;;  %v724_v18 = vpop.f32.mrf.mxu3 }
 0x1a6   : > { %6186 = vst [vmem:[#allocation18_spill] sm:$0xff] %v4730_v37  ;;  %v1067_v50 = vand.u32 4294901760, %v1066_v33  ;;  %v4733_v34 = vand.u32 4294901760, %v4730_v37  ;;  %v597_v19 = vadd.f32 %v596_v60, %v469_v30 }
 0x1a8   : > { %1068 = vmatmul.f32.gmra.mxu2 %v1067_v50  ;;  %1257 = vmatmul.f32.gmra.mxu3 %v4733_v34  ;;  %v1072_v29 = vsub.f32 %v4730_v37, %v4733_v34  ;;  %v725_v1 = vadd.f32 %v724_v18, %v597_v19 }
 0x1aa   : > { %1381 = vmatmul.f32.gmra.mxu0 %v1072_v29  ;;  %v1073_v61 = vand.u32 4294901760, %v1072_v29 }
 0x1ab   : > { %v940_v12 = vpop.f32.mrf.mxu1 }
 0x1ac   : > { %v847_v10 = vpop.f32.mrf.mxu0  ;;  %v4740_v5 = vadd.f32 %v940_v12, %v844_v11  ;;  %1505 = vmatmul.f32.gmra.mxu1 %v1073_v61  ;;  %v1074_v40 = vsub.f32 %v1072_v29, %v1073_v61  ;;  %v601_v11 = vpop.f32.mrf.mxu2 }
 0x1ad   : > { %v848_v4 = vadd.f32 %v847_v10, %v713_v17  ;;  %v602_v20 = vadd.f32 %v601_v11, %v473_v58 }
 0x1ae   : > { %6187 = vst [vmem:[#allocation19_spill] sm:$0xff] %v4740_v5  ;;  %v1075_v31 = vand.u32 4294901760, %v1074_v40  ;;  %v4743_v53 = vand.u32 4294901760, %v4740_v5 }
 0x1b0   : > { %1076 = vmatmul.f32.gmra.mxu2 %v1075_v31  ;;  %1261 = vmatmul.f32.gmra.mxu3 %v4743_v53  ;;  %v1080_v7 = vsub.f32 %v4740_v5, %v4743_v53  ;;  %v730_v31 = vpop.f32.mrf.mxu3 }
 0x1b1   : > { %v731_v32 = vadd.f32 %v730_v31, %v602_v20 }
 0x1b2   : > { %1386 = vmatmul.f32.gmra.mxu0 %v1080_v7  ;;  %v1081_v55 = vand.u32 4294901760, %v1080_v7 }
 0x1b3   : > { %v944_v3 = vpop.f32.mrf.mxu1 }
 0x1b4   : > { %v851_v13 = vpop.f32.mrf.mxu0  ;;  %v4750_v44 = vadd.f32 %v944_v3, %v848_v4  ;;  %1511 = vmatmul.f32.gmra.mxu1 %v1081_v55  ;;  %v1082_v41 = vsub.f32 %v1080_v7, %v1081_v55 }
 0x1b5   : > { %v852_v56 = vadd.f32 %v851_v13, %v719_v26 }
 0x1b6   : > { %6188 = vst [vmem:[#allocation20_spill] sm:$0xff] %v4750_v44  ;;  %v1083_v52 = vand.u32 4294901760, %v1082_v41  ;;  %v4753_v57 = vand.u32 4294901760, %v4750_v44 }
 0x1b8   : > { %1084 = vmatmul.f32.gmra.mxu2 %v1083_v52  ;;  %1265 = vmatmul.f32.gmra.mxu3 %v4753_v57  ;;  %v1088_v49 = vsub.f32 %v4750_v44, %v4753_v57 }
 0x1ba   : > { %1391 = vmatmul.f32.gmra.mxu0 %v1088_v49  ;;  %v1089_v62 = vand.u32 4294901760, %v1088_v49 }
 0x1bb   : > { %v948_v43 = vpop.f32.mrf.mxu1 }
 0x1bc   : > { %v4760_v33 = vadd.f32 %v948_v43, %v852_v56  ;;  %1517 = vmatmul.f32.gmra.mxu1 %v1089_v62  ;;  %v1090_v50 = vsub.f32 %v1088_v49, %v1089_v62  ;;  %v855_v25 = vpop.f32.mrf.mxu0 }
 0x1bd   : > { %v856_v61 = vadd.f32 %v855_v25, %v725_v1 }
 0x1be   : > { %6189 = vst [vmem:[#allocation21_spill] sm:$0xff] %v4760_v33  ;;  %v1091_v54 = vand.u32 4294901760, %v1090_v50  ;;  %v4763_v59 = vand.u32 4294901760, %v4760_v33 }
 0x1c0   : > { %1092 = vmatmul.f32.gmra.mxu2 %v1091_v54  ;;  %1269 = vmatmul.f32.gmra.mxu3 %v4763_v59  ;;  %v1096_v29 = vsub.f32 %v4760_v33, %v4763_v59 }
 0x1c2   : > { %1396 = vmatmul.f32.gmra.mxu0 %v1096_v29  ;;  %v1097_v10 = vand.u32 4294901760, %v1096_v29 }
 0x1c3   : > { %v952_v12 = vpop.f32.mrf.mxu1 }
 0x1c4   : > { %v4770_v40 = vadd.f32 %v952_v12, %v856_v61  ;;  %1523 = vmatmul.f32.gmra.mxu1 %v1097_v10  ;;  %v1098_v51 = vsub.f32 %v1096_v29, %v1097_v10  ;;  %v859_v6 = vpop.f32.mrf.mxu0 }
 0x1c5   : > { %v860_v36 = vadd.f32 %v859_v6, %v731_v32 }
 0x1c6   : > { %6190 = vst [vmem:[#allocation22_spill] sm:$0xff] %v4770_v40  ;;  %v1099_v17 = vand.u32 4294901760, %v1098_v51  ;;  %v4773_v0 = vand.u32 4294901760, %v4770_v40 }
 0x1c8   : > { %1100 = vmatmul.f32.gmra.mxu2 %v1099_v17  ;;  %1273 = vmatmul.f32.gmra.mxu3 %v4773_v0  ;;  %v1104_v7 = vsub.f32 %v4770_v40, %v4773_v0 }
 0x1ca   : > { %1401 = vmatmul.f32.gmra.mxu0 %v1104_v7  ;;  %v1105_v4 = vand.u32 4294901760, %v1104_v7 }
 0x1cb   : > { %v956_v55 = vpop.f32.mrf.mxu1 }
 0x1cc   : > { %v4778_v13 = vadd.f32 %v956_v55, %v860_v36  ;;  %1529 = vmatmul.f32.gmra.mxu1 %v1105_v4  ;;  %v1106_v3 = vsub.f32 %v1104_v7, %v1105_v4 }
 0x1ce   : > { %6191 = vst [vmem:[#allocation23_spill] sm:$0xff] %v4778_v13  ;;  %v1107_v8 = vand.u32 4294901760, %v1106_v3  ;;  %v4781_v41 = vand.u32 4294901760, %v4778_v13 }
 0x1d0   : > { %1108 = vmatmul.f32.gmra.mxu2 %v1107_v8  ;;  %1277 = vmatmul.f32.gmra.mxu3 %v4781_v41  ;;  %v1112_v52 = vsub.f32 %v4778_v13, %v4781_v41 }
 0x1d2   : > { %1406 = vmatmul.f32.gmra.mxu0 %v1112_v52  ;;  %v1113_v60 = vand.u32 4294901760, %v1112_v52 }
 0x1d4   : > { %1535 = vmatmul.f32.gmra.mxu1 %v1113_v60  ;;  %v1114_v26 = vsub.f32 %v1112_v52, %v1113_v60 }
 0x1d6   : > { %v1115_v30 = vand.u32 4294901760, %v1114_v26 }
 0x1d7   : > { %v4845_v36 = vpop.f32.mrf.mxu0 }
 0x1d8   : > { %1116 = vmatmul.f32.gmra.mxu2 %v1115_v30  ;;  %1701 = vmatmul.f32.vlgmr.msra.gmra.mxu3 %v4633_v47  ;;  %6196 = vst [vmem:[#allocation28_spill] sm:$0xff] %v4845_v36 }
 0x1db   : > { %v1218_v49 = vpop.f32.mrf.mxu3 }
 0x1df   : > { %v4855_v3 = vpop.f32.mrf.mxu0 }
 0x1e0   : > { %1604 = vmatmul.f32.vlgmr.msra.gmra.mxu2 %v4633_v47  ;;  %1705 = vmatmul.f32.gmra.mxu3 %v4643_v16  ;;  %6198 = vst [vmem:[#allocation30_spill] sm:$0xff] %v4855_v3 }
 0x1e3   : > { %v997_v56 = vpop.f32.mrf.mxu2  ;;  %v1222_v62 = vpop.f32.mrf.mxu3 }
 0x1e4   : > { %v4789_v18 = vadd.f32 %v1218_v49, %v997_v56 }
 0x1e6   : > { %6192 = vst [vmem:[#allocation24_spill] sm:$0xff] %v4789_v18 }
 0x1e8   : > { %1608 = vmatmul.f32.gmra.mxu2 %v4643_v16  ;;  %1709 = vmatmul.f32.gmra.mxu3 %v4653_v14 }
 0x1eb   : > { %v1005_v43 = vpop.f32.mrf.mxu2  ;;  %v1226_v19 = vpop.f32.mrf.mxu3 }
 0x1ec   : > { %v4793_v50 = vadd.f32 %v1222_v62, %v1005_v43 }
 0x1ee   : > { %6193 = vst [vmem:[#allocation25_spill] sm:$0xff] %v4793_v50  ;;  %v1765_v50 = vlaneseq }
 0x1f0   : > { %1612 = vmatmul.f32.gmra.mxu2 %v4653_v14  ;;  %1713 = vmatmul.f32.gmra.mxu3 %v4663_v23  ;;  %v4945_v39 = vshrl.u32 %v1765_v50, 7 }
 0x1f3   : > { %v1013_v25 = vpop.f32.mrf.mxu2  ;;  %v1230_v47 = vpop.f32.mrf.mxu3 }
 0x1f4   : > { %v4797_v54 = vadd.f32 %v1226_v19, %v1013_v25 }
 0x1f6   : > { %6194 = vst [vmem:[#allocation26_spill] sm:$0xff] %v4797_v54 }
 0x1f8   : > { %1616 = vmatmul.f32.gmra.mxu2 %v4663_v23  ;;  %1717 = vmatmul.f32.gmra.mxu3 %v4673_v27 }
 0x1fb   : > { %v1021_v1 = vpop.f32.mrf.mxu2  ;;  %v1234_v16 = vpop.f32.mrf.mxu3 }
 0x1fc   : > { %v4801_v58 = vadd.f32 %v1230_v47, %v1021_v1 }
 0x1fe   : > { %6195 = vst [vmem:[#allocation27_spill] sm:$0xff] %v4801_v58 }
 0x200   : > { %1620 = vmatmul.f32.gmra.mxu2 %v4673_v27  ;;  %1721 = vmatmul.f32.gmra.mxu3 %v4683_v35 }
 0x203   : > { %v1029_v29 = vpop.f32.mrf.mxu2  ;;  %v1238_v14 = vpop.f32.mrf.mxu3 }
 0x204   : > { %v4805_v11 = vadd.f32 %v1234_v16, %v1029_v29 }
 0x208   : > { %1624 = vmatmul.f32.gmra.mxu2 %v4683_v35  ;;  %1725 = vmatmul.f32.gmra.mxu3 %v4693_v38 }
 0x20b   : > { %v1037_v61 = vpop.f32.mrf.mxu2  ;;  %v1242_v23 = vpop.f32.mrf.mxu3 }
 0x20c   : > { %v4809_v10 = vadd.f32 %v1238_v14, %v1037_v61 }
 0x210   : > { %1628 = vmatmul.f32.gmra.mxu2 %v4693_v38  ;;  %1729 = vmatmul.f32.gmra.mxu3 %v4703_v42 }
 0x213   : > { %v1045_v12 = vpop.f32.mrf.mxu2  ;;  %v1246_v27 = vpop.f32.mrf.mxu3 }
 0x214   : > { %v4813_v20 = vadd.f32 %v1242_v23, %v1045_v12 }
 0x218   : > { %1632 = vmatmul.f32.gmra.mxu2 %v4703_v42  ;;  %1733 = vmatmul.f32.gmra.mxu3 %v4713_v46 }
 0x21b   : > { %v1053_v51 = vpop.f32.mrf.mxu2  ;;  %v4817_v35 = vpop.f32.mrf.mxu3 }
 0x21c   : > { %v4819_v31 = vadd.f32 %v1246_v27, %v1053_v51 }
 0x220   : > { %1636 = vmatmul.f32.gmra.mxu2 %v4713_v46  ;;  %1737 = vmatmul.f32.gmra.mxu3 %v4723_v45 }
 0x223   : > { %v4823_v38 = vpop.f32.mrf.mxu2  ;;  %v4825_v17 = vpop.f32.mrf.mxu3 }
 0x228   : > { %1640 = vmatmul.f32.gmra.mxu2 %v4723_v45  ;;  %1741 = vmatmul.f32.gmra.mxu3 %v4733_v34 }
 0x22b   : > { %v4829_v42 = vpop.f32.mrf.mxu2  ;;  %v4831_v6 = vpop.f32.mrf.mxu3 }
 0x230   : > { %1644 = vmatmul.f32.gmra.mxu2 %v4733_v34  ;;  %1745 = vmatmul.f32.gmra.mxu3 %v4743_v53  ;;  %v4849_v34 = vpop.f32.mrf.mxu1 }
 0x231   : > { %6197 = vst [vmem:[#allocation29_spill] sm:$0xff] %v4849_v34 }
 0x233   : > { %v4835_v32 = vpop.f32.mrf.mxu2  ;;  %v4837_v46 = vpop.f32.mrf.mxu3 }
 0x238   : > { %1648 = vmatmul.f32.gmra.mxu2 %v4743_v53  ;;  %1749 = vmatmul.f32.gmra.mxu3 %v4753_v57  ;;  %v4859_v52 = vpop.f32.mrf.mxu1 }
 0x239   : > { %6199 = vst [vmem:[#allocation31_spill] sm:$0xff] %v4859_v52 }
 0x23b   : > { %v4841_v7 = vpop.f32.mrf.mxu2  ;;  %v4843_v45 = vpop.f32.mrf.mxu3 }
 0x240   : > { %1652 = vmatmul.f32.gmra.mxu2 %v4753_v57  ;;  %1753 = vmatmul.f32.gmra.mxu3 %v4763_v59  ;;  %v4863_v57 = vpop.f32.mrf.mxu0  ;;  %v4867_v30 = vpop.f32.mrf.mxu1 }
 0x241   : > { %6200 = vst [vmem:[#allocation32_spill] sm:$0xff] %v4863_v57 }
 0x242   : > { %6201 = vst [vmem:[#allocation33_spill] sm:$0xff] %v4867_v30 }
 0x243   : > { %v4851_v4 = vpop.f32.mrf.mxu2  ;;  %v4853_v55 = vpop.f32.mrf.mxu3 }
 0x248   : > { %1656 = vmatmul.f32.gmra.mxu2 %v4763_v59  ;;  %1757 = vmatmul.f32.gmra.mxu3 %v4773_v0  ;;  %v4874_v56 = vpop.f32.mrf.mxu0  ;;  %v4876_v62 = vpop.f32.mrf.mxu1 }
 0x249   : > { %6203 = vst [vmem:[#allocation35_spill] sm:$0xff] %v4874_v56 }
 0x24a   : > { %6204 = vst [vmem:[#allocation36_spill] sm:$0xff] %v4876_v62 }
 0x24b   : > { %v1101_v53 = vpop.f32.mrf.mxu2  ;;  %v1274_v8 = vpop.f32.mrf.mxu3 }
 0x24c   : > { %v1271_v62 = vadd.f32 %v4853_v55, %v1101_v53 }
 0x250   : > { %1660 = vmatmul.f32.gmra.mxu2 %v4773_v0  ;;  %1761 = vmatmul.f32.gmra.mxu3 %v4781_v41  ;;  %v4882_v19 = vpop.f32.mrf.mxu0  ;;  %v4884_v25 = vpop.f32.mrf.mxu1 }
 0x251   : > { %6207 = vst [vmem:[#allocation39_spill] sm:$0xff] %v4884_v25 }
 0x253   : > { %v1109_v60 = vpop.f32.mrf.mxu2  ;;  %v4865_v26 = vpop.f32.mrf.mxu3 }
 0x254   : > { %v1275_v57 = vadd.f32 %v1274_v8, %v1109_v60 }
 0x258   : > { %1664 = vmatmul.f32.gmra.mxu2 %v4781_v41  ;;  %v4890_v41 = vpop.f32.mrf.mxu0  ;;  %v4896_v14 = vpop.f32.mrf.mxu1 }
 0x25b   : > { %v4870_v59 = vpop.f32.mrf.mxu2  ;;  %v4872_v49 = vpop.f32.mrf.mxu3 }
 0x25c   : > { %6202 = vst [vmem:[#allocation34_spill] sm:$0xff] %v4872_v49  ;;  %v1279_v53 = vadd.f32 %v4865_v26, %v4870_v59 }
 0x260   : > { %v4898_v61 = vpop.f32.mrf.mxu0  ;;  %v4904_v27 = vpop.f32.mrf.mxu1 }
 0x263   : > { %v4878_v0 = vpop.f32.mrf.mxu2  ;;  %v4880_v43 = vpop.f32.mrf.mxu3 }
 0x264   : > { %6205 = vst [vmem:[#allocation37_spill] sm:$0xff] %v4878_v0 }
 0x265   : > { %6206 = vst [vmem:[#allocation38_spill] sm:$0xff] %v4880_v43 }
 0x268   : > { %v4910_v40 = vpop.f32.mrf.mxu0  ;;  %v4912_v33 = vpop.f32.mrf.mxu1 }
 0x26b   : > { %v4886_v47 = vpop.f32.mrf.mxu2  ;;  %v4888_v1 = vpop.f32.mrf.mxu3 }
 0x26c   : > { %6208 = vst [vmem:[#allocation40_spill] sm:$0xff] %v4886_v47 }
 0x26d   : > { %6209 = vst [vmem:[#allocation41_spill] sm:$0xff] %v4888_v1 }
 0x270   : > { %v4918_v37 = vpop.f32.mrf.mxu0  ;;  %v4920_v2 = vpop.f32.mrf.mxu1 }
 0x273   : > { %v4892_v16 = vpop.f32.mrf.mxu2  ;;  %v4894_v29 = vpop.f32.mrf.mxu3 }
 0x274   : > { %6210 = vst [vmem:[#allocation42_spill] sm:$0xff] %v4892_v16 }
 0x275   : > { %6211 = vst [vmem:[#allocation43_spill] sm:$0xff] %v4894_v29 }
 0x278   : > { %v1377_v28 = vpop.f32.mrf.mxu0  ;;  %v4930_v63 = vpop.f32.mrf.mxu1 }
 0x27b   : > { %v4900_v23 = vpop.f32.mrf.mxu2  ;;  %v4902_v12 = vpop.f32.mrf.mxu3 }
 0x27c   : > { %6212 = vst [vmem:[#allocation44_spill] sm:$0xff] %v4900_v23 }
 0x27d   : > { %6213 = vst [vmem:[#allocation45_spill] sm:$0xff] %v4902_v12 }
 0x280   : > { %v1382_v9 = vpop.f32.mrf.mxu0  ;;  %v1506_v48 = vpop.f32.mrf.mxu1 }
 0x283   : > { %v4906_v51 = vpop.f32.mrf.mxu2  ;;  %v4908_v13 = vpop.f32.mrf.mxu3 }
 0x284   : > { %6214 = vst [vmem:[#allocation46_spill] sm:$0xff] %v4906_v51  ;;  %v1267_v51 = vadd.f32 %v4843_v45, %v4851_v4  ;;  %v1255_v45 = vadd.f32 %v4825_v17, %v4829_v42  ;;  %v1767_v4 = vadd.s32 8, %v4945_v39 }
 0x285   : > { %6215 = vst [vmem:[#allocation47_spill] sm:$0xff] %v4908_v13 }
 0x288   : > { %v1387_v47 = vpop.f32.mrf.mxu0  ;;  %v1512_v34 = vpop.f32.mrf.mxu1 }
 0x28b   : > { %v4914_v44 = vpop.f32.mrf.mxu2  ;;  %v4916_v5 = vpop.f32.mrf.mxu3 }
 0x28c   : > { %6216 = vst [vmem:[#allocation48_spill] sm:$0xff] %v4914_v44  ;;  %v1263_v44 = vadd.f32 %v4837_v46, %v4841_v7 }
 0x28d   : > { %6217 = vst [vmem:[#allocation49_spill] sm:$0xff] %v4916_v5 }
 0x290   : > { %v1392_v52 = vpop.f32.mrf.mxu0  ;;  %v1518_v30 = vpop.f32.mrf.mxu1 }
 0x291   : > { %v1393_v55 = vadd.f32 %v1392_v52, %v1267_v51 }
 0x293   : > { %v4922_v21 = vpop.f32.mrf.mxu2  ;;  %v4924_v22 = vpop.f32.mrf.mxu3  ;;  %v1519_v52 = vadd.f32 %v1518_v30, %v1393_v55 }
 0x294   : > { %6218 = vst [vmem:[#allocation50_spill] sm:$0xff] %v4924_v22  ;;  %v4947_v22 = vand.u32 127, %v1765_v50  ;;  %v1388_v50 = vadd.f32 %v1387_v47, %v1263_v44  ;;  %v1378_v44 = vadd.f32 %v1377_v28, %v1255_v45  ;;  %v3825_v45 = vld [vmem:[%s4060_s24 + $0x8] sm:$0xff] }
 0x296   : > { %vm1784_vm0 = vcmp.eq.s32.totalorder %v4945_v39, %v4947_v22  ;;  %vm1785_vm1 = vcmp.eq.s32.totalorder %v1767_v4, %v4947_v22  ;;  %v1849_v4 = vmul.f32 0.0001984127, %v3825_v45 }
 0x298   : > { %v1397_v12 = vpop.f32.mrf.mxu0  ;;  %v1524_v3 = vpop.f32.mrf.mxu1 }
 0x299   : > { %v1398_v25 = vadd.f32 %v1397_v12, %v1271_v62  ;;  %v6126_v62 = vmov 0.0  }
 0x29a   : > { %v4963_v17 = vsel %vm1784_vm0, 1.0, %v6126_v62 }
 0x29b   : > { %v4926_v24 = vpop.f32.mrf.mxu2  ;;  %v4928_v15 = vpop.f32.mrf.mxu3  ;;  %v1525_v46 = vadd.f32 %v1524_v3, %v1398_v25  ;;  %6220 = vst [vmem:[#allocation52_spill] sm:$0xff] %v4963_v17  ;;  %v1832_v30 = vmul.f32 0.0013888889, %v4963_v17  ;;  %v1368_v25 = vadd.f32 %v4910_v40, %v4819_v31 }
 0x29c   : > { %6219 = vst [vmem:[#allocation51_spill] sm:$0xff] %v4928_v15  ;;  %v1259_v15 = vadd.f32 %v4831_v6, %v4835_v32 }
 0x29e   : > { %v1383_v32 = vadd.f32 %v1382_v9, %v1259_v15 }
 0x2a0   : > { %v1402_v54 = vpop.f32.mrf.mxu0  ;;  %v1530_v58 = vpop.f32.mrf.mxu1 }
 0x2a1   : > { %v1403_v56 = vadd.f32 %v1402_v54, %v1275_v57  ;;  %v1251_v54 = vadd.f32 %v4817_v35, %v4823_v38  ;;  %v1507_v38 = vadd.f32 %v1506_v48, %v1383_v32 }
 0x2a3   : > { %v4932_v49 = vpop.f32.mrf.mxu2  ;;  %v4934_v43 = vpop.f32.mrf.mxu3  ;;  %v1531_v7 = vadd.f32 %v1530_v58, %v1403_v56  ;;  %v1513_v58 = vadd.f32 %v1512_v34, %v1388_v50  ;;  %v1373_v35 = vadd.f32 %v4918_v37, %v1251_v54  ;;  %v3824_v56 = vld [vmem:[%s4060_s24] sm:$0xff]  ;;  %v1501_v34 = vadd.f32 %v4930_v63, %v1378_v44  ;;  %v6229_v44 = vld [vmem:[#allocation39_spill] sm:$0xff] }
 0x2a4   : > { %v1848_v28 = vmul.f32 0.0001984127, %v3824_v56  ;;  %v1358_v50 = vadd.f32 %v4890_v41, %v4809_v10 }
 0x2a8   : > { %v1407_v42 = vpop.f32.mrf.mxu0  ;;  %v1536_v47 = vpop.f32.mrf.mxu1 }
 0x2a9   : > { %v1408_v3 = vadd.f32 %v1407_v42, %v1279_v53 }
 0x2ab   : > { %v4936_v1 = vpop.f32.mrf.mxu2  ;;  %v4938_v0 = vpop.f32.mrf.mxu3  ;;  %v1537_v48 = vadd.f32 %v1536_v47, %v1408_v3  ;;  %v6230_v3 = vld [vmem:[#allocation48_spill] sm:$0xff]  ;;  %v6235_v47 = vld [vmem:[#allocation49_spill] sm:$0xff] }
 0x2ac   : > { %v1642_v40 = vadd.f32 %v4936_v1, %v1501_v34 }
 0x2b3   : > { %v1645_v29 = vpop.f32.mrf.mxu2  ;;  %v4940_v16 = vpop.f32.mrf.mxu3 }
 0x2bb   : > { %v1649_v36 = vpop.f32.mrf.mxu2  ;;  %v1750_v18 = vpop.f32.mrf.mxu3 }
 0x2bc   : > { %v1650_v9 = vadd.f32 %v1649_v36, %v1513_v58  ;;  %v1495_v36 = vadd.f32 %v4920_v2, %v1373_v35 }
 0x2be   : > { %v1747_v31 = vadd.f32 %v4940_v16, %v1650_v9  ;;  %v1638_v2 = vadd.f32 %v4932_v49, %v1495_v36 }
 0x2c0   : > { %v5005_v49 = vand.u32 4294901760, %v1747_v31 }
 0x2c3   : > { %v1653_v23 = vpop.f32.mrf.mxu2  ;;  %v1754_v13 = vpop.f32.mrf.mxu3 }
 0x2c4   : > { %v1654_v26 = vadd.f32 %v1653_v23, %v1519_v52  ;;  %v1646_v23 = vadd.f32 %v1645_v29, %v1507_v38  ;;  %v4986_v29 = vadd.f32 %v1848_v28, %v1832_v30  ;;  %v5039_v38 = vsub.f32 %v1747_v31, %v5005_v49  ;;  %v6233_v30 = vld [vmem:[#allocation8_spill] sm:$0xff]  ;;  %v6234_v28 = vld [vmem:[#allocation46_spill] sm:$0xff]  ;;  %v6240_v31 = vld [vmem:[#allocation47_spill] sm:$0xff] }
 0x2c5   : > { %v1880_v56 = vmul.f32 2.4801588e-05, %v6233_v30 }
 0x2c6   : > { %v1751_v12 = vadd.f32 %v1750_v18, %v1654_v26  ;;  %v1743_v53 = vadd.f32 %v4938_v0, %v1646_v23  ;;  %v6231_v26 = vld [vmem:[#allocation50_spill] sm:$0xff] }
 0x2cb   : > { %v1657_v5 = vpop.f32.mrf.mxu2  ;;  %v1758_v8 = vpop.f32.mrf.mxu3 }
 0x2cc   : > { %v1658_v57 = vadd.f32 %v1657_v5, %v1525_v46  ;;  %v4968_v5 = vsel %vm1785_vm1, 1.0, %v6126_v62  ;;  %v4993_v46 = vand.u32 4294901760, %v1751_v12 }
 0x2cd   : > { %6221 = vst [vmem:[#allocation53_spill] sm:$0xff] %v4968_v5  ;;  %v1833_v55 = vmul.f32 0.0013888889, %v4968_v5 }
 0x2ce   : > { %v1755_v15 = vadd.f32 %v1754_v13, %v1658_v57  ;;  %v1363_v13 = vadd.f32 %v4898_v61, %v4813_v20  ;;  %v1489_v20 = vadd.f32 %v4912_v33, %v1368_v25  ;;  %v1739_v33 = vadd.f32 %v4934_v43, %v1642_v40  ;;  %v6228_v57 = vld [vmem:[#allocation35_spill] sm:$0xff] }
 0x2cf   : > { %v5002_v41 = vadd.f32 %v1849_v4, %v1833_v55  ;;  %v5021_v43 = vsub.f32 %v1751_v12, %v4993_v46  ;;  %v6238_v55 = vld [vmem:[#allocation32_spill] sm:$0xff] }
 0x2d0   : > { %v4984_v63 = vand.u32 4294901760, %v1755_v15  ;;  %v1483_v54 = vadd.f32 %v4904_v27, %v1363_v13  ;;  %v1634_v10 = vadd.f32 %v4926_v24, %v1489_v20  ;;  %v5016_v27 = vadd.s32 16, %v4945_v39  ;;  %v6239_v4 = vld [vmem:[#allocation36_spill] sm:$0xff] }
 0x2d1   : > { %v5018_v24 = vand.u32 4294901760, %v1743_v53  ;;  %v5036_v35 = vand.u32 4294901760, %v1739_v33  ;;  %v5065_v36 = vand.u32 4294901760, %v5021_v43 }
 0x2d2   : > { %v5008_v0 = vsub.f32 %v1755_v15, %v4984_v63  ;;  %v1630_v32 = vadd.f32 %v4922_v21, %v1483_v54  ;;  %v6227_v21 = vld [vmem:[#allocation27_spill] sm:$0xff]  ;;  %vm1786_vm2 = vcmp.eq.s32.totalorder %v5016_v27, %v4947_v22 }
 0x2d3   : > { %v1661_v6 = vpop.f32.mrf.mxu2  ;;  %v1762_v61 = vpop.f32.mrf.mxu3  ;;  %6232 = vst [vmem:[#allocation27_spill] sm:$0xff] %v5039_v38  ;;  %v5056_v12 = vsub.f32 %v1743_v53, %v5018_v24  ;;  %v5075_v20 = vsub.f32 %v1739_v33, %v5036_v35  ;;  %v5084_v53 = vand.u32 4294901760, %v5039_v38 }
 0x2d4   : > { %v1662_v60 = vadd.f32 %v1661_v6, %v1531_v7  ;;  %v1353_v7 = vadd.f32 %v4882_v19, %v4805_v11  ;;  %6223 = vst [vmem:[#allocation55_spill] sm:$0xff] %v5008_v0  ;;  %v1477_v6 = vadd.f32 %v4896_v14, %v1358_v50  ;;  %v6224_v11 = vld [vmem:[#allocation51_spill] sm:$0xff]  ;;  %v5047_v15 = vand.u32 4294901760, %v5008_v0 }
 0x2d5   : > { %v1735_v19 = vadd.f32 %v6224_v11, %v1638_v2  ;;  %6225 = vst [vmem:[#allocation51_spill] sm:$0xff] %v5021_v43  ;;  %v1727_v34 = vadd.f32 %v6235_v47, %v1630_v32  ;;  %v6245_v32 = vld [vmem:[#allocation45_spill] sm:$0xff] }
 0x2d6   : > { %v1759_v59 = vadd.f32 %v1758_v8, %v1662_v60  ;;  %v1348_v60 = vadd.f32 %v6228_v57, %v6227_v21  ;;  %v1471_v42 = vadd.f32 %v6229_v44, %v1353_v7  ;;  %v1626_v58 = vadd.f32 %v6230_v3, %v1477_v6  ;;  %6236 = vst [vmem:[#allocation35_spill] sm:$0xff] %v5056_v12  ;;  %v6243_v7 = vld [vmem:[#allocation30_spill] sm:$0xff]  ;;  %v6247_v3 = vld [vmem:[#allocation24_spill] sm:$0xff] }
 0x2d7   : > { %v5052_v23 = vand.u32 4294901760, %v1735_v19  ;;  %6241 = vst [vmem:[#allocation39_spill] sm:$0xff] %v5075_v20  ;;  %v5090_v11 = vand.u32 4294901760, %v1727_v34  ;;  %v5103_v44 = vand.u32 4294901760, %v5056_v12 }
 0x2d8   : > { %v4975_v37 = vand.u32 4294901760, %v1759_v59  ;;  %v1622_v25 = vadd.f32 %v6234_v28, %v1471_v42  ;;  %v1465_v40 = vadd.f32 %v6239_v4, %v1348_v60  ;;  %v2110_v60 = vsub.f32 %v5021_v43, %v5065_v36  ;;  %v6249_v28 = vld [vmem:[#allocation33_spill] sm:$0xff]  ;;  %v6253_v4 = vld [vmem:[#allocation43_spill] sm:$0xff] }
 0x2d9   : > { %v5094_v21 = vsub.f32 %v1735_v19, %v5052_v23  ;;  %v1896_v42 = vadd.f32 %v1880_v56, %v4986_v29  ;;  %v2116_v29 = vsub.f32 %v5039_v38, %v5084_v53  ;;  %v5123_v56 = vand.u32 4294901760, %v5075_v20 }
 0x2da   : > { %v4996_v1 = vsub.f32 %v1759_v59, %v4975_v37  ;;  %v1731_v59 = vadd.f32 %v6231_v26, %v1634_v10  ;;  %v6244_v10 = vld [vmem:[#allocation44_spill] sm:$0xff]  ;;  %v1719_v33 = vadd.f32 %v6245_v32, %v1622_v25 }
 0x2db   : > { %v1665_v51 = vpop.f32.mrf.mxu2  ;;  %v1618_v6 = vadd.f32 %v6244_v10, %v1465_v40  ;;  %6246 = vst [vmem:[#allocation48_spill] sm:$0xff] %v5094_v21  ;;  %v6255_v10 = vld [vmem:[#allocation29_spill] sm:$0xff]  ;;  %v6256_v32 = vld [vmem:[#allocation40_spill] sm:$0xff] }
 0x2dc   : > { %v1666_v18 = vadd.f32 %v1665_v51, %v1537_v48  ;;  %6222 = vst [vmem:[#allocation54_spill] sm:$0xff] %v4996_v1  ;;  %v5029_v14 = vand.u32 4294901760, %v4996_v1  ;;  %v6237_v51 = vld [vmem:[#allocation26_spill] sm:$0xff]  ;;  %v5071_v50 = vand.u32 4294901760, %v1731_v59 }
 0x2dd   : > { %v1343_v45 = vadd.f32 %v6238_v55, %v6237_v51  ;;  %v6252_v55 = vld [vmem:[#allocation42_spill] sm:$0xff]  ;;  %v1715_v40 = vadd.f32 %v6253_v4, %v1618_v6 }
 0x2de   : > { %v1763_v16 = vadd.f32 %v1762_v61, %v1666_v18  ;;  %v2098_v13 = vsub.f32 %v4996_v1, %v5029_v14  ;;  %v1723_v18 = vadd.f32 %v6240_v31, %v1626_v58  ;;  %v2104_v61 = vsub.f32 %v5008_v0, %v5047_v15  ;;  %v6248_v58 = vld [vmem:[#allocation28_spill] sm:$0xff] }
 0x2df   : > { %v1333_v26 = vadd.f32 %v6248_v58, %v6247_v3  ;;  %v1459_v19 = vadd.f32 %v6249_v28, %v1343_v45  ;;  %v5114_v47 = vsub.f32 %v1731_v59, %v5071_v50  ;;  %v5128_v59 = vand.u32 4294901760, %v1719_v33  ;;  %v6258_v28 = vld [vmem:[#allocation37_spill] sm:$0xff] }
 0x2e0   : > { %v5010_v8 = vand.u32 4294901760, %v1763_v16  ;;  %v5098_v57 = vand.u32 4294901760, %v2098_v13  ;;  %v5109_v25 = vand.u32 4294901760, %v1723_v18  ;;  %v6251_v13 = vld [vmem:[#allocation31_spill] sm:$0xff]  ;;  %v5133_v31 = vsub.f32 %v1727_v34, %v5090_v11 }
 0x2e1   : > { %6250 = vst [vmem:[#allocation50_spill] sm:$0xff] %v5114_v47  ;;  %v1614_v45 = vadd.f32 %v6252_v55, %v1459_v19  ;;  %v1447_v6 = vadd.f32 %v6255_v10, %v1333_v26  ;;  %v2128_v58 = vsub.f32 %v5075_v20, %v5123_v56  ;;  %v5162_v26 = vand.u32 4294901760, %v5114_v47 }
 0x2e2   : > { %v5024_v52 = vsub.f32 %v1763_v16, %v5010_v8  ;;  %1929 = vmatpush.msrb.mxu0 %v5010_v8  ;;  %2380 = vmatpush.msrb.mxu3 %v5010_v8  ;;  %v6242_v16 = vld [vmem:[#allocation25_spill] sm:$0xff]  ;;  %6254 = vst [vmem:[#allocation46_spill] sm:$0xff] %v5133_v31  ;;  %v5153_v34 = vsub.f32 %v1723_v18, %v5109_v25  ;;  %v5166_v55 = vand.u32 4294901760, %v1715_v40 }
 0x2e3   : > { %v1338_v54 = vadd.f32 %v6243_v7, %v6242_v16  ;;  %v2122_v16 = vsub.f32 %v5056_v12, %v5103_v44  ;;  %v5142_v7 = vand.u32 4294901760, %v5094_v21  ;;  %v1606_v19 = vadd.f32 %v6258_v28, %v1447_v6  ;;  %v6260_v18 = vld [vmem:[#allocation9_spill] sm:$0xff] }
 0x2e4   : > { %6226 = vst [vmem:[#allocation56_spill] sm:$0xff] %v5024_v52  ;;  %1931 = vmatpush.msrb.mxu0 %v4975_v37  ;;  %2252 = vmatpush.msrb.mxu2 %v5024_v52  ;;  %v5044_v9 = vand.u32 4294901760, %v5024_v52  ;;  %v1881_v4 = vmul.f32 2.4801588e-05, %v6260_v18  ;;  %v5181_v6 = vand.u32 4294901760, %v5133_v31  ;;  %v6264_v18 = vld [vmem:[#allocation34_spill] sm:$0xff]  ;;  %v5212_v5 = vsub.f32 %v1715_v40, %v5166_v55 }
 0x2e5   : > { %2382 = vmatpush.msrb.mxu3 %v4975_v37  ;;  %v1453_v51 = vadd.f32 %v6251_v13, %v1338_v54  ;;  %v5144_v54 = vand.u32 4294901760, %v1896_v42  ;;  %6257 = vst [vmem:[#allocation49_spill] sm:$0xff] %v5153_v34  ;;  %v6259_v13 = vld [vmem:[#allocation41_spill] sm:$0xff]  ;;  %v5176_v10 = vand.u32 4294901760, %v2122_v16  ;;  %v5194_v16 = vand.u32 4294901760, %v2128_v58  ;;  %v3826_v40 = vld [vmem:[%s4060_s24 + $0x10] sm:$0xff] }
 0x2e6   : > { %1933 = vmatpush.msrb.mxu0 %v4984_v63  ;;  %2255 = vmatpush.msrb.mxu2 %v4996_v1  ;;  %v2092_v48 = vsub.f32 %v5024_v52, %v5044_v9  ;;  %v1703_v30 = vadd.f32 %v6264_v18, %v1606_v19  ;;  %v1897_v58 = vadd.f32 %v1881_v4, %v5002_v41  ;;  %v1850_v4 = vmul.f32 0.0001984127, %v3826_v40 }
 0x2e7   : > { %2384 = vmatpush.msrb.mxu3 %v4984_v63  ;;  %v1610_v3 = vadd.f32 %v6256_v32, %v1453_v51  ;;  %v1711_v51 = vadd.f32 %v6259_v13, %v1614_v45  ;;  %v2134_v45 = vsub.f32 %v5094_v21, %v5142_v7  ;;  %v6262_v32 = vld [vmem:[#allocation38_spill] sm:$0xff]  ;;  %v2140_v13 = vsub.f32 %v5114_v47, %v5162_v26 }
 0x2e8   : > { %1935 = vmatpush.msrb.mxu0 %v4993_v46  ;;  %2258 = vmatpush.msrb.mxu2 %v5008_v0  ;;  %v5079_v2 = vand.u32 4294901760, %v2092_v48  ;;  %v5118_v48 = vand.u32 4294901760, %v2104_v61  ;;  %v5137_v61 = vand.u32 4294901760, %v2110_v60  ;;  %v5157_v60 = vand.u32 4294901760, %v2116_v29  ;;  %6266 = vst [vmem:[#allocation47_spill] sm:$0xff] %v5212_v5 }
 0x2e9   : > { %2386 = vmatpush.msrb.mxu3 %v4993_v46  ;;  %v5172_v29 = vsub.f32 %v1719_v33, %v5128_v59  ;;  %v1707_v28 = vadd.f32 %v6262_v32, %v1610_v3  ;;  %v5190_v33 = vsel %vm1786_vm2, 1.0, %v6126_v62  ;;  %v5199_v3 = vand.u32 4294901760, %v5153_v34 }
 0x2ea   : > { %1937 = vmatpush.msrb.mxu0 %v5005_v49  ;;  %2094 = vmatpush.msrb.mxu1 %v5079_v2  ;;  %6263 = vst [vmem:[#allocation32_spill] sm:$0xff] %v5190_v33  ;;  %v5202_v32 = vsub.f32 %v1896_v42, %v5144_v54  ;;  %v5205_v27 = vand.u32 4294901760, %v1711_v51  ;;  %v1769_v62 = vadd.s32 24, %v4945_v39  ;;  %v5216_v42 = vand.u32 4294901760, %v2134_v45 }
 0x2eb   : > { %2261 = vmatpush.msrb.mxu2 %v5021_v43  ;;  %2388 = vmatpush.msrb.mxu3 %v5005_v49  ;;  %6261 = vst [vmem:[#allocation26_spill] sm:$0xff] %v5172_v29  ;;  %v2146_v19 = vsub.f32 %v5133_v31, %v5181_v6  ;;  %v5221_v18 = vand.u32 4294901760, %v5172_v29  ;;  %v5223_v17 = vand.u32 4294901760, %v1707_v28  ;;  %v1834_v41 = vmul.f32 0.0013888889, %v5190_v33 }
 0x2ec   : > { %1939 = vmatpush.msrb.mxu0 %v5018_v24  ;;  %2100 = vmatpush.msrb.mxu1 %v5098_v57  ;;  %6265 = vst [vmem:[#allocation36_spill] sm:$0xff] %v5205_v27  ;;  %v5231_v45 = vand.u32 4294901760, %v2140_v13  ;;  %v5243_v40 = vand.u32 4294901760, %v1897_v58  ;;  %vm1787_vm3 = vcmp.eq.s32.totalorder %v1769_v62, %v4947_v22 }
 0x2ed   : > { %2264 = vmatpush.msrb.mxu2 %v5039_v38  ;;  %2390 = vmatpush.msrb.mxu3 %v5018_v24  ;;  %6267 = vst [vmem:[#allocation25_spill] sm:$0xff] %v5223_v17  ;;  %v5247_v13 = vand.u32 4294901760, %v2146_v19  ;;  %v2158_v33 = vsub.f32 %v5172_v29, %v5221_v18  ;;  %v6270_v38 = vld [vmem:[#allocation10_spill] sm:$0xff] }
 0x2ee   : > { %1941 = vmatpush.msrb.mxu0 %v5036_v35  ;;  %2106 = vmatpush.msrb.mxu1 %v5118_v48  ;;  %v1882_v43 = vmul.f32 2.4801588e-05, %v6270_v38 }
 0x2ef   : > { %2267 = vmatpush.msrb.mxu2 %v5056_v12  ;;  %2392 = vmatpush.msrb.mxu3 %v5036_v35  ;;  %v5252_v12 = vand.u32 4294901760, %v5212_v5 }
 0x2f0   : > { %1943 = vmatpush.msrb.mxu0 %v5052_v23  ;;  %2112 = vmatpush.msrb.mxu1 %v5137_v61 }
 0x2f1   : > { %2270 = vmatpush.msrb.mxu2 %v5075_v20  ;;  %2394 = vmatpush.msrb.mxu3 %v5052_v23  ;;  %v5236_v20 = vand.u32 4294901760, %v1703_v30 }
 0x2f2   : > { %1945 = vmatpush.msrb.mxu0 %v5071_v50  ;;  %2118 = vmatpush.msrb.mxu1 %v5157_v60 }
 0x2f3   : > { %2273 = vmatpush.msrb.mxu2 %v5094_v21  ;;  %2396 = vmatpush.msrb.mxu3 %v5071_v50  ;;  %v1962_v21 = vand.u32 4294901760, %v5202_v32  ;;  %v5267_v62 = vsub.f32 %v1703_v30, %v5236_v20  ;;  %v5282_v30 = vand.u32 4294901760, %v2158_v33  ;;  %v3827_v33 = vld [vmem:[%s4060_s24 + $0x18] sm:$0xff] }
 0x2f4   : > { %1947 = vmatpush.msrb.mxu0 %v5090_v11  ;;  %2124 = vmatpush.msrb.mxu1 %v5176_v10 }
 0x2f5   : > { %2276 = vmatpush.msrb.mxu2 %v5114_v47  ;;  %2398 = vmatpush.msrb.mxu3 %v5090_v11  ;;  %v2152_v47 = vsub.f32 %v5153_v34, %v5199_v3  ;;  %v1963_v0 = vsub.f32 %v5202_v32, %v1962_v21 }
 0x2f6   : > { %1949 = vmatpush.msrb.mxu0 %v5109_v25  ;;  %2130 = vmatpush.msrb.mxu1 %v5194_v16 }
 0x2f7   : > { %2279 = vmatpush.msrb.mxu2 %v5133_v31  ;;  %2400 = vmatpush.msrb.mxu3 %v5109_v25  ;;  %v5239_v31 = vsub.f32 %v1711_v51, %v5205_v27  ;;  %v5256_v51 = vsub.f32 %v1707_v28, %v5223_v17  ;;  %v5263_v19 = vand.u32 4294901760, %v2152_v47  ;;  %v2164_v47 = vsub.f32 %v5212_v5, %v5252_v12 }
 0x2f8   : > { %1951 = vmatpush.msrb.mxu0 %v5128_v59  ;;  %2136 = vmatpush.msrb.mxu1 %v5216_v42  ;;  %v1964_v1 = vand.u32 4294901760, %v1963_v0  ;;  %v1770_v0 = vadd.s32 32, %v4945_v39 }
 0x2f9   : > { %6268 = vst [vmem:[#allocation30_spill] sm:$0xff] %v5239_v31  ;;  %2282 = vmatpush.msrb.mxu2 %v5153_v34  ;;  %2402 = vmatpush.msrb.mxu3 %v5128_v59  ;;  %v1866_v34 = vadd.f32 %v1850_v4, %v1834_v41  ;;  %v5272_v28 = vand.u32 4294901760, %v5239_v31  ;;  %v5275_v41 = vsub.f32 %v1897_v58, %v5243_v40  ;;  %v6271_v4 = vmov 0.0  }
 0x2fa   : > { %1953 = vmatpush.msrb.mxu0 %v5166_v55  ;;  %2142 = vmatpush.msrb.mxu1 %v5231_v45  ;;  %6269 = vst [vmem:[#allocation44_spill] sm:$0xff] %v5256_v51  ;;  %v5278_v38 = vsel %vm1787_vm3, 1.0, %v6271_v4  ;;  %vm1788_vm4 = vcmp.eq.s32.totalorder %v1770_v0, %v4947_v22 }
 0x2fb   : > { %2285 = vmatpush.msrb.mxu2 %v5172_v29  ;;  %2404 = vmatpush.msrb.mxu3 %v5166_v55  ;;  %6272 = vst [vmem:[#allocation45_spill] sm:$0xff] %v5278_v38  ;;  %v5289_v29 = vand.u32 4294901760, %v5256_v51  ;;  %v1898_v58 = vadd.f32 %v1882_v43, %v1866_v34  ;;  %v1835_v52 = vmul.f32 0.0013888889, %v5278_v38  ;;  %v1970_v43 = vand.u32 4294901760, %v5275_v41 }
 0x2fc   : > { %1955 = vmatpush.msrb.mxu0 %v5205_v27  ;;  %2148 = vmatpush.msrb.mxu1 %v5247_v13  ;;  %v5303_v34 = vand.u32 4294901760, %v2164_v47  ;;  %v6273_v47 = vld [vmem:[#allocation11_spill] sm:$0xff]  ;;  %v5337_v0 = vsel %vm1788_vm4, 1.0, %v6271_v4 }
 0x2fd   : > { %2288 = vmatpush.msrb.mxu2 %v5212_v5  ;;  %2406 = vmatpush.msrb.mxu3 %v5205_v27  ;;  %v1851_v27 = vmul.f32 0.0001984127, %v3827_v33  ;;  %v2170_v5 = vsub.f32 %v5239_v31, %v5272_v28  ;;  %v2176_v33 = vsub.f32 %v5256_v51, %v5289_v29  ;;  %v5310_v38 = vand.u32 4294901760, %v1898_v58 }
 0x2fe   : > { %1957 = vmatpush.msrb.mxu0 %v5223_v17  ;;  %2154 = vmatpush.msrb.mxu1 %v5263_v19 }
 0x2ff   : > { %2291 = vmatpush.msrb.mxu2 %v5239_v31  ;;  %2408 = vmatpush.msrb.mxu3 %v5223_v17  ;;  %v5300_v17 = vand.u32 4294901760, %v5267_v62  ;;  %v1867_v31 = vadd.f32 %v1851_v27, %v1835_v52  ;;  %v5327_v52 = vand.u32 4294901760, %v2176_v33  ;;  %v5345_v33 = vld [vmem:[%s4060_s24 + $0x20] sm:$0xff] }
 0x300   : > { %1959 = vmatpush.msrb.mxu0 %v5236_v20  ;;  %2160 = vmatpush.msrb.mxu1 %v5282_v30  ;;  %6274 = vst [vmem:[#allocation24_spill] sm:$0xff] %v5345_v33 }
 0x301   : > { %2294 = vmatpush.msrb.mxu2 %v5256_v51  ;;  %2410 = vmatpush.msrb.mxu3 %v5236_v20  ;;  %v1883_v51 = vmul.f32 2.4801588e-05, %v6273_v47 }
 0x302   : > { %1965 = vmatmul.f32.vlgmr.msrb.gmra.mxu0 %v1964_v1  ;;  %2414 = vmatmul.f32.vlgmr.msrb.gmra.mxu3 %v1962_v21  ;;  %v5316_v1 = vand.u32 4294901760, %v2170_v5  ;;  %v2182_v21 = vsub.f32 %v5267_v62, %v5300_v17  ;;  %v1977_v5 = vsub.f32 %v1898_v58, %v5310_v38 }
 0x303   : > { %2511 = vmatpush.msra.mxu0 %v5044_v9  ;;  %2964 = vmatpush.msra.mxu3 %v5079_v2  ;;  %v1971_v2 = vsub.f32 %v5275_v41, %v1970_v43  ;;  %v1899_v27 = vadd.f32 %v1883_v51, %v1867_v31  ;;  %v1852_v31 = vmul.f32 0.0001984127, %v5345_v33 }
 0x304   : > { %2166 = vmatpush.msrb.mxu1 %v5303_v34  ;;  %2297 = vmatpush.msrb.mxu2 %v5267_v62  ;;  %v1978_v58 = vand.u32 4294901760, %v1977_v5 }
 0x305   : > { %2300 = vmatmul.f32.vlgmr.msrb.gmra.mxu2 %v5202_v32  ;;  %2515 = vmatpush.msra.mxu0 %v5029_v14  ;;  %v1972_v32 = vand.u32 4294901760, %v1971_v2  ;;  %v5350_v51 = vand.u32 4294901760, %v1899_v27  ;;  %v6275_v2 = vld [vmem:[#allocation12_spill] sm:$0xff] }
 0x306   : > { %2799 = vmatpush.msra.mxu2 %v5010_v8  ;;  %2970 = vmatpush.msra.mxu3 %v5098_v57  ;;  %v5334_v57 = vand.u32 4294901760, %v2182_v21 }
 0x307   : > { %2172 = vmatpush.msrb.mxu1 %v5316_v1  ;;  %2519 = vmatpush.msra.mxu0 %v5047_v15  ;;  %v1985_v33 = vsub.f32 %v1899_v27, %v5350_v51 }
 0x308   : > { %2801 = vmatpush.msra.mxu2 %v4975_v37  ;;  %2976 = vmatpush.msra.mxu3 %v5118_v48  ;;  %v1836_v48 = vmul.f32 0.0013888889, %v5337_v0 }
 0x309   : > { %2178 = vmatpush.msrb.mxu1 %v5327_v52  ;;  %2523 = vmatpush.msra.mxu0 %v5065_v36  ;;  %v1986_v27 = vand.u32 4294901760, %v1985_v33 }
 0x30a   : > { %2803 = vmatpush.msra.mxu2 %v4984_v63  ;;  %2982 = vmatpush.msra.mxu3 %v5137_v61  ;;  %v1771_v61 = vadd.s32 40, %v4945_v39  ;;  %v1868_v21 = vadd.f32 %v1852_v31, %v1836_v48  ;;  %v5379_v48 = vld [vmem:[%s4060_s24 + $0x28] sm:$0xff] }
 0x30b   : > { %2184 = vmatpush.msrb.mxu1 %v5334_v57  ;;  %1973 = vmatmul.f32.gmra.mxu0 %v1972_v32  ;;  %v1884_v32 = vmul.f32 2.4801588e-05, %v6275_v2  ;;  %v1853_v31 = vmul.f32 0.0001984127, %v5379_v48 }
 0x30c   : > { %2186 = vmatmul.f32.vlgmr.msrb.gmra.mxu1 %v5144_v54  ;;  %2420 = vmatmul.f32.gmra.mxu3 %v1970_v43  ;;  %v1979_v43 = vsub.f32 %v1977_v5, %v1978_v58  ;;  %vm1789_vm5 = vcmp.eq.s32.totalorder %v1771_v61, %v4947_v22  ;;  %v1772_v61 = vadd.s32 48, %v4945_v39 }
 0x30d   : > { %2527 = vmatpush.msra.mxu0 %v5084_v53  ;;  %2638 = vmatpush.msra.mxu1 %v5010_v8 }
 0x30e   : > { %2805 = vmatpush.msra.mxu2 %v4993_v46  ;;  %2988 = vmatpush.msra.mxu3 %v5157_v60  ;;  %v1980_v60 = vand.u32 4294901760, %v1979_v43  ;;  %vm1790_vm6 = vcmp.eq.s32.totalorder %v1772_v61, %v4947_v22 }
 0x30f   : > { %2305 = vmatmul.f32.gmra.mxu2 %v5275_v41  ;;  %2531 = vmatpush.msra.mxu0 %v5103_v44  ;;  %v5371_v41 = vsel %vm1789_vm5, 1.0, %v6271_v4 }
 0x310   : > { %2640 = vmatpush.msra.mxu1 %v4975_v37  ;;  %2807 = vmatpush.msra.mxu2 %v5005_v49 }
 0x311   : > { %2994 = vmatpush.msra.mxu3 %v5176_v10  ;;  %2535 = vmatpush.msra.mxu0 %v5123_v56  ;;  %v1900_v10 = vadd.f32 %v1884_v32, %v1868_v21  ;;  %v6276_v21 = vld [vmem:[#allocation13_spill] sm:$0xff] }
 0x312   : > { %2642 = vmatpush.msra.mxu1 %v4984_v63  ;;  %2809 = vmatpush.msra.mxu2 %v5018_v24  ;;  %v1885_v32 = vmul.f32 2.4801588e-05, %v6276_v21 }
 0x313   : > { %3000 = vmatpush.msra.mxu3 %v5194_v16  ;;  %2539 = vmatpush.msra.mxu0 %v5142_v7  ;;  %v1837_v16 = vmul.f32 0.0013888889, %v5371_v41 }
 0x314   : > { %2644 = vmatpush.msra.mxu1 %v4993_v46  ;;  %2811 = vmatpush.msra.mxu2 %v5036_v35 }
 0x315   : > { %3006 = vmatpush.msra.mxu3 %v5216_v42  ;;  %1981 = vmatmul.f32.gmra.mxu0 %v1980_v60  ;;  %v5385_v42 = vand.u32 4294901760, %v1900_v10  ;;  %v1869_v43 = vadd.f32 %v1853_v31, %v1837_v16  ;;  %v5411_v31 = vld [vmem:[%s4060_s24 + $0x30] sm:$0xff] }
 0x316   : > { %2190 = vmatmul.f32.gmra.mxu1 %v5243_v40  ;;  %2426 = vmatmul.f32.gmra.mxu3 %v1978_v58  ;;  %v1987_v58 = vsub.f32 %v1985_v33, %v1986_v27  ;;  %6277 = vst [vmem:[#allocation28_spill] sm:$0xff] %v5411_v31  ;;  %v1854_v61 = vmul.f32 0.0001984127, %v5411_v31 }
 0x317   : > { %2543 = vmatpush.msra.mxu0 %v5162_v26  ;;  %2646 = vmatpush.msra.mxu1 %v5005_v49  ;;  %v1901_v60 = vadd.f32 %v1885_v32, %v1869_v43  ;;  %v6278_v43 = vld [vmem:[#allocation14_spill] sm:$0xff] }
 0x318   : > { %2813 = vmatpush.msra.mxu2 %v5052_v23  ;;  %3012 = vmatpush.msra.mxu3 %v5231_v45  ;;  %v1993_v45 = vsub.f32 %v1900_v10, %v5385_v42  ;;  %v1886_v32 = vmul.f32 2.4801588e-05, %v6278_v43 }
 0x319   : > { %2310 = vmatmul.f32.gmra.mxu2 %v1977_v5  ;;  %2547 = vmatpush.msra.mxu0 %v5181_v6  ;;  %v1988_v5 = vand.u32 4294901760, %v1987_v58 }
 0x31a   : > { %2648 = vmatpush.msra.mxu1 %v5018_v24  ;;  %2815 = vmatpush.msra.mxu2 %v5071_v50  ;;  %v1994_v10 = vand.u32 4294901760, %v1993_v45 }
 0x31b   : > { %3018 = vmatpush.msra.mxu3 %v5247_v13  ;;  %2551 = vmatpush.msra.mxu0 %v5199_v3  ;;  %v5402_v13 = vsel %vm1790_vm6, 1.0, %v6271_v4 }
 0x31c   : > { %2650 = vmatpush.msra.mxu1 %v5036_v35  ;;  %2817 = vmatpush.msra.mxu2 %v5090_v11  ;;  %v1838_v16 = vmul.f32 0.0013888889, %v5402_v13 }
 0x31d   : > { %3024 = vmatpush.msra.mxu3 %v5263_v19  ;;  %2555 = vmatpush.msra.mxu0 %v5221_v18  ;;  %v1773_v19 = vadd.s32 56, %v4945_v39 }
 0x31e   : > { %2652 = vmatpush.msra.mxu1 %v5052_v23  ;;  %2819 = vmatpush.msra.mxu2 %v5109_v25  ;;  %v1870_v58 = vadd.f32 %v1854_v61, %v1838_v16  ;;  %v1774_v16 = vadd.s32 64, %v4945_v39  ;;  %v6281_v61 = vld [vmem:[#allocation56_spill] sm:$0xff] }
 0x31f   : > { %3030 = vmatpush.msra.mxu3 %v5282_v30  ;;  %1989 = vmatmul.f32.gmra.mxu0 %v1988_v5  ;;  %v5417_v30 = vand.u32 4294901760, %v1901_v60  ;;  %vm1791_vm7 = vcmp.eq.s32.totalorder %v1773_v19, %v4947_v22 }
 0x320   : > { %2194 = vmatmul.f32.gmra.mxu1 %v5310_v38  ;;  %2432 = vmatmul.f32.gmra.mxu3 %v1986_v27  ;;  %v1995_v27 = vsub.f32 %v1993_v45, %v1994_v10  ;;  %v5431_v5 = vsel %vm1791_vm7, 1.0, %v6271_v4  ;;  %v1902_v43 = vadd.f32 %v1886_v32, %v1870_v58  ;;  %vm1792_vm8 = vcmp.eq.s32.totalorder %v1774_v16, %v4947_v22 }
 0x321   : > { %2559 = vmatpush.msra.mxu0 %v5252_v12  ;;  %2654 = vmatpush.msra.mxu1 %v5071_v50  ;;  %v5457_v16 = vsel %vm1792_vm8, 1.0, %v6271_v4 }
 0x322   : > { %2821 = vmatpush.msra.mxu2 %v5128_v59  ;;  %3036 = vmatpush.msra.mxu3 %v5303_v34  ;;  %v6279_v34 = vld [vmem:[#allocation36_spill] sm:$0xff]  ;;  %v1996_v19 = vand.u32 4294901760, %v1995_v27  ;;  %v5450_v58 = vand.u32 4294901760, %v1902_v43 }
 0x323   : > { %2315 = vmatmul.f32.gmra.mxu2 %v1985_v33  ;;  %2563 = vmatpush.msra.mxu0 %v5272_v28  ;;  %v2001_v33 = vsub.f32 %v1901_v60, %v5417_v30  ;;  %v5441_v60 = vld [vmem:[%s4060_s24 + $0x38] sm:$0xff] }
 0x324   : > { %2656 = vmatpush.msra.mxu1 %v5090_v11  ;;  %2823 = vmatpush.msra.mxu2 %v5166_v55  ;;  %6282 = vst [vmem:[#allocation33_spill] sm:$0xff] %v5441_v60  ;;  %v1855_v31 = vmul.f32 0.0001984127, %v5441_v60 }
 0x325   : > { %3042 = vmatpush.msra.mxu3 %v5316_v1  ;;  %2567 = vmatpush.msra.mxu0 %v5289_v29  ;;  %v6280_v1 = vld [vmem:[#allocation25_spill] sm:$0xff]  ;;  %v2002_v27 = vand.u32 4294901760, %v2001_v33 }
 0x326   : > { %2658 = vmatpush.msra.mxu1 %v5109_v25  ;;  %2825 = vmatpush.msra.mxu2 %v6279_v34 }
 0x327   : > { %3048 = vmatpush.msra.mxu3 %v5327_v52  ;;  %2571 = vmatpush.msra.mxu0 %v5300_v17  ;;  %v1839_v52 = vmul.f32 0.0013888889, %v5431_v5  ;;  %v2003_v60 = vsub.f32 %v2001_v33, %v2002_v27 }
 0x328   : > { %2660 = vmatpush.msra.mxu1 %v5128_v59  ;;  %2827 = vmatpush.msra.mxu2 %v6280_v1 }
 0x329   : > { %3054 = vmatpush.msra.mxu3 %v5334_v57  ;;  %3122 = vmatpush.msrb.mxu0 %v6281_v61  ;;  %v6283_v57 = vld [vmem:[#allocation54_spill] sm:$0xff]  ;;  %v1871_v32 = vadd.f32 %v1855_v31, %v1839_v52  ;;  %v6285_v61 = vld [vmem:[#allocation55_spill] sm:$0xff]  ;;  %v1775_v31 = vadd.s32 72, %v4945_v39 }
 0x32a   : > { %1997 = vmatmul.f32.gmra.mxu0 %v1996_v19  ;;  %2198 = vmatmul.f32.gmra.mxu1 %v5350_v51  ;;  %v6284_v19 = vld [vmem:[#allocation15_spill] sm:$0xff] }
 0x32b   : > { %3508 = vmatpush.msrb.mxu3 %v5010_v8  ;;  %2662 = vmatpush.msra.mxu1 %v5166_v55  ;;  %vm1793_vm9 = vcmp.eq.s32.totalorder %v1775_v31, %v4947_v22  ;;  %v1776_v31 = vadd.s32 80, %v4945_v39 }
 0x32c   : > { %2438 = vmatmul.f32.gmra.mxu3 %v1994_v10  ;;  %2829 = vmatpush.msra.mxu2 %v5236_v20  ;;  %v1887_v10 = vmul.f32 2.4801588e-05, %v6284_v19  ;;  %v6287_v19 = vld [vmem:[#allocation27_spill] sm:$0xff] }
 0x32d   : > { %3125 = vmatpush.msrb.mxu0 %v6283_v57  ;;  %3510 = vmatpush.msrb.mxu3 %v4975_v37  ;;  %v1840_v57 = vmul.f32 0.0013888889, %v5457_v16  ;;  %vm1794_vm10 = vcmp.eq.s32.totalorder %v1776_v31, %v4947_v22 }
 0x32e   : > { %3381 = vmatpush.msrb.mxu2 %v5044_v9  ;;  %2664 = vmatpush.msra.mxu1 %v6279_v34  ;;  %v6286_v9 = vld [vmem:[#allocation51_spill] sm:$0xff]  ;;  %v1903_v52 = vadd.f32 %v1887_v10, %v1871_v32  ;;  %v6288_v10 = vld [vmem:[#allocation16_spill] sm:$0xff] }
 0x32f   : > { %2320 = vmatmul.f32.gmra.mxu2 %v1993_v45  ;;  %3128 = vmatpush.msrb.mxu0 %v6285_v61  ;;  %v5464_v45 = vsub.f32 %v1902_v43, %v5450_v58  ;;  %v5471_v61 = vld [vmem:[%s4060_s24 + $0x40] sm:$0xff] }
 0x330   : > { %3385 = vmatpush.msrb.mxu2 %v5029_v14  ;;  %3512 = vmatpush.msrb.mxu3 %v4984_v63  ;;  %v1856_v14 = vmul.f32 0.0001984127, %v5471_v61  ;;  %v5482_v43 = vand.u32 4294901760, %v1903_v52 }
 0x331   : > { %2666 = vmatpush.msra.mxu1 %v6280_v1  ;;  %3131 = vmatpush.msrb.mxu0 %v6286_v9  ;;  %v2004_v9 = vand.u32 4294901760, %v2003_v60  ;;  %v6289_v60 = vld [vmem:[#allocation35_spill] sm:$0xff] }
 0x332   : > { %3389 = vmatpush.msrb.mxu2 %v5047_v15  ;;  %3514 = vmatpush.msrb.mxu3 %v4993_v46  ;;  %v2010_v15 = vand.u32 4294901760, %v5464_v45  ;;  %v1872_v32 = vadd.f32 %v1856_v14, %v1840_v57  ;;  %v6291_v57 = vld [vmem:[#allocation48_spill] sm:$0xff]  ;;  %v5504_v14 = vld [vmem:[%s4060_s24 + $0x48] sm:$0xff] }
 0x333   : > { %2668 = vmatpush.msra.mxu1 %v5236_v20  ;;  %3134 = vmatpush.msrb.mxu0 %v6287_v19  ;;  %v1888_v19 = vmul.f32 2.4801588e-05, %v6288_v10 }
 0x334   : > { %3393 = vmatpush.msrb.mxu2 %v5065_v36  ;;  %3516 = vmatpush.msrb.mxu3 %v5005_v49  ;;  %v6290_v36 = vld [vmem:[#allocation39_spill] sm:$0xff] }
 0x335   : > { %3250 = vmatpush.msrb.mxu1 %v5010_v8  ;;  %2005 = vmatmul.f32.gmra.mxu0 %v2004_v9  ;;  %v5490_v8 = vsel %vm1793_vm9, 1.0, %v6271_v4  ;;  %v1857_v9 = vmul.f32 0.0001984127, %v5504_v14 }
 0x336   : > { %2202 = vmatmul.f32.gmra.mxu1 %v5385_v42  ;;  %2444 = vmatmul.f32.gmra.mxu3 %v2002_v27  ;;  %v2011_v27 = vsub.f32 %v5464_v45, %v2010_v15 }
 0x337   : > { %3137 = vmatpush.msrb.mxu0 %v6289_v60  ;;  %3252 = vmatpush.msrb.mxu1 %v4975_v37  ;;  %v5498_v37 = vsub.f32 %v1903_v52, %v5482_v43  ;;  %v5521_v60 = vsel %vm1794_vm10, 1.0, %v6271_v4 }
 0x338   : > { %3397 = vmatpush.msrb.mxu2 %v5084_v53  ;;  %3518 = vmatpush.msrb.mxu3 %v5018_v24  ;;  %v1904_v53 = vadd.f32 %v1888_v19, %v1872_v32 }
 0x339   : > { %2325 = vmatmul.f32.gmra.mxu2 %v2001_v33  ;;  %3140 = vmatpush.msrb.mxu0 %v6290_v36  ;;  %v1841_v33 = vmul.f32 0.0013888889, %v5490_v8  ;;  %v2018_v52 = vand.u32 4294901760, %v5498_v37 }
 0x33a   : > { %3254 = vmatpush.msrb.mxu1 %v4984_v63  ;;  %3401 = vmatpush.msrb.mxu2 %v5103_v44  ;;  %v6292_v63 = vld [vmem:[#allocation50_spill] sm:$0xff]  ;;  %v2012_v44 = vand.u32 4294901760, %v2011_v27  ;;  %v5515_v32 = vand.u32 4294901760, %v1904_v53 }
 0x33b   : > { %3520 = vmatpush.msrb.mxu3 %v5036_v35  ;;  %3143 = vmatpush.msrb.mxu0 %v6291_v57  ;;  %v2019_v36 = vsub.f32 %v5498_v37, %v2018_v52  ;;  %v1842_v57 = vmul.f32 0.0013888889, %v5521_v60 }
 0x33c   : > { %3256 = vmatpush.msrb.mxu1 %v4993_v46  ;;  %3405 = vmatpush.msrb.mxu2 %v5123_v56  ;;  %v1873_v46 = vadd.f32 %v1857_v9, %v1841_v33  ;;  %v6293_v56 = vld [vmem:[#allocation17_spill] sm:$0xff]  ;;  %v5530_v27 = vsub.f32 %v1904_v53, %v5515_v32  ;;  %v5536_v33 = vld [vmem:[%s4060_s24 + $0x50] sm:$0xff]  ;;  %v6298_v9 = vld [vmem:[#allocation47_spill] sm:$0xff] }
 0x33d   : > { %3522 = vmatpush.msrb.mxu3 %v5052_v23  ;;  %3146 = vmatpush.msrb.mxu0 %v6292_v63  ;;  %v1889_v19 = vmul.f32 2.4801588e-05, %v6293_v56  ;;  %6296 = vst [vmem:[#allocation31_spill] sm:$0xff] %v5536_v33  ;;  %v6299_v63 = vld [vmem:[#allocation18_spill] sm:$0xff] }
 0x33e   : > { %3258 = vmatpush.msrb.mxu1 %v5005_v49  ;;  %3409 = vmatpush.msrb.mxu2 %v5142_v7  ;;  %v1777_v49 = vadd.s32 88, %v4945_v39  ;;  %v6294_v7 = vld [vmem:[#allocation46_spill] sm:$0xff]  ;;  %v2026_v53 = vand.u32 4294901760, %v5530_v27 }
 0x33f   : > { %3524 = vmatpush.msrb.mxu3 %v5071_v50  ;;  %2013 = vmatmul.f32.gmra.mxu0 %v2012_v44  ;;  %v1905_v31 = vadd.f32 %v1889_v19, %v1873_v46  ;;  %v1890_v44 = vmul.f32 2.4801588e-05, %v6299_v63  ;;  %v6326_v63 = vld [vmem:[#allocation32_spill] sm:$0xff] }
 0x340   : > { %2206 = vmatmul.f32.gmra.mxu1 %v5417_v30  ;;  %2450 = vmatmul.f32.gmra.mxu3 %v2010_v15  ;;  %v6295_v15 = vld [vmem:[#allocation49_spill] sm:$0xff]  ;;  %vm1795_vm11 = vcmp.eq.s32.totalorder %v1777_v49, %v4947_v22  ;;  %v5563_v49 = vld [vmem:[%s4060_s24 + $0x58] sm:$0xff] }
 0x341   : > { %3149 = vmatpush.msrb.mxu0 %v6294_v7  ;;  %3260 = vmatpush.msrb.mxu1 %v5018_v24  ;;  %v1858_v24 = vmul.f32 0.0001984127, %v5536_v33  ;;  %v5553_v46 = vsel %vm1795_vm11, 1.0, %v6271_v4  ;;  %6300 = vst [vmem:[#allocation42_spill] sm:$0xff] %v5563_v49  ;;  %v1859_v7 = vmul.f32 0.0001984127, %v5563_v49 }
 0x342   : > { %3413 = vmatpush.msrb.mxu2 %v5162_v26  ;;  %3526 = vmatpush.msrb.mxu3 %v5090_v11  ;;  %v6297_v26 = vld [vmem:[#allocation26_spill] sm:$0xff]  ;;  %v1843_v19 = vmul.f32 0.0013888889, %v5553_v46 }
 0x343   : > { %2330 = vmatmul.f32.gmra.mxu2 %v5464_v45  ;;  %3152 = vmatpush.msrb.mxu0 %v6295_v15  ;;  %v2020_v45 = vand.u32 4294901760, %v2019_v36  ;;  %v6301_v36 = vld [vmem:[#allocation30_spill] sm:$0xff] }
 0x344   : > { %3262 = vmatpush.msrb.mxu1 %v5036_v35  ;;  %3417 = vmatpush.msrb.mxu2 %v5181_v6  ;;  %v5549_v35 = vand.u32 4294901760, %v1905_v31  ;;  %v1874_v6 = vadd.f32 %v1858_v24, %v1842_v57  ;;  %v6303_v57 = vld [vmem:[#allocation19_spill] sm:$0xff] }
 0x345   : > { %3528 = vmatpush.msrb.mxu3 %v5109_v25  ;;  %3155 = vmatpush.msrb.mxu0 %v6297_v26  ;;  %v1891_v24 = vmul.f32 2.4801588e-05, %v6303_v57 }
 0x346   : > { %3264 = vmatpush.msrb.mxu1 %v5052_v23  ;;  %3421 = vmatpush.msrb.mxu2 %v5199_v3  ;;  %v1778_v23 = vadd.s32 96, %v4945_v39  ;;  %v2027_v3 = vsub.f32 %v5530_v27, %v2026_v53 }
 0x347   : > { %3530 = vmatpush.msrb.mxu3 %v5128_v59  ;;  %3158 = vmatpush.msrb.mxu0 %v6298_v9 }
 0x348   : > { %3266 = vmatpush.msrb.mxu1 %v5071_v50  ;;  %3425 = vmatpush.msrb.mxu2 %v5221_v18  ;;  %v2033_v50 = vsub.f32 %v1905_v31, %v5549_v35  ;;  %v1906_v18 = vadd.f32 %v1890_v44, %v1874_v6  ;;  %vm1796_vm12 = vcmp.eq.s32.totalorder %v1778_v23, %v4947_v22  ;;  %v2028_v15 = vand.u32 4294901760, %v2027_v3 }
 0x349   : > { %3532 = vmatpush.msrb.mxu3 %v5166_v55  ;;  %2021 = vmatmul.f32.gmra.mxu0 %v2020_v45 }
 0x34a   : > { %2210 = vmatmul.f32.gmra.mxu1 %v5450_v58  ;;  %2456 = vmatmul.f32.gmra.mxu3 %v2018_v52  ;;  %v6302_v52 = vld [vmem:[#allocation44_spill] sm:$0xff]  ;;  %v5578_v31 = vand.u32 4294901760, %v1906_v18 }
 0x34b   : > { %3161 = vmatpush.msrb.mxu0 %v6301_v36  ;;  %3268 = vmatpush.msrb.mxu1 %v5090_v11  ;;  %v1875_v11 = vadd.f32 %v1859_v7, %v1843_v19  ;;  %v5613_v7 = vld [vmem:[%s4060_s24 + $0x68] sm:$0xff] }
 0x34c   : > { %3429 = vmatpush.msrb.mxu2 %v5252_v12  ;;  %3534 = vmatpush.msrb.mxu3 %v6279_v34  ;;  %v2034_v12 = vand.u32 4294901760, %v2033_v50  ;;  %6308 = vst [vmem:[#allocation37_spill] sm:$0xff] %v5613_v7  ;;  %v1861_v36 = vmul.f32 0.0001984127, %v5613_v7 }
 0x34d   : > { %2335 = vmatmul.f32.gmra.mxu2 %v5498_v37  ;;  %3164 = vmatpush.msrb.mxu0 %v6302_v52  ;;  %v5582_v37 = vsel %vm1796_vm12, 1.0, %v6271_v4  ;;  %v1907_v45 = vadd.f32 %v1891_v24, %v1875_v11  ;;  %v6309_v11 = vld [vmem:[#allocation21_spill] sm:$0xff] }
 0x34e   : > { %3270 = vmatpush.msrb.mxu1 %v5109_v25  ;;  %3433 = vmatpush.msrb.mxu2 %v5272_v28  ;;  %6304 = vst [vmem:[#allocation43_spill] sm:$0xff] %v5582_v37  ;;  %v1779_v25 = vadd.s32 104, %v4945_v39  ;;  %v5592_v28 = vld [vmem:[%s4060_s24 + $0x60] sm:$0xff] }
 0x34f   : > { %3536 = vmatpush.msrb.mxu3 %v6280_v1  ;;  %3167 = vmatpush.msrb.mxu0 %v5267_v62  ;;  %v1844_v62 = vmul.f32 0.0013888889, %v5582_v37  ;;  %6305 = vst [vmem:[#allocation29_spill] sm:$0xff] %v5592_v28  ;;  %v1860_v26 = vmul.f32 0.0001984127, %v5592_v28  ;;  %v5602_v23 = vand.u32 4294901760, %v1907_v45 }
 0x350   : > { %3272 = vmatpush.msrb.mxu1 %v5128_v59  ;;  %3437 = vmatpush.msrb.mxu2 %v5289_v29  ;;  %v2035_v59 = vsub.f32 %v2033_v50, %v2034_v12  ;;  %v2041_v29 = vsub.f32 %v1906_v18, %v5578_v31  ;;  %vm1797_vm13 = vcmp.eq.s32.totalorder %v1779_v25, %v4947_v22  ;;  %v1781_v25 = vadd.s32 120, %v4945_v39 }
 0x351   : > { %3538 = vmatpush.msrb.mxu3 %v5236_v20  ;;  %2029 = vmatmul.f32.gmra.mxu0 %v2028_v15  ;;  %v2049_v3 = vsub.f32 %v1907_v45, %v5602_v23  ;;  %v5628_v45 = vld [vmem:[%s4060_s24 + $0x70] sm:$0xff] }
 0x352   : > { %3274 = vmatpush.msrb.mxu1 %v5166_v55  ;;  %3441 = vmatpush.msrb.mxu2 %v5300_v17  ;;  %v1876_v17 = vadd.f32 %v1860_v26, %v1844_v62  ;;  %v6306_v55 = vld [vmem:[#allocation20_spill] sm:$0xff]  ;;  %v2036_v6 = vand.u32 4294901760, %v2035_v59  ;;  %v2042_v44 = vand.u32 4294901760, %v2041_v29  ;;  %6311 = vst [vmem:[#allocation38_spill] sm:$0xff] %v5628_v45  ;;  %vm1799_vm15 = vcmp.eq.s32.totalorder %v1781_v25, %v4947_v22 }
 0x353   : > { %2214 = vmatmul.f32.gmra.mxu1 %v5482_v43  ;;  %2462 = vmatmul.f32.gmra.mxu3 %v2026_v53  ;;  %v1892_v9 = vmul.f32 2.4801588e-05, %v6306_v55  ;;  %v5606_v53 = vsel %vm1797_vm13, 1.0, %v6271_v4  ;;  %v2050_v52 = vand.u32 4294901760, %v2049_v3  ;;  %v6322_v55 = vld [vmem:[#allocation52_spill] sm:$0xff] }
 0x354   : > { %3276 = vmatpush.msrb.mxu1 %v6279_v34  ;;  %6307 = vst [vmem:[#allocation40_spill] sm:$0xff] %v5606_v53  ;;  %v1780_v34 = vadd.s32 112, %v4945_v39  ;;  %v1845_v19 = vmul.f32 0.0013888889, %v5606_v53  ;;  %v1912_v28 = vmul.f32 0.16666667, %v6322_v55 }
 0x355   : > { %2340 = vmatmul.f32.gmra.mxu2 %v5530_v27  ;;  %v1908_v27 = vadd.f32 %v1892_v9, %v1876_v17  ;;  %v1862_v17 = vmul.f32 0.0001984127, %v5628_v45 }
 0x356   : > { %3278 = vmatpush.msrb.mxu1 %v6280_v1  ;;  %v2043_v1 = vsub.f32 %v2041_v29, %v2042_v44  ;;  %vm1798_vm14 = vcmp.eq.s32.totalorder %v1780_v34, %v4947_v22  ;;  %v1877_v15 = vadd.f32 %v1861_v36, %v1845_v19 }
 0x357   : > { %v5621_v24 = vsel %vm1798_vm14, 1.0, %v6271_v4 }
 0x358   : > { %3280 = vmatpush.msrb.mxu1 %v5236_v20  ;;  %v5617_v20 = vand.u32 4294901760, %v1908_v27  ;;  %v2044_v18 = vand.u32 4294901760, %v2043_v1  ;;  %6310 = vst [vmem:[#allocation41_spill] sm:$0xff] %v5621_v24  ;;  %v1846_v59 = vmul.f32 0.0013888889, %v5621_v24 }
 0x359   : > { %2037 = vmatmul.f32.gmra.mxu0 %v2036_v6 }
 0x35a   : > { %v2057_v62 = vsub.f32 %v1908_v27, %v5617_v20  ;;  %v1878_v34 = vadd.f32 %v1862_v17, %v1846_v59  ;;  %v6312_v27 = vld [vmem:[#allocation22_spill] sm:$0xff]  ;;  %v6315_v59 = vld [vmem:[#allocation23_spill] sm:$0xff] }
 0x35b   : > { %2218 = vmatmul.f32.gmra.mxu1 %v5515_v32  ;;  %2468 = vmatmul.f32.gmra.mxu3 %v2034_v12  ;;  %v1893_v12 = vmul.f32 2.4801588e-05, %v6309_v11  ;;  %v1894_v1 = vmul.f32 2.4801588e-05, %v6312_v27  ;;  %v1895_v17 = vmul.f32 2.4801588e-05, %v6315_v59 }
 0x35c   : > { %v2058_v9 = vand.u32 4294901760, %v2057_v62 }
 0x35d   : > { %2345 = vmatmul.f32.gmra.mxu2 %v2033_v50  ;;  %v2051_v50 = vsub.f32 %v2049_v3, %v2050_v52  ;;  %v1909_v26 = vadd.f32 %v1893_v12, %v1877_v15 }
 0x35e   : > { %v2059_v19 = vsub.f32 %v2057_v62, %v2058_v9 }
 0x35f   : > { %v2052_v6 = vand.u32 4294901760, %v2051_v50  ;;  %v5632_v39 = vand.u32 4294901760, %v1909_v26 }
 0x360   : > { %v2060_v12 = vand.u32 4294901760, %v2059_v19 }
 0x361   : > { %2045 = vmatmul.f32.gmra.mxu0 %v2044_v18  ;;  %v2065_v36 = vsub.f32 %v1909_v26, %v5632_v39  ;;  %v5642_v18 = vld [vmem:[%s4060_s24 + $0x78] sm:$0xff] }
 0x362   : > { %6314 = vst [vmem:[#allocation11_spill] sm:$0xff] %v5642_v18  ;;  %v1863_v15 = vmul.f32 0.0001984127, %v5642_v18 }
 0x363   : > { %2222 = vmatmul.f32.gmra.mxu1 %v5549_v35  ;;  %2474 = vmatmul.f32.gmra.mxu3 %v2042_v44  ;;  %v5636_v44 = vsel %vm1799_vm15, 1.0, %v6271_v4  ;;  %v2066_v25 = vand.u32 4294901760, %v2065_v36 }
 0x364   : > { %6313 = vst [vmem:[#allocation34_spill] sm:$0xff] %v5636_v44  ;;  %v1847_v22 = vmul.f32 0.0013888889, %v5636_v44 }
 0x365   : > { %2350 = vmatmul.f32.gmra.mxu2 %v2041_v29  ;;  %v1910_v29 = vadd.f32 %v1894_v1, %v1878_v34 }
 0x366   : > { %v1879_v4 = vadd.f32 %v1863_v15, %v1847_v22 }
 0x367   : > { %v5645_v50 = vand.u32 4294901760, %v1910_v29 }
 0x369   : > { %2053 = vmatmul.f32.gmra.mxu0 %v2052_v6  ;;  %v2073_v26 = vsub.f32 %v1910_v29, %v5645_v50  ;;  %v1911_v6 = vadd.f32 %v1895_v17, %v1879_v4 }
 0x36b   : > { %2226 = vmatmul.f32.gmra.mxu1 %v5578_v31  ;;  %2480 = vmatmul.f32.gmra.mxu3 %v2050_v52  ;;  %v2067_v52 = vsub.f32 %v2065_v36, %v2066_v25  ;;  %v2074_v1 = vand.u32 4294901760, %v2073_v26  ;;  %v5650_v18 = vand.u32 4294901760, %v1911_v6 }
 0x36d   : > { %2355 = vmatmul.f32.gmra.mxu2 %v2049_v3  ;;  %v2068_v34 = vand.u32 4294901760, %v2067_v52  ;;  %v2075_v3 = vsub.f32 %v2073_v26, %v2074_v1  ;;  %v2081_v19 = vsub.f32 %v1911_v6, %v5650_v18 }
 0x36f   : > { %v2076_v22 = vand.u32 4294901760, %v2075_v3  ;;  %v2082_v15 = vand.u32 4294901760, %v2081_v19 }
 0x371   : > { %2061 = vmatmul.f32.gmra.mxu0 %v2060_v12 }
 0x373   : > { %2230 = vmatmul.f32.gmra.mxu1 %v5602_v23  ;;  %2486 = vmatmul.f32.gmra.mxu3 %v2058_v9 }
 0x375   : > { %2360 = vmatmul.f32.gmra.mxu2 %v2057_v62  ;;  %v2083_v62 = vsub.f32 %v2081_v19, %v2082_v15 }
 0x377   : > { %v2084_v29 = vand.u32 4294901760, %v2083_v62 }
 0x379   : > { %2069 = vmatmul.f32.gmra.mxu0 %v2068_v34 }
 0x37b   : > { %2234 = vmatmul.f32.gmra.mxu1 %v5617_v20  ;;  %2492 = vmatmul.f32.gmra.mxu3 %v2066_v25 }
 0x37d   : > { %2365 = vmatmul.f32.gmra.mxu2 %v2065_v36 }
 0x37f   : > { %v5654_v9 = vpop.f32.mrf.mxu0 }
 0x381   : > { %2077 = vmatmul.f32.gmra.mxu0 %v2076_v22 }
 0x383   : > { %2238 = vmatmul.f32.gmra.mxu1 %v5632_v39  ;;  %2498 = vmatmul.f32.gmra.mxu3 %v2074_v1 }
 0x385   : > { %2370 = vmatmul.f32.gmra.mxu2 %v2073_v26  ;;  %v2415_v59 = vpop.f32.mrf.mxu3 }
 0x388   : > { %v5657_v12 = vpop.f32.mrf.mxu0 }
 0x389   : > { %2085 = vmatmul.f32.gmra.mxu0 %v2084_v29  ;;  %v5660_v25 = vpop.f32.mrf.mxu1 }
 0x38b   : > { %2242 = vmatmul.f32.gmra.mxu1 %v5645_v50  ;;  %2504 = vmatmul.f32.gmra.mxu3 %v2082_v15 }
 0x38d   : > { %2375 = vmatmul.f32.gmra.mxu2 %v2081_v19 }
 0x38f   : > { %v2421_v11 = vpop.f32.mrf.mxu3 }
 0x391   : > { %2573 = vmatmul.f32.vlgmr.msra.gmra.mxu0 %v5144_v54 }
 0x392   : > { %v5664_v36 = vpop.f32.mrf.mxu0 }
 0x393   : > { %2246 = vmatmul.f32.gmra.mxu1 %v5650_v18  ;;  %v5666_v4 = vpop.f32.mrf.mxu1 }
 0x399   : > { %2577 = vmatmul.f32.gmra.mxu0 %v5243_v40  ;;  %v2427_v57 = vpop.f32.mrf.mxu3 }
 0x39b   : > { %2670 = vmatmul.f32.vlgmr.msra.gmra.mxu1 %v5144_v54 }
 0x39c   : > { %v5670_v17 = vpop.f32.mrf.mxu0 }
 0x39d   : > { %v5672_v52 = vpop.f32.mrf.mxu1 }
 0x3a1   : > { %2581 = vmatmul.f32.gmra.mxu0 %v5310_v38 }
 0x3a3   : > { %2674 = vmatmul.f32.gmra.mxu1 %v5243_v40 }
 0x3a7   : > { %v5676_v26 = vpop.f32.mrf.mxu0  ;;  %v5679_v6 = vpop.f32.mrf.mxu1 }
 0x3a9   : > { %2585 = vmatmul.f32.gmra.mxu0 %v5350_v51 }
 0x3ab   : > { %2678 = vmatmul.f32.gmra.mxu1 %v5310_v38 }
 0x3b1   : > { %2589 = vmatmul.f32.gmra.mxu0 %v5385_v42 }
 0x3b2   : > { %v5683_v34 = vpop.f32.mrf.mxu0 }
 0x3b3   : > { %2682 = vmatmul.f32.gmra.mxu1 %v5350_v51  ;;  %v5686_v54 = vpop.f32.mrf.mxu1 }
 0x3b9   : > { %2593 = vmatmul.f32.gmra.mxu0 %v5417_v30 }
 0x3bb   : > { %2686 = vmatmul.f32.gmra.mxu1 %v5385_v42 }
 0x3bc   : > { %v5690_v40 = vpop.f32.mrf.mxu0 }
 0x3bd   : > { %v5692_v1 = vpop.f32.mrf.mxu1 }
 0x3c1   : > { %2597 = vmatmul.f32.gmra.mxu0 %v5450_v58 }
 0x3c3   : > { %2690 = vmatmul.f32.gmra.mxu1 %v5417_v30 }
 0x3c6   : > { %v5696_v38 = vpop.f32.mrf.mxu0 }
 0x3c7   : > { %v5698_v3 = vpop.f32.mrf.mxu1 }
 0x3c9   : > { %2601 = vmatmul.f32.gmra.mxu0 %v5482_v43 }
 0x3cb   : > { %2694 = vmatmul.f32.gmra.mxu1 %v5450_v58 }
 0x3ce   : > { %v5702_v51 = vpop.f32.mrf.mxu0 }
 0x3d0   : > { %v5704_v19 = vpop.f32.mrf.mxu1 }
 0x3d1   : > { %2605 = vmatmul.f32.gmra.mxu0 %v5515_v32 }
 0x3d3   : > { %2698 = vmatmul.f32.gmra.mxu1 %v5482_v43 }
 0x3d6   : > { %v5708_v42 = vpop.f32.mrf.mxu0 }
 0x3d8   : > { %v5710_v22 = vpop.f32.mrf.mxu1 }
 0x3d9   : > { %2609 = vmatmul.f32.gmra.mxu0 %v5549_v35 }
 0x3db   : > { %2702 = vmatmul.f32.gmra.mxu1 %v5515_v32  ;;  %v2301_v32 = vpop.f32.mrf.mxu2 }
 0x3de   : > { %v5714_v30 = vpop.f32.mrf.mxu0 }
 0x3e0   : > { %v5716_v15 = vpop.f32.mrf.mxu1 }
 0x3e1   : > { %2613 = vmatmul.f32.gmra.mxu0 %v5578_v31 }
 0x3e3   : > { %2706 = vmatmul.f32.gmra.mxu1 %v5549_v35  ;;  %v2306_v45 = vpop.f32.mrf.mxu2 }
 0x3e6   : > { %v5720_v58 = vpop.f32.mrf.mxu0 }
 0x3e8   : > { %v5722_v62 = vpop.f32.mrf.mxu1 }
 0x3e9   : > { %2617 = vmatmul.f32.gmra.mxu0 %v5602_v23 }
 0x3eb   : > { %2710 = vmatmul.f32.gmra.mxu1 %v5578_v31 }
 0x3ee   : > { %v5726_v43 = vpop.f32.mrf.mxu0 }
 0x3ef   : > { %6316 = vst [vmem:[#allocation12_spill] sm:$0xff] %v5726_v43 }
 0x3f0   : > { %v5728_v29 = vpop.f32.mrf.mxu1 }
 0x3f1   : > { %2621 = vmatmul.f32.gmra.mxu0 %v5617_v20 }
 0x3f3   : > { %2714 = vmatmul.f32.gmra.mxu1 %v5602_v23  ;;  %v2311_v23 = vpop.f32.mrf.mxu2 }
 0x3f6   : > { %v5732_v27 = vpop.f32.mrf.mxu0 }
 0x3f7   : > { %6317 = vst [vmem:[#allocation13_spill] sm:$0xff] %v5732_v27  ;;  %v6324_v27 = vld [vmem:[#allocation53_spill] sm:$0xff] }
 0x3f8   : > { %v5734_v35 = vpop.f32.mrf.mxu1 }
 0x3f9   : > { %6318 = vst [vmem:[#allocation36_spill] sm:$0xff] %v5734_v35  ;;  %2625 = vmatmul.f32.gmra.mxu0 %v5632_v39 }
 0x3fb   : > { %2718 = vmatmul.f32.gmra.mxu1 %v5617_v20  ;;  %v1967_v20 = vadd.f32 %v5654_v9, %v1912_v28  ;;  %v2316_v49 = vpop.f32.mrf.mxu2 }
 0x3fe   : > { %v5738_v31 = vpop.f32.mrf.mxu0 }
 0x3ff   : > { %6319 = vst [vmem:[#allocation25_spill] sm:$0xff] %v5738_v31  ;;  %v2188_v31 = vadd.f32 %v5660_v25, %v1967_v20  ;;  %v5761_v25 = vld [vmem:[%s4060_s24] sm:$0xff] }
 0x400   : > { %v5740_v7 = vpop.f32.mrf.mxu1  ;;  %6327 = vst [vmem:[#allocation27_spill] sm:$0xff] %v5761_v25 }
 0x401   : > { %6320 = vst [vmem:[#allocation56_spill] sm:$0xff] %v5740_v7  ;;  %2629 = vmatmul.f32.gmra.mxu0 %v5645_v50 }
 0x403   : > { %2722 = vmatmul.f32.gmra.mxu1 %v5632_v39  ;;  %v1913_v39 = vmul.f32 0.16666667, %v6324_v27  ;;  %v2734_v27 = vmul.f32 0.041666668, %v5761_v25 }
 0x405   : > { %v1975_v55 = vadd.f32 %v5657_v12, %v1913_v39  ;;  %v6328_v39 = vld [vmem:[#allocation8_spill] sm:$0xff] }
 0x406   : > { %v5744_v44 = vpop.f32.mrf.mxu0 }
 0x407   : > { %6321 = vst [vmem:[#allocation54_spill] sm:$0xff] %v5744_v44  ;;  %v2302_v44 = vadd.f32 %v2301_v32, %v2188_v31  ;;  %v2192_v35 = vadd.f32 %v5666_v4, %v1975_v55  ;;  %v5764_v31 = vpop.f32.mrf.mxu2  ;;  %v2766_v4 = vmul.f32 0.008333334, %v6328_v39 }
 0x408   : > { %v5747_v24 = vpop.f32.mrf.mxu1 }
 0x409   : > { %6323 = vst [vmem:[#allocation55_spill] sm:$0xff] %v5747_v24  ;;  %2633 = vmatmul.f32.gmra.mxu0 %v5650_v18  ;;  %v2433_v24 = vpop.f32.mrf.mxu3  ;;  %v2416_v28 = vadd.f32 %v2415_v59, %v2302_v44 }
 0x40b   : > { %2726 = vmatmul.f32.gmra.mxu1 %v5645_v50  ;;  %v1914_v50 = vmul.f32 0.16666667, %v6326_v63 }
 0x40d   : > { %v1983_v12 = vadd.f32 %v5664_v36, %v1914_v50 }
 0x40e   : > { %v2574_v7 = vpop.f32.mrf.mxu0 }
 0x40f   : > { %v2575_v43 = vadd.f32 %v2574_v7, %v2416_v28  ;;  %v2196_v44 = vadd.f32 %v5672_v52, %v1983_v12  ;;  %v6329_v28 = vld [vmem:[#allocation45_spill] sm:$0xff] }
 0x410   : > { %v5754_v53 = vpop.f32.mrf.mxu1  ;;  %v1915_v25 = vmul.f32 0.16666667, %v6329_v28  ;;  %v6330_v52 = vld [vmem:[#allocation9_spill] sm:$0xff] }
 0x411   : > { %6325 = vst [vmem:[#allocation51_spill] sm:$0xff] %v5754_v53  ;;  %v2307_v53 = vadd.f32 %v2306_v45, %v2192_v35  ;;  %v5769_v59 = vpop.f32.mrf.mxu3  ;;  %v5775_v45 = vld [vmem:[%s4060_s24 + $0x8] sm:$0xff]  ;;  %v2312_v35 = vadd.f32 %v2311_v23, %v2196_v44 }
 0x413   : > { %2730 = vmatmul.f32.gmra.mxu1 %v5650_v18  ;;  %v2422_v63 = vadd.f32 %v2421_v11, %v2307_v53  ;;  %v1991_v53 = vadd.f32 %v5670_v17, %v1915_v25  ;;  %v5789_v17 = vld [vmem:[%s4060_s24 + $0x10] sm:$0xff] }
 0x414   : > { %v2736_v25 = vmul.f32 0.041666668, %v5789_v17 }
 0x415   : > { %v2200_v12 = vadd.f32 %v5679_v6, %v1991_v53 }
 0x416   : > { %v2578_v9 = vpop.f32.mrf.mxu0 }
 0x417   : > { %v2579_v33 = vadd.f32 %v2578_v9, %v2422_v63 }
 0x418   : > { %v2671_v20 = vpop.f32.mrf.mxu1 }
 0x419   : > { %v2672_v32 = vadd.f32 %v2671_v20, %v2575_v43  ;;  %v2735_v43 = vmul.f32 0.041666668, %v5775_v45  ;;  %v2767_v20 = vmul.f32 0.008333334, %v6330_v52  ;;  %v5786_v63 = vpop.f32.mrf.mxu3 }
 0x41b   : > { %v2750_v18 = vadd.f32 %v2734_v27, %v2672_v32  ;;  %v5782_v32 = vpop.f32.mrf.mxu2 }
 0x41d   : > { %v2782_v7 = vadd.f32 %v2766_v4, %v2750_v18  ;;  %v2428_v18 = vadd.f32 %v2427_v57, %v2312_v35 }
 0x41e   : > { %v2582_v55 = vpop.f32.mrf.mxu0 }
 0x41f   : > { %v5772_v37 = vand.u32 4294901760, %v2782_v7 }
 0x420   : > { %v2675_v36 = vpop.f32.mrf.mxu1 }
 0x421   : > { %v2831_v50 = vsub.f32 %v2782_v7, %v5772_v37  ;;  %v2676_v27 = vadd.f32 %v2675_v36, %v2579_v33  ;;  %3056 = vmatmul.f32.vlgmr.msra.gmra.mxu3 %v5772_v37  ;;  %v1916_v33 = vmul.f32 0.16666667, %v5337_v0  ;;  %v2583_v7 = vadd.f32 %v2582_v55, %v2428_v18  ;;  %v6331_v55 = vld [vmem:[#allocation10_spill] sm:$0xff] }
 0x423   : > { %v2751_v11 = vadd.f32 %v2735_v43, %v2676_v27  ;;  %3170 = vmatmul.f32.vlgmr.msrb.gmra.mxu0 %v2831_v50  ;;  %v2832_v9 = vand.u32 4294901760, %v2831_v50  ;;  %v2317_v27 = vadd.f32 %v2316_v49, %v2200_v12  ;;  %v1999_v57 = vadd.f32 %v5676_v26, %v1916_v33  ;;  %v2331_v18 = vpop.f32.mrf.mxu2 }
 0x424   : > { %v1917_v12 = vmul.f32 0.16666667, %v5371_v41 }
 0x425   : > { %v2783_v4 = vadd.f32 %v2767_v20, %v2751_v11  ;;  %3284 = vmatmul.f32.vlgmr.msrb.gmra.mxu1 %v2832_v9  ;;  %v2833_v23 = vsub.f32 %v2831_v50, %v2832_v9  ;;  %v2768_v50 = vmul.f32 0.008333334, %v6331_v55  ;;  %v2204_v11 = vadd.f32 %v5686_v54, %v1999_v57  ;;  %v2451_v54 = vpop.f32.mrf.mxu3 }
 0x426   : > { %v2586_v44 = vpop.f32.mrf.mxu0  ;;  %v2434_v20 = vadd.f32 %v2433_v24, %v2317_v27  ;;  %v2007_v27 = vadd.f32 %v5683_v34, %v1917_v12 }
 0x427   : > { %v2834_v28 = vand.u32 4294901760, %v2833_v23  ;;  %v5792_v43 = vand.u32 4294901760, %v2783_v4 }
 0x428   : > { %v2679_v36 = vpop.f32.mrf.mxu1  ;;  %v2208_v57 = vadd.f32 %v5692_v1, %v2007_v27 }
 0x429   : > { %v2680_v6 = vadd.f32 %v2679_v36, %v2583_v7  ;;  %2835 = vmatmul.f32.vlgmr.msra.gmra.mxu2 %v2834_v28  ;;  %3060 = vmatmul.f32.gmra.mxu3 %v5792_v43  ;;  %v2839_v0 = vsub.f32 %v2783_v4, %v5792_v43  ;;  %v2587_v7 = vadd.f32 %v2586_v44, %v2434_v20  ;;  %v5801_v28 = vld [vmem:[%s4060_s24 + $0x18] sm:$0xff] }
 0x42a   : > { %v2737_v26 = vmul.f32 0.041666668, %v5801_v28  ;;  %v2322_v36 = vadd.f32 %v5764_v31, %v2204_v11 }
 0x42b   : > { %v2752_v35 = vadd.f32 %v2736_v25, %v2680_v6  ;;  %3175 = vmatmul.f32.gmra.mxu0 %v2839_v0  ;;  %v2840_v53 = vand.u32 4294901760, %v2839_v0  ;;  %v2769_v6 = vmul.f32 0.008333334, %v6273_v47  ;;  %v2336_v12 = vpop.f32.mrf.mxu2 }
 0x42d   : > { %v2784_v9 = vadd.f32 %v2768_v50, %v2752_v35  ;;  %3290 = vmatmul.f32.gmra.mxu1 %v2840_v53  ;;  %v2841_v49 = vsub.f32 %v2839_v0, %v2840_v53  ;;  %v2440_v35 = vadd.f32 %v5769_v59, %v2322_v36  ;;  %v1918_v53 = vmul.f32 0.16666667, %v5402_v13  ;;  %v2457_v13 = vpop.f32.mrf.mxu3 }
 0x42e   : > { %v2590_v23 = vpop.f32.mrf.mxu0 }
 0x42f   : > { %v2842_v4 = vand.u32 4294901760, %v2841_v49  ;;  %v5804_v33 = vand.u32 4294901760, %v2784_v9  ;;  %v2591_v20 = vadd.f32 %v2590_v23, %v2440_v35  ;;  %v6332_v49 = vld [vmem:[#allocation24_spill] sm:$0xff]  ;;  %v2015_v59 = vadd.f32 %v5690_v40, %v1918_v53 }
 0x430   : > { %v2683_v25 = vpop.f32.mrf.mxu1  ;;  %v2770_v23 = vmul.f32 0.008333334, %v6275_v2  ;;  %v2739_v35 = vmul.f32 0.041666668, %v5379_v48 }
 0x431   : > { %v2684_v24 = vadd.f32 %v2683_v25, %v2587_v7  ;;  %2843 = vmatmul.f32.gmra.mxu2 %v2842_v4  ;;  %3064 = vmatmul.f32.gmra.mxu3 %v5804_v33  ;;  %v2847_v41 = vsub.f32 %v2784_v9, %v5804_v33  ;;  %v2738_v9 = vmul.f32 0.041666668, %v6332_v49  ;;  %v2327_v4 = vadd.f32 %v5782_v32, %v2208_v57 }
 0x433   : > { %v2753_v44 = vadd.f32 %v2737_v26, %v2684_v24  ;;  %3180 = vmatmul.f32.gmra.mxu0 %v2847_v41  ;;  %v2848_v0 = vand.u32 4294901760, %v2847_v41  ;;  %v2446_v27 = vadd.f32 %v5786_v63, %v2327_v4  ;;  %v2341_v63 = vpop.f32.mrf.mxu2 }
 0x435   : > { %v2785_v50 = vadd.f32 %v2769_v6, %v2753_v44  ;;  %3296 = vmatmul.f32.gmra.mxu1 %v2848_v0  ;;  %v2849_v31 = vsub.f32 %v2847_v41, %v2848_v0  ;;  %v2212_v41 = vadd.f32 %v5698_v3, %v2015_v59  ;;  %v1919_v6 = vmul.f32 0.16666667, %v5431_v5 }
 0x436   : > { %v2594_v11 = vpop.f32.mrf.mxu0  ;;  %v2771_v5 = vmul.f32 0.008333334, %v6276_v21 }
 0x437   : > { %v2850_v7 = vand.u32 4294901760, %v2849_v31  ;;  %v5815_v34 = vand.u32 4294901760, %v2785_v50  ;;  %v2595_v57 = vadd.f32 %v2594_v11, %v2446_v27  ;;  %v2332_v53 = vadd.f32 %v2331_v18, %v2212_v41 }
 0x438   : > { %v2687_v26 = vpop.f32.mrf.mxu1  ;;  %v2023_v49 = vadd.f32 %v5696_v38, %v1919_v6  ;;  %v6334_v6 = vld [vmem:[#allocation14_spill] sm:$0xff] }
 0x439   : > { %v2688_v25 = vadd.f32 %v2687_v26, %v2591_v20  ;;  %2851 = vmatmul.f32.gmra.mxu2 %v2850_v7  ;;  %3068 = vmatmul.f32.gmra.mxu3 %v5815_v34  ;;  %v2855_v1 = vsub.f32 %v2785_v50, %v5815_v34  ;;  %v2463_v7 = vpop.f32.mrf.mxu3  ;;  %v2452_v26 = vadd.f32 %v2451_v54, %v2332_v53  ;;  %v1921_v53 = vmul.f32 0.16666667, %v5490_v8  ;;  %v6336_v8 = vld [vmem:[#allocation15_spill] sm:$0xff] }
 0x43a   : > { %v2216_v48 = vadd.f32 %v5704_v19, %v2023_v49 }
 0x43b   : > { %v2754_v36 = vadd.f32 %v2738_v9, %v2688_v25  ;;  %3185 = vmatmul.f32.gmra.mxu0 %v2855_v1  ;;  %v2856_v24 = vand.u32 4294901760, %v2855_v1  ;;  %v1920_v25 = vmul.f32 0.16666667, %v5457_v16  ;;  %v2772_v16 = vmul.f32 0.008333334, %v6334_v6 }
 0x43c   : > { %v2337_v27 = vadd.f32 %v2336_v12, %v2216_v48 }
 0x43d   : > { %v2786_v44 = vadd.f32 %v2770_v23, %v2754_v36  ;;  %3302 = vmatmul.f32.gmra.mxu1 %v2856_v24  ;;  %v2857_v32 = vsub.f32 %v2855_v1, %v2856_v24  ;;  %v6333_v36 = vld [vmem:[#allocation28_spill] sm:$0xff]  ;;  %v2031_v54 = vadd.f32 %v5702_v51, %v1920_v25  ;;  %v2773_v25 = vmul.f32 0.008333334, %v6336_v8 }
 0x43e   : > { %v2598_v0 = vpop.f32.mrf.mxu0  ;;  %v2740_v23 = vmul.f32 0.041666668, %v6333_v36 }
 0x43f   : > { %v2858_v40 = vand.u32 4294901760, %v2857_v32  ;;  %v5826_v50 = vand.u32 4294901760, %v2786_v44  ;;  %v2599_v59 = vadd.f32 %v2598_v0, %v2452_v26 }
 0x440   : > { %v2691_v31 = vpop.f32.mrf.mxu1 }
 0x441   : > { %v2692_v20 = vadd.f32 %v2691_v31, %v2595_v57  ;;  %2859 = vmatmul.f32.gmra.mxu2 %v2858_v40  ;;  %3072 = vmatmul.f32.gmra.mxu3 %v5826_v50  ;;  %v2863_v3 = vsub.f32 %v2786_v44, %v5826_v50  ;;  %v2346_v57 = vpop.f32.mrf.mxu2  ;;  %v2458_v40 = vadd.f32 %v2457_v13, %v2337_v27 }
 0x442   : > { %v2039_v13 = vadd.f32 %v5708_v42, %v1921_v53 }
 0x443   : > { %v2755_v9 = vadd.f32 %v2739_v35, %v2692_v20  ;;  %3190 = vmatmul.f32.gmra.mxu0 %v2863_v3  ;;  %v2864_v11 = vand.u32 4294901760, %v2863_v3  ;;  %v2220_v35 = vadd.f32 %v5710_v22, %v2031_v54 }
 0x445   : > { %v2787_v4 = vadd.f32 %v2771_v5, %v2755_v9  ;;  %3308 = vmatmul.f32.gmra.mxu1 %v2864_v11  ;;  %v2865_v18 = vsub.f32 %v2863_v3, %v2864_v11  ;;  %v2469_v3 = vpop.f32.mrf.mxu3  ;;  %v6335_v9 = vld [vmem:[#allocation33_spill] sm:$0xff]  ;;  %v2342_v26 = vadd.f32 %v2341_v63, %v2220_v35  ;;  %v1922_v63 = vmul.f32 0.16666667, %v5521_v60 }
 0x446   : > { %v2602_v1 = vpop.f32.mrf.mxu0  ;;  %v2741_v5 = vmul.f32 0.041666668, %v6335_v9 }
 0x447   : > { %v2866_v24 = vand.u32 4294901760, %v2865_v18  ;;  %v5835_v38 = vand.u32 4294901760, %v2787_v4  ;;  %v2603_v49 = vadd.f32 %v2602_v1, %v2458_v40  ;;  %v2464_v36 = vadd.f32 %v2463_v7, %v2342_v26 }
 0x448   : > { %v2695_v41 = vpop.f32.mrf.mxu1  ;;  %v2047_v7 = vadd.f32 %v5714_v30, %v1922_v63  ;;  %v2774_v40 = vmul.f32 0.008333334, %v6288_v10 }
 0x449   : > { %v2696_v44 = vadd.f32 %v2695_v41, %v2599_v59  ;;  %2867 = vmatmul.f32.gmra.mxu2 %v2866_v24  ;;  %3076 = vmatmul.f32.gmra.mxu3 %v5835_v38  ;;  %v2871_v19 = vsub.f32 %v2787_v4, %v5835_v38  ;;  %v2224_v59 = vadd.f32 %v5716_v15, %v2039_v13  ;;  %v2351_v41 = vpop.f32.mrf.mxu2 }
 0x44b   : > { %v2756_v32 = vadd.f32 %v2740_v23, %v2696_v44  ;;  %3195 = vmatmul.f32.gmra.mxu0 %v2871_v19  ;;  %v2872_v0 = vand.u32 4294901760, %v2871_v19 }
 0x44d   : > { %v2788_v31 = vadd.f32 %v2772_v16, %v2756_v32  ;;  %3314 = vmatmul.f32.gmra.mxu1 %v2872_v0  ;;  %v2873_v12 = vsub.f32 %v2871_v19, %v2872_v0  ;;  %v2742_v19 = vmul.f32 0.041666668, %v5471_v61  ;;  %v2347_v16 = vadd.f32 %v2346_v57, %v2224_v59  ;;  %v2475_v0 = vpop.f32.mrf.mxu3 }
 0x44e   : > { %v2606_v20 = vpop.f32.mrf.mxu0  ;;  %v2228_v61 = vadd.f32 %v5722_v62, %v2047_v7 }
 0x44f   : > { %v2874_v51 = vand.u32 4294901760, %v2873_v12  ;;  %v5844_v11 = vand.u32 4294901760, %v2788_v31  ;;  %v2607_v44 = vadd.f32 %v2606_v20, %v2464_v36  ;;  %v2470_v12 = vadd.f32 %v2469_v3, %v2347_v16 }
 0x450   : > { %v2699_v48 = vpop.f32.mrf.mxu1  ;;  %v1923_v20 = vmul.f32 0.16666667, %v5553_v46 }
 0x451   : > { %v2700_v4 = vadd.f32 %v2699_v48, %v2603_v49  ;;  %2875 = vmatmul.f32.gmra.mxu2 %v2874_v51  ;;  %3080 = vmatmul.f32.gmra.mxu3 %v5844_v11  ;;  %v2879_v22 = vsub.f32 %v2788_v31, %v5844_v11  ;;  %v2743_v51 = vmul.f32 0.041666668, %v5504_v14  ;;  %v2356_v48 = vpop.f32.mrf.mxu2 }
 0x452   : > { %v2055_v3 = vadd.f32 %v5720_v58, %v1923_v20 }
 0x453   : > { %v2757_v18 = vadd.f32 %v2741_v5, %v2700_v4  ;;  %3200 = vmatmul.f32.gmra.mxu0 %v2879_v22  ;;  %v2880_v1 = vand.u32 4294901760, %v2879_v22  ;;  %v2352_v4 = vadd.f32 %v2351_v41, %v2228_v61 }
 0x454   : > { %v2232_v14 = vadd.f32 %v5728_v29, %v2055_v3 }
 0x455   : > { %v2789_v23 = vadd.f32 %v2773_v25, %v2757_v18  ;;  %3320 = vmatmul.f32.gmra.mxu1 %v2880_v1  ;;  %v2881_v24 = vsub.f32 %v2879_v22, %v2880_v1  ;;  %v2481_v13 = vpop.f32.mrf.mxu3  ;;  %v2775_v18 = vmul.f32 0.008333334, %v6293_v56  ;;  %v2476_v1 = vadd.f32 %v2475_v0, %v2352_v4  ;;  %v6343_v4 = vld [vmem:[#allocation42_spill] sm:$0xff] }
 0x456   : > { %v2610_v27 = vpop.f32.mrf.mxu0 }
 0x457   : > { %v2882_v54 = vand.u32 4294901760, %v2881_v24  ;;  %v5853_v42 = vand.u32 4294901760, %v2789_v23  ;;  %v2611_v9 = vadd.f32 %v2610_v27, %v2470_v12  ;;  %v6341_v12 = vld [vmem:[#allocation36_spill] sm:$0xff] }
 0x458   : > { %v2703_v32 = vpop.f32.mrf.mxu1 }
 0x459   : > { %v2704_v35 = vadd.f32 %v2703_v32, %v2607_v44  ;;  %2883 = vmatmul.f32.gmra.mxu2 %v2882_v54  ;;  %3084 = vmatmul.f32.gmra.mxu3 %v5853_v42  ;;  %v2887_v15 = vsub.f32 %v2789_v23, %v5853_v42  ;;  %v6337_v23 = vld [vmem:[#allocation43_spill] sm:$0xff]  ;;  %v2357_v32 = vadd.f32 %v2356_v48, %v2232_v14  ;;  %v2361_v0 = vpop.f32.mrf.mxu2 }
 0x45a   : > { %v1924_v24 = vmul.f32 0.16666667, %v6337_v23  ;;  %v6338_v44 = vld [vmem:[#allocation31_spill] sm:$0xff] }
 0x45b   : > { %v2758_v60 = vadd.f32 %v2742_v19, %v2704_v35  ;;  %3205 = vmatmul.f32.gmra.mxu0 %v2887_v15  ;;  %v2888_v31 = vand.u32 4294901760, %v2887_v15  ;;  %v2744_v58 = vmul.f32 0.041666668, %v6338_v44  ;;  %v6339_v35 = vld [vmem:[#allocation12_spill] sm:$0xff] }
 0x45d   : > { %v2790_v53 = vadd.f32 %v2774_v40, %v2758_v60  ;;  %3326 = vmatmul.f32.gmra.mxu1 %v2888_v31  ;;  %v2889_v57 = vsub.f32 %v2887_v15, %v2888_v31  ;;  %v2063_v15 = vadd.f32 %v6339_v35, %v1924_v24  ;;  %v6340_v60 = vld [vmem:[#allocation18_spill] sm:$0xff]  ;;  %v2487_v61 = vpop.f32.mrf.mxu3  ;;  %v6348_v35 = vld [vmem:[#allocation29_spill] sm:$0xff] }
 0x45e   : > { %v2614_v49 = vpop.f32.mrf.mxu0  ;;  %v2776_v40 = vmul.f32 0.008333334, %v6340_v60 }
 0x45f   : > { %v5861_v5 = vand.u32 4294901760, %v2790_v53  ;;  %v2890_v30 = vand.u32 4294901760, %v2889_v57  ;;  %v2615_v41 = vadd.f32 %v2614_v49, %v2476_v1  ;;  %v2482_v57 = vadd.f32 %v2481_v13, %v2357_v32 }
 0x460   : > { %v2707_v26 = vpop.f32.mrf.mxu1 }
 0x461   : > { %v2708_v22 = vadd.f32 %v2707_v26, %v2611_v9  ;;  %2891 = vmatmul.f32.gmra.mxu2 %v2890_v30  ;;  %3088 = vmatmul.f32.gmra.mxu3 %v5861_v5  ;;  %v2895_v62 = vsub.f32 %v2790_v53, %v5861_v5  ;;  %v2236_v53 = vadd.f32 %v6341_v12, %v2063_v15  ;;  %v6342_v9 = vld [vmem:[#allocation40_spill] sm:$0xff]  ;;  %v2366_v24 = vpop.f32.mrf.mxu2  ;;  %v2746_v15 = vmul.f32 0.041666668, %v6348_v35 }
 0x463   : > { %v2759_v46 = vadd.f32 %v2743_v51, %v2708_v22  ;;  %3210 = vmatmul.f32.gmra.mxu0 %v2895_v62  ;;  %v2896_v25 = vand.u32 4294901760, %v2895_v62  ;;  %v1925_v51 = vmul.f32 0.16666667, %v6342_v9  ;;  %v2745_v22 = vmul.f32 0.041666668, %v6343_v4  ;;  %v6350_v9 = vld [vmem:[#allocation20_spill] sm:$0xff] }
 0x465   : > { %v2791_v59 = vadd.f32 %v2775_v18, %v2759_v46  ;;  %3332 = vmatmul.f32.gmra.mxu1 %v2896_v25  ;;  %v2897_v36 = vsub.f32 %v2895_v62, %v2896_v25  ;;  %v2362_v46 = vadd.f32 %v2361_v0, %v2236_v53  ;;  %v6344_v25 = vld [vmem:[#allocation13_spill] sm:$0xff] }
 0x466   : > { %v2618_v63 = vpop.f32.mrf.mxu0  ;;  %v2071_v14 = vadd.f32 %v6344_v25, %v1925_v51  ;;  %v2778_v51 = vmul.f32 0.008333334, %v6350_v9 }
 0x467   : > { %v5870_v27 = vand.u32 4294901760, %v2791_v59  ;;  %v2898_v19 = vand.u32 4294901760, %v2897_v36  ;;  %v2619_v48 = vadd.f32 %v2618_v63, %v2482_v57  ;;  %v6346_v63 = vld [vmem:[#allocation56_spill] sm:$0xff]  ;;  %v2488_v44 = vadd.f32 %v2487_v61, %v2362_v46  ;;  %v6349_v57 = vld [vmem:[#allocation25_spill] sm:$0xff]  ;;  %v6352_v46 = vld [vmem:[#allocation34_spill] sm:$0xff] }
 0x468   : > { %v2711_v54 = vpop.f32.mrf.mxu1 }
 0x469   : > { %v2712_v16 = vadd.f32 %v2711_v54, %v2615_v41  ;;  %2899 = vmatmul.f32.gmra.mxu2 %v2898_v19  ;;  %3092 = vmatmul.f32.gmra.mxu3 %v5870_v27  ;;  %v2903_v29 = vsub.f32 %v2791_v59, %v5870_v27  ;;  %v6345_v59 = vld [vmem:[#allocation19_spill] sm:$0xff]  ;;  %v2240_v41 = vadd.f32 %v6346_v63, %v2071_v14  ;;  %v6347_v54 = vld [vmem:[#allocation41_spill] sm:$0xff] }
 0x46a   : > { %v2777_v36 = vmul.f32 0.008333334, %v6345_v59  ;;  %v1926_v32 = vmul.f32 0.16666667, %v6347_v54  ;;  %v6354_v54 = vld [vmem:[#allocation54_spill] sm:$0xff] }
 0x46b   : > { %v2760_v7 = vadd.f32 %v2744_v58, %v2712_v16  ;;  %3215 = vmatmul.f32.gmra.mxu0 %v2903_v29  ;;  %v2904_v31 = vand.u32 4294901760, %v2903_v29  ;;  %v2493_v16 = vpop.f32.mrf.mxu3  ;;  %v2367_v12 = vadd.f32 %v2366_v24, %v2240_v41 }
 0x46d   : > { %v2792_v20 = vadd.f32 %v2776_v40, %v2760_v7  ;;  %3338 = vmatmul.f32.gmra.mxu1 %v2904_v31  ;;  %v2905_v49 = vsub.f32 %v2903_v29, %v2904_v31 }
 0x46e   : > { %v2622_v30 = vpop.f32.mrf.mxu0 }
 0x46f   : > { %v5879_v26 = vand.u32 4294901760, %v2792_v20  ;;  %v2906_v62 = vand.u32 4294901760, %v2905_v49  ;;  %v2623_v29 = vadd.f32 %v2622_v30, %v2488_v44 }
 0x470   : > { %v2715_v3 = vpop.f32.mrf.mxu1 }
 0x471   : > { %v2716_v18 = vadd.f32 %v2715_v3, %v2619_v48  ;;  %2907 = vmatmul.f32.gmra.mxu2 %v2906_v62  ;;  %3096 = vmatmul.f32.gmra.mxu3 %v5879_v26  ;;  %v2911_v13 = vsub.f32 %v2792_v20, %v5879_v26  ;;  %v2079_v20 = vadd.f32 %v6349_v57, %v1926_v32  ;;  %v6351_v48 = vld [vmem:[#allocation55_spill] sm:$0xff] }
 0x473   : > { %v2761_v1 = vadd.f32 %v2745_v22, %v2716_v18  ;;  %3220 = vmatmul.f32.gmra.mxu0 %v2911_v13  ;;  %v2912_v23 = vand.u32 4294901760, %v2911_v13  ;;  %v2244_v4 = vadd.f32 %v6351_v48, %v2079_v20  ;;  %v2494_v22 = vadd.f32 %v2493_v16, %v2367_v12  ;;  %v6357_v20 = vld [vmem:[#allocation38_spill] sm:$0xff] }
 0x474   : > { %v1927_v18 = vmul.f32 0.16666667, %v6352_v46  ;;  %v6358_v46 = vld [vmem:[#allocation22_spill] sm:$0xff] }
 0x475   : > { %v2793_v58 = vadd.f32 %v2777_v36, %v2761_v1  ;;  %3344 = vmatmul.f32.gmra.mxu1 %v2912_v23  ;;  %v2913_v19 = vsub.f32 %v2911_v13, %v2912_v23  ;;  %v2371_v13 = vpop.f32.mrf.mxu2  ;;  %v6353_v1 = vld [vmem:[#allocation37_spill] sm:$0xff] }
 0x476   : > { %v2626_v40 = vpop.f32.mrf.mxu0  ;;  %v2747_v36 = vmul.f32 0.041666668, %v6353_v1  ;;  %v2372_v63 = vadd.f32 %v2371_v13, %v2244_v4  ;;  %v2087_v32 = vadd.f32 %v6354_v54, %v1927_v18  ;;  %v2780_v18 = vmul.f32 0.008333334, %v6358_v46 }
 0x477   : > { %v5888_v0 = vand.u32 4294901760, %v2793_v58  ;;  %v2914_v7 = vand.u32 4294901760, %v2913_v19  ;;  %v2627_v25 = vadd.f32 %v2626_v40, %v2494_v22 }
 0x478   : > { %v2719_v31 = vpop.f32.mrf.mxu1 }
 0x479   : > { %v2720_v53 = vadd.f32 %v2719_v31, %v2623_v29  ;;  %2915 = vmatmul.f32.gmra.mxu2 %v2914_v7  ;;  %3100 = vmatmul.f32.gmra.mxu3 %v5888_v0  ;;  %v2919_v61 = vsub.f32 %v2793_v58, %v5888_v0  ;;  %v2499_v58 = vpop.f32.mrf.mxu3  ;;  %v6355_v29 = vld [vmem:[#allocation21_spill] sm:$0xff]  ;;  %v6356_v7 = vld [vmem:[#allocation51_spill] sm:$0xff] }
 0x47a   : > { %v2779_v35 = vmul.f32 0.008333334, %v6355_v29  ;;  %v2248_v40 = vadd.f32 %v6356_v7, %v2087_v32  ;;  %v2500_v31 = vadd.f32 %v2499_v58, %v2372_v63 }
 0x47b   : > { %v2762_v49 = vadd.f32 %v2746_v15, %v2720_v53  ;;  %3225 = vmatmul.f32.gmra.mxu0 %v2919_v61  ;;  %v2920_v30 = vand.u32 4294901760, %v2919_v61 }
 0x47d   : > { %v2794_v62 = vadd.f32 %v2778_v51, %v2762_v49  ;;  %3350 = vmatmul.f32.gmra.mxu1 %v2920_v30  ;;  %v2921_v3 = vsub.f32 %v2919_v61, %v2920_v30  ;;  %v2748_v49 = vmul.f32 0.041666668, %v6357_v20  ;;  %v2376_v30 = vpop.f32.mrf.mxu2 }
 0x47e   : > { %v2630_v19 = vpop.f32.mrf.mxu0  ;;  %v2377_v4 = vadd.f32 %v2376_v30, %v2248_v40 }
 0x47f   : > { %v5897_v14 = vand.u32 4294901760, %v2794_v62  ;;  %v2922_v23 = vand.u32 4294901760, %v2921_v3  ;;  %v2631_v61 = vadd.f32 %v2630_v19, %v2500_v31 }
 0x480   : > { %v2723_v24 = vpop.f32.mrf.mxu1 }
 0x481   : > { %v2724_v41 = vadd.f32 %v2723_v24, %v2627_v25  ;;  %2923 = vmatmul.f32.gmra.mxu2 %v2922_v23  ;;  %3104 = vmatmul.f32.gmra.mxu3 %v5897_v14  ;;  %v2927_v44 = vsub.f32 %v2794_v62, %v5897_v14  ;;  %v2505_v25 = vpop.f32.mrf.mxu3 }
 0x483   : > { %v2763_v16 = vadd.f32 %v2747_v36, %v2724_v41  ;;  %3230 = vmatmul.f32.gmra.mxu0 %v2927_v44  ;;  %v2928_v15 = vand.u32 4294901760, %v2927_v44  ;;  %v2506_v36 = vadd.f32 %v2505_v25, %v2377_v4 }
 0x485   : > { %v2795_v12 = vadd.f32 %v2779_v35, %v2763_v16  ;;  %3356 = vmatmul.f32.gmra.mxu1 %v2928_v15  ;;  %v2929_v53 = vsub.f32 %v2927_v44, %v2928_v15  ;;  %v6359_v44 = vld [vmem:[#allocation11_spill] sm:$0xff] }
 0x486   : > { %v2634_v1 = vpop.f32.mrf.mxu0  ;;  %v2749_v58 = vmul.f32 0.041666668, %v6359_v44  ;;  %v6360_v15 = vld [vmem:[#allocation23_spill] sm:$0xff] }
 0x487   : > { %v5905_v57 = vand.u32 4294901760, %v2795_v12  ;;  %v2930_v51 = vand.u32 4294901760, %v2929_v53  ;;  %v2635_v63 = vadd.f32 %v2634_v1, %v2506_v36  ;;  %v2781_v7 = vmul.f32 0.008333334, %v6360_v15 }
 0x488   : > { %v2727_v48 = vpop.f32.mrf.mxu1 }
 0x489   : > { %v2728_v22 = vadd.f32 %v2727_v48, %v2631_v61  ;;  %2931 = vmatmul.f32.gmra.mxu2 %v2930_v51  ;;  %3108 = vmatmul.f32.gmra.mxu3 %v5905_v57  ;;  %v2935_v62 = vsub.f32 %v2795_v12, %v5905_v57 }
 0x48b   : > { %v2764_v3 = vadd.f32 %v2748_v49, %v2728_v22  ;;  %3235 = vmatmul.f32.gmra.mxu0 %v2935_v62  ;;  %v2936_v13 = vand.u32 4294901760, %v2935_v62 }
 0x48d   : > { %v2796_v23 = vadd.f32 %v2780_v18, %v2764_v3  ;;  %3362 = vmatmul.f32.gmra.mxu1 %v2936_v13  ;;  %v2937_v24 = vsub.f32 %v2935_v62, %v2936_v13  ;;  %v6361_v62 = vld [vmem:[#allocation27_spill] sm:$0xff] }
 0x48f   : > { %v5911_v41 = vand.u32 4294901760, %v2796_v23  ;;  %v2938_v19 = vand.u32 4294901760, %v2937_v24 }
 0x490   : > { %v2731_v54 = vpop.f32.mrf.mxu1 }
 0x491   : > { %v2732_v32 = vadd.f32 %v2731_v54, %v2635_v63  ;;  %2939 = vmatmul.f32.gmra.mxu2 %v2938_v19  ;;  %3112 = vmatmul.f32.gmra.mxu3 %v5911_v41  ;;  %v2943_v16 = vsub.f32 %v2796_v23, %v5911_v41  ;;  %v3844_v19 = vld [vmem:[%s4060_s24 + $0x20] sm:$0xff] }
 0x493   : > { %v2765_v35 = vadd.f32 %v2749_v58, %v2732_v32  ;;  %3240 = vmatmul.f32.gmra.mxu0 %v2943_v16  ;;  %v2944_v40 = vand.u32 4294901760, %v2943_v16 }
 0x495   : > { %v2797_v31 = vadd.f32 %v2781_v7, %v2765_v35  ;;  %3368 = vmatmul.f32.gmra.mxu1 %v2944_v40  ;;  %v2945_v12 = vsub.f32 %v2943_v16, %v2944_v40  ;;  %v3845_v16 = vld [vmem:[%s4060_s24 + $0x28] sm:$0xff] }
 0x497   : > { %v5917_v53 = vand.u32 4294901760, %v2797_v31  ;;  %v2946_v61 = vand.u32 4294901760, %v2945_v12 }
 0x499   : > { %2947 = vmatmul.f32.gmra.mxu2 %v2946_v61  ;;  %3116 = vmatmul.f32.gmra.mxu3 %v5917_v53  ;;  %v2951_v20 = vsub.f32 %v2797_v31, %v5917_v53  ;;  %v3846_v31 = vld [vmem:[%s4060_s24 + $0x30] sm:$0xff] }
 0x49b   : > { %3245 = vmatmul.f32.gmra.mxu0 %v2951_v20  ;;  %v2952_v49 = vand.u32 4294901760, %v2951_v20 }
 0x49d   : > { %3374 = vmatmul.f32.gmra.mxu1 %v2952_v49  ;;  %v2953_v51 = vsub.f32 %v2951_v20, %v2952_v49  ;;  %v3847_v49 = vld [vmem:[%s4060_s24 + $0x38] sm:$0xff] }
 0x49f   : > { %v2954_v30 = vand.u32 4294901760, %v2953_v51 }
 0x4a1   : > { %2955 = vmatmul.f32.gmra.mxu2 %v2954_v30  ;;  %3540 = vmatmul.f32.vlgmr.msrb.gmra.mxu3 %v5772_v37 }
 0x4a4   : > { %v3057_v48 = vpop.f32.mrf.mxu3 }
 0x4a9   : > { %3443 = vmatmul.f32.vlgmr.msrb.gmra.mxu2 %v5772_v37  ;;  %3544 = vmatmul.f32.gmra.mxu3 %v5792_v43 }
 0x4ac   : > { %v2836_v4 = vpop.f32.mrf.mxu2  ;;  %v3061_v22 = vpop.f32.mrf.mxu3 }
 0x4ad   : > { %v2837_v3 = vadd.f32 %v6361_v62, %v2836_v4  ;;  %v3848_v4 = vld [vmem:[%s4060_s24 + $0x40] sm:$0xff] }
 0x4af   : > { %v5925_v18 = vadd.f32 %v3057_v48, %v2837_v3 }
 0x4b1   : > { %3447 = vmatmul.f32.gmra.mxu2 %v5792_v43  ;;  %3548 = vmatmul.f32.gmra.mxu3 %v5804_v33 }
 0x4b4   : > { %v2844_v13 = vpop.f32.mrf.mxu2  ;;  %v3065_v25 = vpop.f32.mrf.mxu3 }
 0x4b5   : > { %v2845_v1 = vadd.f32 %v5775_v45, %v2844_v13  ;;  %v3849_v13 = vld [vmem:[%s4060_s24 + $0x48] sm:$0xff] }
 0x4b7   : > { %v5930_v36 = vadd.f32 %v3061_v22, %v2845_v1 }
 0x4b9   : > { %3451 = vmatmul.f32.gmra.mxu2 %v5804_v33  ;;  %3552 = vmatmul.f32.gmra.mxu3 %v5815_v34 }
 0x4bc   : > { %v2852_v37 = vpop.f32.mrf.mxu2  ;;  %v3069_v23 = vpop.f32.mrf.mxu3 }
 0x4bd   : > { %v2853_v24 = vadd.f32 %v5789_v17, %v2852_v37 }
 0x4bf   : > { %v5935_v63 = vadd.f32 %v3065_v25, %v2853_v24 }
 0x4c1   : > { %3455 = vmatmul.f32.gmra.mxu2 %v5815_v34  ;;  %3556 = vmatmul.f32.gmra.mxu3 %v5826_v50 }
 0x4c4   : > { %v2860_v43 = vpop.f32.mrf.mxu2  ;;  %v3073_v45 = vpop.f32.mrf.mxu3 }
 0x4c5   : > { %v2861_v44 = vadd.f32 %v5801_v28, %v2860_v43 }
 0x4c7   : > { %v5940_v58 = vadd.f32 %v3069_v23, %v2861_v44  ;;  %v3850_v23 = vld [vmem:[%s4060_s24 + $0x50] sm:$0xff]  ;;  %v3851_v44 = vld [vmem:[%s4060_s24 + $0x58] sm:$0xff] }
 0x4c9   : > { %3459 = vmatmul.f32.gmra.mxu2 %v5826_v50  ;;  %3560 = vmatmul.f32.gmra.mxu3 %v5835_v38 }
 0x4cc   : > { %v2868_v33 = vpop.f32.mrf.mxu2  ;;  %v3077_v17 = vpop.f32.mrf.mxu3 }
 0x4cd   : > { %v2869_v54 = vadd.f32 %v3844_v19, %v2868_v33  ;;  %v3285_v19 = vpop.f32.mrf.mxu1 }
 0x4cf   : > { %v5945_v32 = vadd.f32 %v3073_v45, %v2869_v54 }
 0x4d1   : > { %3463 = vmatmul.f32.gmra.mxu2 %v5835_v38  ;;  %3564 = vmatmul.f32.gmra.mxu3 %v5844_v11 }
 0x4d4   : > { %v2876_v34 = vpop.f32.mrf.mxu2  ;;  %v3081_v28 = vpop.f32.mrf.mxu3 }
 0x4d5   : > { %v2877_v35 = vadd.f32 %v3845_v16, %v2876_v34 }
 0x4d7   : > { %v5950_v7 = vadd.f32 %v3077_v17, %v2877_v35  ;;  %v3171_v17 = vpop.f32.mrf.mxu0 }
 0x4d9   : > { %3467 = vmatmul.f32.gmra.mxu2 %v5844_v11  ;;  %3568 = vmatmul.f32.gmra.mxu3 %v5853_v42 }
 0x4dc   : > { %v2884_v50 = vpop.f32.mrf.mxu2  ;;  %v3085_v40 = vpop.f32.mrf.mxu3 }
 0x4dd   : > { %v2885_v12 = vadd.f32 %v3846_v31, %v2884_v50  ;;  %v3291_v31 = vpop.f32.mrf.mxu1 }
 0x4df   : > { %v5955_v61 = vadd.f32 %v3081_v28, %v2885_v12  ;;  %v3852_v28 = vld [vmem:[%s4060_s24 + $0x60] sm:$0xff]  ;;  %v3176_v35 = vpop.f32.mrf.mxu0  ;;  %v3853_v12 = vld [vmem:[%s4060_s24 + $0x68] sm:$0xff] }
 0x4e1   : > { %3471 = vmatmul.f32.gmra.mxu2 %v5853_v42  ;;  %3572 = vmatmul.f32.gmra.mxu3 %v5861_v5 }
 0x4e4   : > { %v2892_v38 = vpop.f32.mrf.mxu2  ;;  %v3089_v20 = vpop.f32.mrf.mxu3 }
 0x4e5   : > { %v2893_v51 = vadd.f32 %v3847_v49, %v2892_v38 }
 0x4e7   : > { %v5960_v30 = vadd.f32 %v3085_v40, %v2893_v51 }
 0x4e9   : > { %3475 = vmatmul.f32.gmra.mxu2 %v5861_v5  ;;  %3576 = vmatmul.f32.gmra.mxu3 %v5870_v27 }
 0x4ec   : > { %v2900_v11 = vpop.f32.mrf.mxu2  ;;  %v3093_v48 = vpop.f32.mrf.mxu3 }
 0x4ed   : > { %v2901_v22 = vadd.f32 %v3848_v4, %v2900_v11  ;;  %v3854_v11 = vld [vmem:[%s4060_s24 + $0x70] sm:$0xff] }
 0x4ef   : > { %v5965_v62 = vadd.f32 %v3089_v20, %v2901_v22  ;;  %v3181_v20 = vpop.f32.mrf.mxu0 }
 0x4f1   : > { %3479 = vmatmul.f32.gmra.mxu2 %v5870_v27  ;;  %3580 = vmatmul.f32.gmra.mxu3 %v5879_v26 }
 0x4f4   : > { %v2908_v42 = vpop.f32.mrf.mxu2  ;;  %v3097_v3 = vpop.f32.mrf.mxu3 }
 0x4f5   : > { %v2909_v25 = vadd.f32 %v3849_v13, %v2908_v42  ;;  %v3855_v13 = vld [vmem:[%s4060_s24 + $0x78] sm:$0xff] }
 0x4f7   : > { %v5970_v1 = vadd.f32 %v3093_v48, %v2909_v25 }
 0x4f9   : > { %3483 = vmatmul.f32.gmra.mxu2 %v5879_v26  ;;  %3584 = vmatmul.f32.gmra.mxu3 %v5888_v0 }
 0x4fc   : > { %v2916_v5 = vpop.f32.mrf.mxu2  ;;  %v3101_v37 = vpop.f32.mrf.mxu3 }
 0x4fd   : > { %v2917_v24 = vadd.f32 %v3850_v23, %v2916_v5 }
 0x4ff   : > { %v5975_v43 = vadd.f32 %v3097_v3, %v2917_v24  ;;  %v3186_v3 = vpop.f32.mrf.mxu0 }
 0x501   : > { %3487 = vmatmul.f32.gmra.mxu2 %v5888_v0  ;;  %3588 = vmatmul.f32.gmra.mxu3 %v5897_v14 }
 0x504   : > { %v2924_v27 = vpop.f32.mrf.mxu2  ;;  %v3105_v45 = vpop.f32.mrf.mxu3 }
 0x505   : > { %v2925_v33 = vadd.f32 %v3851_v44, %v2924_v27 }
 0x507   : > { %v5980_v26 = vadd.f32 %v3101_v37, %v2925_v33  ;;  %v3191_v44 = vpop.f32.mrf.mxu0 }
 0x509   : > { %3491 = vmatmul.f32.gmra.mxu2 %v5897_v14  ;;  %3592 = vmatmul.f32.gmra.mxu3 %v5905_v57 }
 0x50c   : > { %v2932_v54 = vpop.f32.mrf.mxu2  ;;  %v3109_v34 = vpop.f32.mrf.mxu3 }
 0x50d   : > { %v2933_v16 = vadd.f32 %v3852_v28, %v2932_v54  ;;  %v3604_v54 = vmul.f32 0.5, %v6328_v39  ;;  %v3182_v39 = vadd.f32 %v3181_v20, %v5935_v63 }
 0x50f   : > { %v5985_v0 = vadd.f32 %v3105_v45, %v2933_v16 }
 0x511   : > { %3495 = vmatmul.f32.gmra.mxu2 %v5905_v57  ;;  %3596 = vmatmul.f32.gmra.mxu3 %v5911_v41  ;;  %v3297_v57 = vpop.f32.mrf.mxu1 }
 0x514   : > { %v2940_v50 = vpop.f32.mrf.mxu2  ;;  %v3113_v40 = vpop.f32.mrf.mxu3 }
 0x515   : > { %v2941_v14 = vadd.f32 %v3853_v12, %v2940_v50  ;;  %v3196_v12 = vpop.f32.mrf.mxu0 }
 0x517   : > { %v5990_v38 = vadd.f32 %v3109_v34, %v2941_v14 }
 0x519   : > { %3499 = vmatmul.f32.gmra.mxu2 %v5911_v41  ;;  %3600 = vmatmul.f32.gmra.mxu3 %v5917_v53  ;;  %v3172_v41 = vadd.f32 %v3171_v17, %v5925_v18  ;;  %v3303_v37 = vpop.f32.mrf.mxu1 }
 0x51b   : > { %v3286_v23 = vadd.f32 %v3285_v19, %v3172_v41 }
 0x51c   : > { %v2948_v49 = vpop.f32.mrf.mxu2  ;;  %v3117_v51 = vpop.f32.mrf.mxu3 }
 0x51d   : > { %v2949_v48 = vadd.f32 %v3854_v11, %v2948_v49 }
 0x51f   : > { %v5995_v4 = vadd.f32 %v3113_v40, %v2949_v48  ;;  %v3605_v40 = vmul.f32 0.5, %v6330_v52 }
 0x521   : > { %3503 = vmatmul.f32.gmra.mxu2 %v5917_v53  ;;  %v3177_v53 = vadd.f32 %v3176_v35, %v5930_v36  ;;  %v3309_v28 = vpop.f32.mrf.mxu1  ;;  %v3298_v35 = vadd.f32 %v3297_v57, %v3182_v39 }
 0x523   : > { %v3292_v18 = vadd.f32 %v3291_v31, %v3177_v53  ;;  %v3606_v31 = vmul.f32 0.5, %v6331_v55  ;;  %v3197_v53 = vadd.f32 %v3196_v12, %v5950_v7 }
 0x524   : > { %v2956_v22 = vpop.f32.mrf.mxu2  ;;  %v3541_v42 = vpop.f32.mrf.mxu3 }
 0x525   : > { %v2957_v25 = vadd.f32 %v3855_v13, %v2956_v22  ;;  %v3187_v22 = vadd.f32 %v3186_v3, %v5940_v58  ;;  %v3201_v13 = vpop.f32.mrf.mxu0 }
 0x527   : > { %v5999_v5 = vadd.f32 %v3117_v51, %v2957_v25  ;;  %v3304_v52 = vadd.f32 %v3303_v37, %v3187_v22  ;;  %v3608_v37 = vmul.f32 0.5, %v6275_v2 }
 0x529   : > { %v3315_v51 = vpop.f32.mrf.mxu1 }
 0x52c   : > { %v3444_v24 = vpop.f32.mrf.mxu2  ;;  %v3545_v27 = vpop.f32.mrf.mxu3 }
 0x52d   : > { %v3445_v45 = vadd.f32 %v3444_v24, %v3286_v23  ;;  %v3607_v23 = vmul.f32 0.5, %v6273_v47  ;;  %v3192_v24 = vadd.f32 %v3191_v44, %v5945_v32  ;;  %v3206_v58 = vpop.f32.mrf.mxu0 }
 0x52f   : > { %v3542_v33 = vadd.f32 %v3541_v42, %v3445_v45  ;;  %v3310_v45 = vadd.f32 %v3309_v28, %v3192_v24 }
 0x531   : > { %v3620_v34 = vadd.f32 %v3604_v54, %v3542_v33  ;;  %v3321_v41 = vpop.f32.mrf.mxu1 }
 0x533   : > { %3636 = vst [vmem:[%s6006_s17] sm:$0xff] %v3620_v34 }
 0x534   : > { %v3448_v17 = vpop.f32.mrf.mxu2  ;;  %v3549_v19 = vpop.f32.mrf.mxu3 }
 0x535   : > { %v3449_v16 = vadd.f32 %v3448_v17, %v3292_v18  ;;  %v3316_v17 = vadd.f32 %v3315_v51, %v3197_v53  ;;  %v3211_v44 = vpop.f32.mrf.mxu0 }
 0x537   : > { %v3546_v50 = vadd.f32 %v3545_v27, %v3449_v16  ;;  %v3609_v16 = vmul.f32 0.5, %v6276_v21 }
 0x539   : > { %v3621_v36 = vadd.f32 %v3605_v40, %v3546_v50  ;;  %v3327_v34 = vpop.f32.mrf.mxu1  ;;  %v3202_v50 = vadd.f32 %v3201_v13, %v5955_v61  ;;  %v3611_v13 = vmul.f32 0.5, %v6336_v8 }
 0x53b   : > { %3637 = vst [vmem:[%s6006_s17 + $0x8] sm:$0xff] %v3621_v36  ;;  %v3322_v2 = vadd.f32 %v3321_v41, %v3202_v50 }
 0x53c   : > { %v3452_v14 = vpop.f32.mrf.mxu2  ;;  %v3553_v49 = vpop.f32.mrf.mxu3 }
 0x53d   : > { %v3453_v11 = vadd.f32 %v3452_v14, %v3298_v35  ;;  %v3610_v14 = vmul.f32 0.5, %v6334_v6  ;;  %v3216_v51 = vpop.f32.mrf.mxu0 }
 0x53e   : > { %v3217_v24 = vadd.f32 %v3216_v51, %v5970_v1  ;;  %v3616_v51 = vmul.f32 0.5, %v6350_v9 }
 0x53f   : > { %v3550_v48 = vadd.f32 %v3549_v19, %v3453_v11 }
 0x541   : > { %v3622_v42 = vadd.f32 %v3606_v31, %v3550_v48  ;;  %v3333_v39 = vpop.f32.mrf.mxu1 }
 0x543   : > { %3638 = vst [vmem:[%s6006_s17 + $0x10] sm:$0xff] %v3622_v42 }
 0x544   : > { %v3456_v25 = vpop.f32.mrf.mxu2  ;;  %v3557_v63 = vpop.f32.mrf.mxu3 }
 0x545   : > { %v3457_v20 = vadd.f32 %v3456_v25, %v3304_v52  ;;  %v3212_v52 = vadd.f32 %v3211_v44, %v5965_v62 }
 0x547   : > { %v3554_v57 = vadd.f32 %v3553_v49, %v3457_v20  ;;  %v3207_v49 = vadd.f32 %v3206_v58, %v5960_v30  ;;  %v3334_v6 = vadd.f32 %v3333_v39, %v3212_v52  ;;  %v3615_v39 = vmul.f32 0.5, %v6345_v59 }
 0x549   : > { %v3623_v27 = vadd.f32 %v3607_v23, %v3554_v57  ;;  %v3328_v48 = vadd.f32 %v3327_v34, %v3207_v49  ;;  %v3339_v22 = vpop.f32.mrf.mxu1  ;;  %v3612_v23 = vmul.f32 0.5, %v6288_v10 }
 0x54b   : > { %3639 = vst [vmem:[%s6006_s17 + $0x18] sm:$0xff] %v3623_v27 }
 0x54c   : > { %v3460_v55 = vpop.f32.mrf.mxu2  ;;  %v3561_v33 = vpop.f32.mrf.mxu3 }
 0x54d   : > { %v3461_v3 = vadd.f32 %v3460_v55, %v3310_v45  ;;  %v3340_v55 = vadd.f32 %v3339_v22, %v3217_v24 }
 0x54f   : > { %v3558_v54 = vadd.f32 %v3557_v63, %v3461_v3  ;;  %v3221_v63 = vpop.f32.mrf.mxu0 }
 0x551   : > { %v3624_v18 = vadd.f32 %v3608_v37, %v3558_v54  ;;  %v3345_v27 = vpop.f32.mrf.mxu1  ;;  %v3613_v54 = vmul.f32 0.5, %v6293_v56  ;;  %v3222_v37 = vadd.f32 %v3221_v63, %v5975_v43 }
 0x553   : > { %3640 = vst [vmem:[%s6006_s17 + $0x20] sm:$0xff] %v3624_v18  ;;  %v3346_v10 = vadd.f32 %v3345_v27, %v3222_v37 }
 0x554   : > { %v3464_v47 = vpop.f32.mrf.mxu2  ;;  %v3565_v19 = vpop.f32.mrf.mxu3 }
 0x555   : > { %v3465_v32 = vadd.f32 %v3464_v47, %v3316_v17 }
 0x557   : > { %v3562_v28 = vadd.f32 %v3561_v33, %v3465_v32  ;;  %v3226_v58 = vpop.f32.mrf.mxu0 }
 0x558   : > { %v3227_v32 = vadd.f32 %v3226_v58, %v5980_v26 }
 0x559   : > { %v3625_v40 = vadd.f32 %v3609_v16, %v3562_v28  ;;  %v3351_v34 = vpop.f32.mrf.mxu1 }
 0x55a   : > { %v3352_v16 = vadd.f32 %v3351_v34, %v3227_v32 }
 0x55b   : > { %3641 = vst [vmem:[%s6006_s17 + $0x28] sm:$0xff] %v3625_v40 }
 0x55c   : > { %v3468_v36 = vpop.f32.mrf.mxu2  ;;  %v3569_v7 = vpop.f32.mrf.mxu3 }
 0x55d   : > { %v3469_v12 = vadd.f32 %v3468_v36, %v3322_v2 }
 0x55f   : > { %v3566_v35 = vadd.f32 %v3565_v19, %v3469_v12  ;;  %v3614_v19 = vmul.f32 0.5, %v6340_v60  ;;  %v3231_v44 = vpop.f32.mrf.mxu0 }
 0x560   : > { %v3232_v2 = vadd.f32 %v3231_v44, %v5985_v0 }
 0x561   : > { %v3626_v11 = vadd.f32 %v3610_v14, %v3566_v35  ;;  %v3357_v56 = vpop.f32.mrf.mxu1 }
 0x562   : > { %v3358_v60 = vadd.f32 %v3357_v56, %v3232_v2 }
 0x563   : > { %3642 = vst [vmem:[%s6006_s17 + $0x30] sm:$0xff] %v3626_v11 }
 0x564   : > { %v3472_v21 = vpop.f32.mrf.mxu2  ;;  %v3573_v31 = vpop.f32.mrf.mxu3 }
 0x565   : > { %v3473_v61 = vadd.f32 %v3472_v21, %v3328_v48 }
 0x567   : > { %v3570_v42 = vadd.f32 %v3569_v7, %v3473_v61  ;;  %v3236_v12 = vpop.f32.mrf.mxu0 }
 0x568   : > { %v3237_v11 = vadd.f32 %v3236_v12, %v5990_v38 }
 0x569   : > { %v3627_v25 = vadd.f32 %v3611_v13, %v3570_v42  ;;  %v3363_v14 = vpop.f32.mrf.mxu1  ;;  %v3617_v42 = vmul.f32 0.5, %v6355_v29 }
 0x56a   : > { %v3364_v59 = vadd.f32 %v3363_v14, %v3237_v11 }
 0x56b   : > { %3643 = vst [vmem:[%s6006_s17 + $0x38] sm:$0xff] %v3627_v25 }
 0x56c   : > { %v3476_v20 = vpop.f32.mrf.mxu2  ;;  %v3577_v30 = vpop.f32.mrf.mxu3 }
 0x56d   : > { %v3477_v41 = vadd.f32 %v3476_v20, %v3334_v6 }
 0x56f   : > { %v3574_v57 = vadd.f32 %v3573_v31, %v3477_v41  ;;  %v3241_v31 = vpop.f32.mrf.mxu0  ;;  %v3618_v41 = vmul.f32 0.5, %v6358_v46 }
 0x570   : > { %v3242_v13 = vadd.f32 %v3241_v31, %v5995_v4 }
 0x571   : > { %v3628_v45 = vadd.f32 %v3612_v23, %v3574_v57  ;;  %v3369_v52 = vpop.f32.mrf.mxu1 }
 0x572   : > { %v3370_v9 = vadd.f32 %v3369_v52, %v3242_v13 }
 0x573   : > { %3644 = vst [vmem:[%s6006_s17 + $0x40] sm:$0xff] %v3628_v45 }
 0x574   : > { %v3480_v8 = vpop.f32.mrf.mxu2  ;;  %v3581_v33 = vpop.f32.mrf.mxu3 }
 0x575   : > { %v3481_v62 = vadd.f32 %v3480_v8, %v3340_v55 }
 0x577   : > { %v3578_v3 = vadd.f32 %v3577_v30, %v3481_v62  ;;  %v3246_v20 = vpop.f32.mrf.mxu0 }
 0x578   : > { %v3247_v57 = vadd.f32 %v3246_v20, %v5999_v5  ;;  %v3619_v5 = vmul.f32 0.5, %v6360_v15 }
 0x579   : > { %v3629_v53 = vadd.f32 %v3613_v54, %v3578_v3  ;;  %v3375_v4 = vpop.f32.mrf.mxu1 }
 0x57a   : > { %v3376_v23 = vadd.f32 %v3375_v4, %v3247_v57 }
 0x57b   : > { %3645 = vst [vmem:[%s6006_s17 + $0x48] sm:$0xff] %v3629_v53 }
 0x57c   : > { %v3484_v18 = vpop.f32.mrf.mxu2  ;;  %v3585_v17 = vpop.f32.mrf.mxu3 }
 0x57d   : > { %v3485_v1 = vadd.f32 %v3484_v18, %v3346_v10 }
 0x57f   : > { %v3582_v47 = vadd.f32 %v3581_v33, %v3485_v1 }
 0x581   : > { %v3630_v28 = vadd.f32 %v3614_v19, %v3582_v47 }
 0x583   : > { %3646 = vst [vmem:[%s6006_s17 + $0x50] sm:$0xff] %v3630_v28 }
 0x584   : > { %v3488_v50 = vpop.f32.mrf.mxu2  ;;  %v3589_v36 = vpop.f32.mrf.mxu3 }
 0x585   : > { %v3489_v43 = vadd.f32 %v3488_v50, %v3352_v16 }
 0x587   : > { %v3586_v40 = vadd.f32 %v3585_v17, %v3489_v43 }
 0x589   : > { %v3631_v7 = vadd.f32 %v3615_v39, %v3586_v40 }
 0x58b   : > { %3647 = vst [vmem:[%s6006_s17 + $0x58] sm:$0xff] %v3631_v7 }
 0x58c   : > { %v3492_v35 = vpop.f32.mrf.mxu2  ;;  %v3593_v21 = vpop.f32.mrf.mxu3 }
 0x58d   : > { %v3493_v26 = vadd.f32 %v3492_v35, %v3358_v60 }
 0x58f   : > { %v3590_v49 = vadd.f32 %v3589_v36, %v3493_v26 }
 0x591   : > { %v3632_v48 = vadd.f32 %v3616_v51, %v3590_v49 }
 0x593   : > { %3648 = vst [vmem:[%s6006_s17 + $0x60] sm:$0xff] %v3632_v48 }
 0x594   : > { %v3496_v0 = vpop.f32.mrf.mxu2  ;;  %v3597_v38 = vpop.f32.mrf.mxu3 }
 0x595   : > { %v3497_v61 = vadd.f32 %v3496_v0, %v3364_v59 }
 0x597   : > { %v3594_v22 = vadd.f32 %v3593_v21, %v3497_v61 }
 0x599   : > { %v3633_v25 = vadd.f32 %v3617_v42, %v3594_v22 }
 0x59b   : > { %3649 = vst [vmem:[%s6006_s17 + $0x68] sm:$0xff] %v3633_v25 }
 0x59c   : > { %v3500_v63 = vpop.f32.mrf.mxu2  ;;  %v3601_v45 = vpop.f32.mrf.mxu3 }
 0x59d   : > { %v3501_v6 = vadd.f32 %v3500_v63, %v3370_v9 }
 0x59f   : > { %v3598_v30 = vadd.f32 %v3597_v38, %v3501_v6 }
 0x5a1   : > { %v3634_v29 = vadd.f32 %v3618_v41, %v3598_v30 }
 0x5a3   : > { %3650 = vst [vmem:[%s6006_s17 + $0x70] sm:$0xff] %v3634_v29 }
 0x5a4   : > { %v3504_v24 = vpop.f32.mrf.mxu2 }
 0x5a5   : > { %v3505_v27 = vadd.f32 %v3504_v24, %v3376_v23 }
 0x5a7   : > { %v3602_v46 = vadd.f32 %v3601_v45, %v3505_v27 }
 0x5a9   : > { %v3635_v55 = vadd.f32 %v3619_v5, %v3602_v46 }
 0x5ab   : > { %3651 = vst [vmem:[%s6006_s17 + $0x78] sm:$0xff] %v3635_v55 }
 0x5ac   : > { %3913 = shalt.err (!%p3910_p4)
}
 0x5ad   : > { %s3957_s16 = smov 128   ;;  %s3958_s20 = smov 8  }
 0x5ae   : > { %3775 = dma.vmem_to_hbm [thread:$0]  (%p4018_p10), %s3666_s29, 2048, %s3668_s30, %s3653_s10, %s3957_s16, %s3957_s16, %s3958_s20  }
 0x5af PF: > { %p3786_p5 = scmp.ge.s32.totalorder %s3952_s9, 2  ;;  %s3682_s21 = sand.u32 1, %s3940_s6  }
 0x5b0   : > { %s3683_s22 = scalar_lea.sflag [#allocation4], %s3682_s21 }
 0x5b1   : > { %p3782_p7 = pnand %p3786_p5, %p4022_p11 }
 0x5b3   : > { %p3783_p8 = pneg %p3782_p7 }
 0x5b5   : > { %3935 = dma.done.wait (%p3783_p8), %s3683_s22, 2048  }
 0x5b6   : > { %3937 = vsyncadd (%p3783_p8), %s3683_s22, 4294965248  ;;  %p14_p9 = scmp.ge.s32.totalorder %s3994_s12, 5   ;;  %s6362_s6 = smov %s3944_s7 }
 0x5b7   : > { %s6363_s7 = smov %s3948_s8  ;;  %s6364_s8 = smov %s4006_s15 }
 0x5b8   : > { %s6365_s9 = smov %s3994_s12  ;;  %16 = sbr.rel (!%p14_p9) target bundleno = 5 (0x5), region = 69 }
 0x5bd   :  { %3689 = vsyncpa [#allocation3], 1 }
 0x5be   :  { %3691 = vsyncpa [#allocation3 + $0x1], 1 }
 0x5bf   :  { %3692 = vsyncpa [#allocation4], 1 }
 0x5c0   :  { %3694 = vsyncpa [#allocation4 + $0x1], 1 }

</bundles_post_ra>
